<compile_context>
chip_gen: v7x
topology: tpu7x:2x2x1
jax: 0.10.0
libtpu: 0.0.40
codegen_flags: <defaults>
</compile_context>

<pallas_src>
import functools

import numpy as np
import jax
import jax.numpy as jnp
from jax.experimental import pallas as pl
from jax.experimental.pallas import tpu as pltpu


def _round_up(x, m):
    return (x + m - 1) // m * m


def _spatial_attention_kernel(x_ref, w_ref, mask_ref, o_ref, sum_ref, max_ref,
                              *, C, H, W, K, Ct):
    """Grid = (batch tiles, channel chunks); the channel axis is a reduction."""
    HW = H * W
    p = K // 2
    pmax = p * W + p                       # max |flat shift| of any conv tap

    c = pl.program_id(1)
    nc = pl.num_programs(1)

    # ---- init running channel sum / max at the start of every channel sweep ---
    @pl.when(c == 0)
    def _init():
        sum_ref[...] = jnp.zeros_like(sum_ref)
        max_ref[...] = jnp.full_like(max_ref, -jnp.inf)

    # ---- accumulate this channel chunk (widen to f32 one chunk at a time) ----
    blk = x_ref[...].astype(jnp.float32)                   # (Bt, Ct, HW)
    if C % Ct != 0:
        # Last chunk may read past C; mask the padded channels out.
        ch = jax.lax.broadcasted_iota(jnp.int32, (1, Ct, 1), 1)
        valid = ch < (C - c * Ct)
        blk_sum = jnp.where(valid, blk, 0.0)
        blk_max = jnp.where(valid, blk, -jnp.inf)
    else:
        blk_sum = blk
        blk_max = blk
    sum_ref[...] = sum_ref[...] + jnp.sum(blk_sum, axis=1)
    max_ref[...] = jnp.maximum(max_ref[...], jnp.max(blk_max, axis=1))

    # ---- last chunk: kxk conv over [avg, max] in the flat lane domain --------
    @pl.when(c == nc - 1)
    def _finish():
        avg = sum_ref[...] * jnp.float32(1.0 / C)           # (Bt, HW) f32
        mxv = max_ref[...]                                  # (Bt, HW) f32
        # Single zero pad per map: out-of-range *rows* of the kxk window land in
        # this pad region (|flat shift| <= pmax), so they contribute zero.
        pa = jnp.pad(avg, ((0, 0), (pmax, pmax)))           # (Bt, HW + 2*pmax)
        pm = jnp.pad(mxv, ((0, 0), (pmax, pmax)))

        acc_a = jnp.zeros_like(avg)                         # separate chains
        acc_m = jnp.zeros_like(avg)
        for dx in range(K):                                 # static unroll (K in {3, 7})
            off = dx - p
            if off == 0:
                ma, mm = pa, pm                             # all columns valid
            else:
                # Zero source columns that would wrap into a neighbouring row
                # for this horizontal tap (conv zero padding along W).
                mrow = mask_ref[pl.ds(dx, 1), :]            # (1, HW + 2*pmax)
                ma = pa * mrow
                mm = pm * mrow
            for dy in range(K):
                start = pmax + (dy - p) * W + off           # static, in [0, 2*pmax]
                acc_a = acc_a + w_ref[0 * K * K + dy * K + dx] * ma[:, start:start + HW]
                acc_m = acc_m + w_ref[1 * K * K + dy * K + dx] * mm[:, start:start + HW]

        o_ref[:, 0, :] = jax.nn.sigmoid(acc_a + acc_m).astype(o_ref.dtype)


def _choose_tiles(N, C, HW, itemsize, target=2 * 1024 * 1024):
    """Pick (batch tile, channel chunk) so the input block is ~`target` bytes."""
    bytes_per_channel = HW * max(itemsize, 4)   # account for in-kernel f32 widening
    if C * bytes_per_channel <= target or C <= 8:
        ct = C
    else:
        # Channel chunks smaller than C must be sublane-aligned (multiple of 8);
        # prefer one that divides C so no in-kernel channel masking is needed.
        cap = max(8, min((target // bytes_per_channel) // 8 * 8, (C // 8) * 8))
        ct = next((cand for cand in range(cap, 7, -8) if C % cand == 0), cap)
    if ct == C:
        bt = 1
        for d in range(1, N + 1):
            if N % d == 0 and d * C * bytes_per_channel <= target:
                bt = d
        # Keep >= 2 parallel grid steps when the batch allows it (dual-TC v7x).
        while bt > 1 and N // bt < 2:
            bt = max(d for d in range(1, bt) if N % d == 0)
    else:
        bt = 1
    return bt, ct
    # TODO(synk): for huge H*W with tiny C (single chunk still over budget) an
    # H-tiled grid axis with a halo would be needed; not implemented here.


def spatial_attention(x, conv_weight):
    """x: (N, C, H, W).  conv_weight: (1, 2, K, K) (PyTorch OIHW, no bias)."""
    N, C, H, W = x.shape
    out_c, in_c, K, K2 = conv_weight.shape
    assert out_c == 1 and in_c == 2 and K == K2 and K in (3, 7)

    HW = H * W
    p = K // 2
    pmax = p * W + p
    HWp = HW + 2 * pmax

    # Lane-dense presentation: flatten the spatial dims (free reshapes).
    x_flat = x.reshape(N, C, HW)
    w_flat = conv_weight.reshape(2 * K * K).astype(jnp.float32)

    # Per-horizontal-tap column masks over the padded flat map (host computed):
    # a source column cs contributes at tap dx only if the output column
    # cs - (dx - p) lies inside [0, W).
    q = np.arange(HWp)
    cs = (q - pmax) % W
    col_mask = np.stack(
        [((cs >= (dx - p)) & (cs <= W - 1 + (dx - p))).astype(np.float32)
         for dx in range(K)])
    col_mask = jnp.asarray(col_mask)                        # (K, HWp) f32

    Bt, Ct = _choose_tiles(N, C, HW, x.dtype.itemsize)
    nb = N // Bt
    nc = pl.cdiv(C, Ct)

    # Scoped-VMEM budget: double-buffered in/out blocks + f32 widening of one
    # chunk + the two f32 accumulators + headroom for conv temporaries.
    itemsize = x.dtype.itemsize
    in_blk = Bt * _round_up(Ct, 8) * _round_up(HW, 128) * itemsize
    in_blk_f32 = Bt * _round_up(Ct, 8) * _round_up(HW, 128) * 4
    out_blk = Bt * _round_up(HW, 128) * itemsize
    acc_blk = 2 * _round_up(Bt, 8) * _round_up(HW, 128) * 4
    need = 2 * in_blk + in_blk_f32 + 2 * out_blk + acc_blk + (4 << 20)
    vmem_limit = int(min(48 << 20, max(need, 32 << 20)))

    kernel = functools.partial(
        _spatial_attention_kernel, C=C, H=H, W=W, K=K, Ct=Ct)

    out_flat = pl.pallas_call(
        kernel,
        out_shape=jax.ShapeDtypeStruct((N, 1, HW), x.dtype),
        grid_spec=pltpu.PrefetchScalarGridSpec(
            num_scalar_prefetch=0,
            grid=(nb, nc),                                  # reduction axis last
            in_specs=[
                pl.BlockSpec((Bt, Ct, HW), lambda b, c: (b, c, 0)),
                pl.BlockSpec(memory_space=pltpu.MemorySpace.SMEM),
                pl.BlockSpec((K, HWp), lambda b, c: (0, 0)),
            ],
            out_specs=pl.BlockSpec((Bt, 1, HW), lambda b, c: (b, 0, 0)),
            scratch_shapes=[
                pltpu.VMEM((Bt, HW), jnp.float32),          # running channel sum
                pltpu.VMEM((Bt, HW), jnp.float32),          # running channel max
            ],
        ),
        compiler_params=pltpu.CompilerParams(
            dimension_semantics=("parallel", "arbitrary"),
            vmem_limit_bytes=vmem_limit,
        ),
    )(x_flat, w_flat, col_mask)

    return out_flat.reshape(N, 1, H, W)


def _reference(x, conv_weight):
    avg = jnp.mean(x, axis=1, keepdims=True)
    mx = jnp.max(x, axis=1, keepdims=True)
    cat = jnp.concatenate([avg, mx], axis=1)
    pad = conv_weight.shape[-1] // 2
    y = jax.lax.conv_general_dilated(
        cat, conv_weight,
        window_strides=(1, 1),
        padding=((pad, pad), (pad, pad)),
        dimension_numbers=("NCHW", "OIHW", "NCHW"),
    )
    return jax.nn.sigmoid(y)


if __name__ == "__main__":
    key = jax.random.PRNGKey(0)
    kx, kw = jax.random.split(key)

    N, C, H, W = 2, 4, 16, 16
    K = 7

    x = jax.random.normal(kx, (N, C, H, W), dtype=jnp.float32)
    # Deterministic synthetic conv weight (shape matches nn.Conv2d(2, 1, 7)).
    conv_w = 0.1 * jax.random.normal(kw, (1, 2, K, K), dtype=jnp.float32)

    out = spatial_attention(x, conv_w)
    out = jax.block_until_ready(out)

    ref = _reference(x, conv_w)
    assert out.shape == (N, 1, H, W)
    assert jnp.allclose(out, ref, atol=1e-5, rtol=1e-5), \
        float(jnp.max(jnp.abs(out - ref)))

    print("KERNEL_OK")
</pallas_src>

<mosaic_0001>
module attributes {stable_mosaic.version = 11 : i64} {
  func.func @_spatial_attention_kernel(%arg0: i32, %arg1: i32, %arg2: memref<1x4x256xf32, #tpu.memory_space<vmem>>, %arg3: memref<98xf32, #tpu.memory_space<smem>>, %arg4: memref<7x358xf32, #tpu.memory_space<vmem>>, %arg5: memref<1x1x256xf32, #tpu.memory_space<vmem>>, %arg6: memref<1x256xf32, #tpu.memory_space<vmem>>, %arg7: memref<1x256xf32, #tpu.memory_space<vmem>>) attributes {dimension_semantics = [#tpu.dimension_semantics<parallel>, #tpu.dimension_semantics<arbitrary>], iteration_bounds = array<i64: 2, 1>, scalar_prefetch = 0 : i64, scratch_operands = 2 : i64, tpu.core_type = #tpu.core_type<tc>, window_params = [{transform_indices = @transform_0, window_bounds = array<i64: 1, 4, 256>}, {transform_indices = @transform_1, window_bounds = array<i64: 98>}, {pipeline_mode = #tpu.pipeline_mode<synchronous>, transform_indices = @transform_2, window_bounds = array<i64: 7, 358>}, {transform_indices = @transform_3, window_bounds = array<i64: 1, 1, 256>}]} {
    %c0_i32 = arith.constant 0 : i32
    %0 = arith.cmpi eq, %arg1, %c0_i32 : i32
    %1 = arith.extui %0 : i1 to i32
    %c0_i32_0 = arith.constant 0 : i32
    %2 = arith.cmpi ne, %1, %c0_i32_0 : i32
    scf.if %2 {
      %cst_14 = arith.constant 0.000000e+00 : f32
      %15 = vector.broadcast %cst_14 : f32 to vector<1x256xf32>
      %c0_15 = arith.constant 0 : index
      %c0_16 = arith.constant 0 : index
      %16 = vector.load %arg6[%c0_15, %c0_16] : memref<1x256xf32, #tpu.memory_space<vmem>>, vector<1x256xf32>
      tpu.vector_store %arg6[%c0_15, %c0_16], %15 {strides = array<i32>} : memref<1x256xf32, #tpu.memory_space<vmem>>, vector<1x256xf32>,
      %cst_17 = arith.constant 0xFF800000 : f32
      %17 = vector.broadcast %cst_17 : f32 to vector<1x256xf32>
      %c0_18 = arith.constant 0 : index
      %c0_19 = arith.constant 0 : index
      %18 = vector.load %arg7[%c0_18, %c0_19] : memref<1x256xf32, #tpu.memory_space<vmem>>, vector<1x256xf32>
      tpu.vector_store %arg7[%c0_18, %c0_19], %17 {strides = array<i32>} : memref<1x256xf32, #tpu.memory_space<vmem>>, vector<1x256xf32>,
    } else {
    }
    %c0 = arith.constant 0 : index
    %c0_1 = arith.constant 0 : index
    %c0_2 = arith.constant 0 : index
    %3 = vector.load %arg2[%c0, %c0_1, %c0_2] : memref<1x4x256xf32, #tpu.memory_space<vmem>>, vector<1x4x256xf32>
    %c0_3 = arith.constant 0 : index
    %c0_4 = arith.constant 0 : index
    %4 = vector.load %arg6[%c0_3, %c0_4] : memref<1x256xf32, #tpu.memory_space<vmem>>, vector<1x256xf32>
    %cst = arith.constant dense<0.000000e+00> : vector<1x256xf32>
    %5 = vector.multi_reduction <add>, %3, %cst [1] : vector<1x4x256xf32> to vector<1x256xf32>
    %6 = arith.addf %4, %5 : vector<1x256xf32>
    %c0_5 = arith.constant 0 : index
    %c0_6 = arith.constant 0 : index
    %7 = vector.load %arg6[%c0_5, %c0_6] : memref<1x256xf32, #tpu.memory_space<vmem>>, vector<1x256xf32>
    tpu.vector_store %arg6[%c0_5, %c0_6], %6 {strides = array<i32>} : memref<1x256xf32, #tpu.memory_space<vmem>>, vector<1x256xf32>,
    %c0_7 = arith.constant 0 : index
    %c0_8 = arith.constant 0 : index
    %8 = vector.load %arg7[%c0_7, %c0_8] : memref<1x256xf32, #tpu.memory_space<vmem>>, vector<1x256xf32>
    %cst_9 = arith.constant dense<0xFF800000> : vector<1x256xf32>
    %9 = vector.multi_reduction <maximumf>, %3, %cst_9 [1] : vector<1x4x256xf32> to vector<1x256xf32>
    %10 = arith.maximumf %8, %9 : vector<1x256xf32>
    %c0_10 = arith.constant 0 : index
    %c0_11 = arith.constant 0 : index
    %11 = vector.load %arg7[%c0_10, %c0_11] : memref<1x256xf32, #tpu.memory_space<vmem>>, vector<1x256xf32>
    tpu.vector_store %arg7[%c0_10, %c0_11], %10 {strides = array<i32>} : memref<1x256xf32, #tpu.memory_space<vmem>>, vector<1x256xf32>,
    %c0_i32_12 = arith.constant 0 : i32
    %12 = arith.cmpi eq, %arg1, %c0_i32_12 : i32
    %13 = arith.extui %12 : i1 to i32
    %c0_i32_13 = arith.constant 0 : i32
    %14 = arith.cmpi ne, %13, %c0_i32_13 : i32
    scf.if %14 {
      %c0_14 = arith.constant 0 : index
      %c0_15 = arith.constant 0 : index
      %15 = vector.load %arg6[%c0_14, %c0_15] : memref<1x256xf32, #tpu.memory_space<vmem>>, vector<1x256xf32>
      %cst_16 = arith.constant 2.500000e-01 : f32
      %16 = vector.broadcast %cst_16 : f32 to vector<1x256xf32>
      %17 = arith.mulf %15, %16 : vector<1x256xf32>
      %c0_17 = arith.constant 0 : index
      %c0_18 = arith.constant 0 : index
      %18 = vector.load %arg7[%c0_17, %c0_18] : memref<1x256xf32, #tpu.memory_space<vmem>>, vector<1x256xf32>
      %c0_i32_19 = arith.constant 0 : i32
      %19 = arith.sitofp %c0_i32_19 : i32 to f32
      %20 = vector.broadcast %19 : f32 to vector<1x51xf32>
      %21 = tpu.concatenate %20, %17 in 1 : vector<1x51xf32>, vector<1x256xf32> -> vector<1x307xf32>
      %22 = vector.broadcast %19 : f32 to vector<1x51xf32>
      %23 = tpu.concatenate %21, %22 in 1 : vector<1x307xf32>, vector<1x51xf32> -> vector<1x358xf32>
      %c0_i32_20 = arith.constant 0 : i32
      %24 = arith.sitofp %c0_i32_20 : i32 to f32
      %25 = vector.broadcast %24 : f32 to vector<1x51xf32>
      %26 = tpu.concatenate %25, %18 in 1 : vector<1x51xf32>, vector<1x256xf32> -> vector<1x307xf32>
      %27 = vector.broadcast %24 : f32 to vector<1x51xf32>
      %28 = tpu.concatenate %26, %27 in 1 : vector<1x307xf32>, vector<1x51xf32> -> vector<1x358xf32>
      %cst_21 = arith.constant 0.000000e+00 : f32
      %29 = vector.broadcast %cst_21 : f32 to vector<1x256xf32>
      %cst_22 = arith.constant 0.000000e+00 : f32
      %30 = vector.broadcast %cst_22 : f32 to vector<1x256xf32>
      %c0_23 = arith.constant 0 : index
      %c0_24 = arith.constant 0 : index
      %31 = vector.load %arg4[%c0_23, %c0_24] : memref<7x358xf32, #tpu.memory_space<vmem>>, vector<1x358xf32>
      %32 = arith.mulf %23, %31 : vector<1x358xf32>
      %33 = arith.mulf %28, %31 : vector<1x358xf32>
      %c0_25 = arith.constant 0 : index
      %34 = memref.load %arg3[%c0_25] : memref<98xf32, #tpu.memory_space<smem>>
      %35 = vector.extract_strided_slice %32 {offsets = [0, 0], sizes = [1, 256], strides = [1, 1]} : vector<1x358xf32> to vector<1x256xf32>
      %36 = vector.broadcast %34 : f32 to vector<1x256xf32>
      %37 = arith.mulf %36, %35 : vector<1x256xf32>
      %38 = arith.addf %29, %37 : vector<1x256xf32>
      %c49 = arith.constant 49 : index
      %39 = memref.load %arg3[%c49] : memref<98xf32, #tpu.memory_space<smem>>
      %40 = vector.extract_strided_slice %33 {offsets = [0, 0], sizes = [1, 256], strides = [1, 1]} : vector<1x358xf32> to vector<1x256xf32>
      %41 = vector.broadcast %39 : f32 to vector<1x256xf32>
      %42 = arith.mulf %41, %40 : vector<1x256xf32>
      %43 = arith.addf %30, %42 : vector<1x256xf32>
      %c7 = arith.constant 7 : index
      %44 = memref.load %arg3[%c7] : memref<98xf32, #tpu.memory_space<smem>>
      %45 = vector.extract_strided_slice %32 {offsets = [0, 16], sizes = [1, 256], strides = [1, 1]} : vector<1x358xf32> to vector<1x256xf32>
      %46 = vector.broadcast %44 : f32 to vector<1x256xf32>
      %47 = arith.mulf %46, %45 : vector<1x256xf32>
      %48 = arith.addf %38, %47 : vector<1x256xf32>
      %c56 = arith.constant 56 : index
      %49 = memref.load %arg3[%c56] : memref<98xf32, #tpu.memory_space<smem>>
      %50 = vector.extract_strided_slice %33 {offsets = [0, 16], sizes = [1, 256], strides = [1, 1]} : vector<1x358xf32> to vector<1x256xf32>
      %51 = vector.broadcast %49 : f32 to vector<1x256xf32>
      %52 = arith.mulf %51, %50 : vector<1x256xf32>
      %53 = arith.addf %43, %52 : vector<1x256xf32>
      %c14 = arith.constant 14 : index
      %54 = memref.load %arg3[%c14] : memref<98xf32, #tpu.memory_space<smem>>
      %55 = vector.extract_strided_slice %32 {offsets = [0, 32], sizes = [1, 256], strides = [1, 1]} : vector<1x358xf32> to vector<1x256xf32>
      %56 = vector.broadcast %54 : f32 to vector<1x256xf32>
      %57 = arith.mulf %56, %55 : vector<1x256xf32>
      %58 = arith.addf %48, %57 : vector<1x256xf32>
      %c63 = arith.constant 63 : index
      %59 = memref.load %arg3[%c63] : memref<98xf32, #tpu.memory_space<smem>>
      %60 = vector.extract_strided_slice %33 {offsets = [0, 32], sizes = [1, 256], strides = [1, 1]} : vector<1x358xf32> to vector<1x256xf32>
      %61 = vector.broadcast %59 : f32 to vector<1x256xf32>
      %62 = arith.mulf %61, %60 : vector<1x256xf32>
      %63 = arith.addf %53, %62 : vector<1x256xf32>
      %c21 = arith.constant 21 : index
      %64 = memref.load %arg3[%c21] : memref<98xf32, #tpu.memory_space<smem>>
      %65 = vector.extract_strided_slice %32 {offsets = [0, 48], sizes = [1, 256], strides = [1, 1]} : vector<1x358xf32> to vector<1x256xf32>
      %66 = vector.broadcast %64 : f32 to vector<1x256xf32>
      %67 = arith.mulf %66, %65 : vector<1x256xf32>
      %68 = arith.addf %58, %67 : vector<1x256xf32>
      %c70 = arith.constant 70 : index
      %69 = memref.load %arg3[%c70] : memref<98xf32, #tpu.memory_space<smem>>
      %70 = vector.extract_strided_slice %33 {offsets = [0, 48], sizes = [1, 256], strides = [1, 1]} : vector<1x358xf32> to vector<1x256xf32>
      %71 = vector.broadcast %69 : f32 to vector<1x256xf32>
      %72 = arith.mulf %71, %70 : vector<1x256xf32>
      %73 = arith.addf %63, %72 : vector<1x256xf32>
      %c28 = arith.constant 28 : index
      %74 = memref.load %arg3[%c28] : memref<98xf32, #tpu.memory_space<smem>>
      %75 = vector.extract_strided_slice %32 {offsets = [0, 64], sizes = [1, 256], strides = [1, 1]} : vector<1x358xf32> to vector<1x256xf32>
      %76 = vector.broadcast %74 : f32 to vector<1x256xf32>
      %77 = arith.mulf %76, %75 : vector<1x256xf32>
      %78 = arith.addf %68, %77 : vector<1x256xf32>
      %c77 = arith.constant 77 : index
      %79 = memref.load %arg3[%c77] : memref<98xf32, #tpu.memory_space<smem>>
      %80 = vector.extract_strided_slice %33 {offsets = [0, 64], sizes = [1, 256], strides = [1, 1]} : vector<1x358xf32> to vector<1x256xf32>
      %81 = vector.broadcast %79 : f32 to vector<1x256xf32>
      %82 = arith.mulf %81, %80 : vector<1x256xf32>
      %83 = arith.addf %73, %82 : vector<1x256xf32>
      %c35 = arith.constant 35 : index
      %84 = memref.load %arg3[%c35] : memref<98xf32, #tpu.memory_space<smem>>
      %85 = vector.extract_strided_slice %32 {offsets = [0, 80], sizes = [1, 256], strides = [1, 1]} : vector<1x358xf32> to vector<1x256xf32>
      %86 = vector.broadcast %84 : f32 to vector<1x256xf32>
      %87 = arith.mulf %86, %85 : vector<1x256xf32>
      %88 = arith.addf %78, %87 : vector<1x256xf32>
      %c84 = arith.constant 84 : index
      %89 = memref.load %arg3[%c84] : memref<98xf32, #tpu.memory_space<smem>>
      %90 = vector.extract_strided_slice %33 {offsets = [0, 80], sizes = [1, 256], strides = [1, 1]} : vector<1x358xf32> to vector<1x256xf32>
      %91 = vector.broadcast %89 : f32 to vector<1x256xf32>
      %92 = arith.mulf %91, %90 : vector<1x256xf32>
      %93 = arith.addf %83, %92 : vector<1x256xf32>
      %c42 = arith.constant 42 : index
      %94 = memref.load %arg3[%c42] : memref<98xf32, #tpu.memory_space<smem>>
      %95 = vector.extract_strided_slice %32 {offsets = [0, 96], sizes = [1, 256], strides = [1, 1]} : vector<1x358xf32> to vector<1x256xf32>
      %96 = vector.broadcast %94 : f32 to vector<1x256xf32>
      %97 = arith.mulf %96, %95 : vector<1x256xf32>
      %98 = arith.addf %88, %97 : vector<1x256xf32>
      %c91 = arith.constant 91 : index
      %99 = memref.load %arg3[%c91] : memref<98xf32, #tpu.memory_space<smem>>
      %100 = vector.extract_strided_slice %33 {offsets = [0, 96], sizes = [1, 256], strides = [1, 1]} : vector<1x358xf32> to vector<1x256xf32>
      %101 = vector.broadcast %99 : f32 to vector<1x256xf32>
      %102 = arith.mulf %101, %100 : vector<1x256xf32>
      %103 = arith.addf %93, %102 : vector<1x256xf32>
      %c1 = arith.constant 1 : index
      %c0_26 = arith.constant 0 : index
      %104 = vector.load %arg4[%c1, %c0_26] : memref<7x358xf32, #tpu.memory_space<vmem>>, vector<1x358xf32>
      %105 = arith.mulf %23, %104 : vector<1x358xf32>
      %106 = arith.mulf %28, %104 : vector<1x358xf32>
      %c1_27 = arith.constant 1 : index
      %107 = memref.load %arg3[%c1_27] : memref<98xf32, #tpu.memory_space<smem>>
      %108 = vector.extract_strided_slice %105 {offsets = [0, 1], sizes = [1, 256], strides = [1, 1]} : vector<1x358xf32> to vector<1x256xf32>
      %109 = vector.broadcast %107 : f32 to vector<1x256xf32>
      %110 = arith.mulf %109, %108 : vector<1x256xf32>
      %111 = arith.addf %98, %110 : vector<1x256xf32>
      %c50 = arith.constant 50 : index
      %112 = memref.load %arg3[%c50] : memref<98xf32, #tpu.memory_space<smem>>
      %113 = vector.extract_strided_slice %106 {offsets = [0, 1], sizes = [1, 256], strides = [1, 1]} : vector<1x358xf32> to vector<1x256xf32>
      %114 = vector.broadcast %112 : f32 to vector<1x256xf32>
      %115 = arith.mulf %114, %113 : vector<1x256xf32>
      %116 = arith.addf %103, %115 : vector<1x256xf32>
      %c8 = arith.constant 8 : index
      %117 = memref.load %arg3[%c8] : memref<98xf32, #tpu.memory_space<smem>>
      %118 = vector.extract_strided_slice %105 {offsets = [0, 17], sizes = [1, 256], strides = [1, 1]} : vector<1x358xf32> to vector<1x256xf32>
      %119 = vector.broadcast %117 : f32 to vector<1x256xf32>
      %120 = arith.mulf %119, %118 : vector<1x256xf32>
      %121 = arith.addf %111, %120 : vector<1x256xf32>
      %c57 = arith.constant 57 : index
      %122 = memref.load %arg3[%c57] : memref<98xf32, #tpu.memory_space<smem>>
      %123 = vector.extract_strided_slice %106 {offsets = [0, 17], sizes = [1, 256], strides = [1, 1]} : vector<1x358xf32> to vector<1x256xf32>
      %124 = vector.broadcast %122 : f32 to vector<1x256xf32>
      %125 = arith.mulf %124, %123 : vector<1x256xf32>
      %126 = arith.addf %116, %125 : vector<1x256xf32>
      %c15 = arith.constant 15 : index
      %127 = memref.load %arg3[%c15] : memref<98xf32, #tpu.memory_space<smem>>
      %128 = vector.extract_strided_slice %105 {offsets = [0, 33], sizes = [1, 256], strides = [1, 1]} : vector<1x358xf32> to vector<1x256xf32>
      %129 = vector.broadcast %127 : f32 to vector<1x256xf32>
      %130 = arith.mulf %129, %128 : vector<1x256xf32>
      %131 = arith.addf %121, %130 : vector<1x256xf32>
      %c64 = arith.constant 64 : index
      %132 = memref.load %arg3[%c64] : memref<98xf32, #tpu.memory_space<smem>>
      %133 = vector.extract_strided_slice %106 {offsets = [0, 33], sizes = [1, 256], strides = [1, 1]} : vector<1x358xf32> to vector<1x256xf32>
      %134 = vector.broadcast %132 : f32 to vector<1x256xf32>
      %135 = arith.mulf %134, %133 : vector<1x256xf32>
      %136 = arith.addf %126, %135 : vector<1x256xf32>
      %c22 = arith.constant 22 : index
      %137 = memref.load %arg3[%c22] : memref<98xf32, #tpu.memory_space<smem>>
      %138 = vector.extract_strided_slice %105 {offsets = [0, 49], sizes = [1, 256], strides = [1, 1]} : vector<1x358xf32> to vector<1x256xf32>
      %139 = vector.broadcast %137 : f32 to vector<1x256xf32>
      %140 = arith.mulf %139, %138 : vector<1x256xf32>
      %141 = arith.addf %131, %140 : vector<1x256xf32>
      %c71 = arith.constant 71 : index
      %142 = memref.load %arg3[%c71] : memref<98xf32, #tpu.memory_space<smem>>
      %143 = vector.extract_strided_slice %106 {offsets = [0, 49], sizes = [1, 256], strides = [1, 1]} : vector<1x358xf32> to vector<1x256xf32>
      %144 = vector.broadcast %142 : f32 to vector<1x256xf32>
      %145 = arith.mulf %144, %143 : vector<1x256xf32>
      %146 = arith.addf %136, %145 : vector<1x256xf32>
      %c29 = arith.constant 29 : index
      %147 = memref.load %arg3[%c29] : memref<98xf32, #tpu.memory_space<smem>>
      %148 = vector.extract_strided_slice %105 {offsets = [0, 65], sizes = [1, 256], strides = [1, 1]} : vector<1x358xf32> to vector<1x256xf32>
      %149 = vector.broadcast %147 : f32 to vector<1x256xf32>
      %150 = arith.mulf %149, %148 : vector<1x256xf32>
      %151 = arith.addf %141, %150 : vector<1x256xf32>
      %c78 = arith.constant 78 : index
      %152 = memref.load %arg3[%c78] : memref<98xf32, #tpu.memory_space<smem>>
      %153 = vector.extract_strided_slice %106 {offsets = [0, 65], sizes = [1, 256], strides = [1, 1]} : vector<1x358xf32> to vector<1x256xf32>
      %154 = vector.broadcast %152 : f32 to vector<1x256xf32>
      %155 = arith.mulf %154, %153 : vector<1x256xf32>
      %156 = arith.addf %146, %155 : vector<1x256xf32>
      %c36 = arith.constant 36 : index
      %157 = memref.load %arg3[%c36] : memref<98xf32, #tpu.memory_space<smem>>
      %158 = vector.extract_strided_slice %105 {offsets = [0, 81], sizes = [1, 256], strides = [1, 1]} : vector<1x358xf32> to vector<1x256xf32>
      %159 = vector.broadcast %157 : f32 to vector<1x256xf32>
      %160 = arith.mulf %159, %158 : vector<1x256xf32>
      %161 = arith.addf %151, %160 : vector<1x256xf32>
      %c85 = arith.constant 85 : index
      %162 = memref.load %arg3[%c85] : memref<98xf32, #tpu.memory_space<smem>>
      %163 = vector.extract_strided_slice %106 {offsets = [0, 81], sizes = [1, 256], strides = [1, 1]} : vector<1x358xf32> to vector<1x256xf32>
      %164 = vector.broadcast %162 : f32 to vector<1x256xf32>
      %165 = arith.mulf %164, %163 : vector<1x256xf32>
      %166 = arith.addf %156, %165 : vector<1x256xf32>
      %c43 = arith.constant 43 : index
      %167 = memref.load %arg3[%c43] : memref<98xf32, #tpu.memory_space<smem>>
      %168 = vector.extract_strided_slice %105 {offsets = [0, 97], sizes = [1, 256], strides = [1, 1]} : vector<1x358xf32> to vector<1x256xf32>
      %169 = vector.broadcast %167 : f32 to vector<1x256xf32>
      %170 = arith.mulf %169, %168 : vector<1x256xf32>
      %171 = arith.addf %161, %170 : vector<1x256xf32>
      %c92 = arith.constant 92 : index
      %172 = memref.load %arg3[%c92] : memref<98xf32, #tpu.memory_space<smem>>
      %173 = vector.extract_strided_slice %106 {offsets = [0, 97], sizes = [1, 256], strides = [1, 1]} : vector<1x358xf32> to vector<1x256xf32>
      %174 = vector.broadcast %172 : f32 to vector<1x256xf32>
      %175 = arith.mulf %174, %173 : vector<1x256xf32>
      %176 = arith.addf %166, %175 : vector<1x256xf32>
      %c2 = arith.constant 2 : index
      %c0_28 = arith.constant 0 : index
      %177 = vector.load %arg4[%c2, %c0_28] : memref<7x358xf32, #tpu.memory_space<vmem>>, vector<1x358xf32>
      %178 = arith.mulf %23, %177 : vector<1x358xf32>
      %179 = arith.mulf %28, %177 : vector<1x358xf32>
      %c2_29 = arith.constant 2 : index
      %180 = memref.load %arg3[%c2_29] : memref<98xf32, #tpu.memory_space<smem>>
      %181 = vector.extract_strided_slice %178 {offsets = [0, 2], sizes = [1, 256], strides = [1, 1]} : vector<1x358xf32> to vector<1x256xf32>
      %182 = vector.broadcast %180 : f32 to vector<1x256xf32>
      %183 = arith.mulf %182, %181 : vector<1x256xf32>
      %184 = arith.addf %171, %183 : vector<1x256xf32>
      %c51 = arith.constant 51 : index
      %185 = memref.load %arg3[%c51] : memref<98xf32, #tpu.memory_space<smem>>
      %186 = vector.extract_strided_slice %179 {offsets = [0, 2], sizes = [1, 256], strides = [1, 1]} : vector<1x358xf32> to vector<1x256xf32>
      %187 = vector.broadcast %185 : f32 to vector<1x256xf32>
      %188 = arith.mulf %187, %186 : vector<1x256xf32>
      %189 = arith.addf %176, %188 : vector<1x256xf32>
      %c9 = arith.constant 9 : index
      %190 = memref.load %arg3[%c9] : memref<98xf32, #tpu.memory_space<smem>>
      %191 = vector.extract_strided_slice %178 {offsets = [0, 18], sizes = [1, 256], strides = [1, 1]} : vector<1x358xf32> to vector<1x256xf32>
      %192 = vector.broadcast %190 : f32 to vector<1x256xf32>
      %193 = arith.mulf %192, %191 : vector<1x256xf32>
      %194 = arith.addf %184, %193 : vector<1x256xf32>
      %c58 = arith.constant 58 : index
      %195 = memref.load %arg3[%c58] : memref<98xf32, #tpu.memory_space<smem>>
      %196 = vector.extract_strided_slice %179 {offsets = [0, 18], sizes = [1, 256], strides = [1, 1]} : vector<1x358xf32> to vector<1x256xf32>
      %197 = vector.broadcast %195 : f32 to vector<1x256xf32>
      %198 = arith.mulf %197, %196 : vector<1x256xf32>
      %199 = arith.addf %189, %198 : vector<1x256xf32>
      %c16 = arith.constant 16 : index
      %200 = memref.load %arg3[%c16] : memref<98xf32, #tpu.memory_space<smem>>
      %201 = vector.extract_strided_slice %178 {offsets = [0, 34], sizes = [1, 256], strides = [1, 1]} : vector<1x358xf32> to vector<1x256xf32>
      %202 = vector.broadcast %200 : f32 to vector<1x256xf32>
      %203 = arith.mulf %202, %201 : vector<1x256xf32>
      %204 = arith.addf %194, %203 : vector<1x256xf32>
      %c65 = arith.constant 65 : index
      %205 = memref.load %arg3[%c65] : memref<98xf32, #tpu.memory_space<smem>>
      %206 = vector.extract_strided_slice %179 {offsets = [0, 34], sizes = [1, 256], strides = [1, 1]} : vector<1x358xf32> to vector<1x256xf32>
      %207 = vector.broadcast %205 : f32 to vector<1x256xf32>
      %208 = arith.mulf %207, %206 : vector<1x256xf32>
      %209 = arith.addf %199, %208 : vector<1x256xf32>
      %c23 = arith.constant 23 : index
      %210 = memref.load %arg3[%c23] : memref<98xf32, #tpu.memory_space<smem>>
      %211 = vector.extract_strided_slice %178 {offsets = [0, 50], sizes = [1, 256], strides = [1, 1]} : vector<1x358xf32> to vector<1x256xf32>
      %212 = vector.broadcast %210 : f32 to vector<1x256xf32>
      %213 = arith.mulf %212, %211 : vector<1x256xf32>
      %214 = arith.addf %204, %213 : vector<1x256xf32>
      %c72 = arith.constant 72 : index
      %215 = memref.load %arg3[%c72] : memref<98xf32, #tpu.memory_space<smem>>
      %216 = vector.extract_strided_slice %179 {offsets = [0, 50], sizes = [1, 256], strides = [1, 1]} : vector<1x358xf32> to vector<1x256xf32>
      %217 = vector.broadcast %215 : f32 to vector<1x256xf32>
      %218 = arith.mulf %217, %216 : vector<1x256xf32>
      %219 = arith.addf %209, %218 : vector<1x256xf32>
      %c30 = arith.constant 30 : index
      %220 = memref.load %arg3[%c30] : memref<98xf32, #tpu.memory_space<smem>>
      %221 = vector.extract_strided_slice %178 {offsets = [0, 66], sizes = [1, 256], strides = [1, 1]} : vector<1x358xf32> to vector<1x256xf32>
      %222 = vector.broadcast %220 : f32 to vector<1x256xf32>
      %223 = arith.mulf %222, %221 : vector<1x256xf32>
      %224 = arith.addf %214, %223 : vector<1x256xf32>
      %c79 = arith.constant 79 : index
      %225 = memref.load %arg3[%c79] : memref<98xf32, #tpu.memory_space<smem>>
      %226 = vector.extract_strided_slice %179 {offsets = [0, 66], sizes = [1, 256], strides = [1, 1]} : vector<1x358xf32> to vector<1x256xf32>
      %227 = vector.broadcast %225 : f32 to vector<1x256xf32>
      %228 = arith.mulf %227, %226 : vector<1x256xf32>
      %229 = arith.addf %219, %228 : vector<1x256xf32>
      %c37 = arith.constant 37 : index
      %230 = memref.load %arg3[%c37] : memref<98xf32, #tpu.memory_space<smem>>
      %231 = vector.extract_strided_slice %178 {offsets = [0, 82], sizes = [1, 256], strides = [1, 1]} : vector<1x358xf32> to vector<1x256xf32>
      %232 = vector.broadcast %230 : f32 to vector<1x256xf32>
      %233 = arith.mulf %232, %231 : vector<1x256xf32>
      %234 = arith.addf %224, %233 : vector<1x256xf32>
      %c86 = arith.constant 86 : index
      %235 = memref.load %arg3[%c86] : memref<98xf32, #tpu.memory_space<smem>>
      %236 = vector.extract_strided_slice %179 {offsets = [0, 82], sizes = [1, 256], strides = [1, 1]} : vector<1x358xf32> to vector<1x256xf32>
      %237 = vector.broadcast %235 : f32 to vector<1x256xf32>
      %238 = arith.mulf %237, %236 : vector<1x256xf32>
      %239 = arith.addf %229, %238 : vector<1x256xf32>
      %c44 = arith.constant 44 : index
      %240 = memref.load %arg3[%c44] : memref<98xf32, #tpu.memory_space<smem>>
      %241 = vector.extract_strided_slice %178 {offsets = [0, 98], sizes = [1, 256], strides = [1, 1]} : vector<1x358xf32> to vector<1x256xf32>
      %242 = vector.broadcast %240 : f32 to vector<1x256xf32>
      %243 = arith.mulf %242, %241 : vector<1x256xf32>
      %244 = arith.addf %234, %243 : vector<1x256xf32>
      %c93 = arith.constant 93 : index
      %245 = memref.load %arg3[%c93] : memref<98xf32, #tpu.memory_space<smem>>
      %246 = vector.extract_strided_slice %179 {offsets = [0, 98], sizes = [1, 256], strides = [1, 1]} : vector<1x358xf32> to vector<1x256xf32>
      %247 = vector.broadcast %245 : f32 to vector<1x256xf32>
      %248 = arith.mulf %247, %246 : vector<1x256xf32>
      %249 = arith.addf %239, %248 : vector<1x256xf32>
      %c3 = arith.constant 3 : index
      %250 = memref.load %arg3[%c3] : memref<98xf32, #tpu.memory_space<smem>>
      %251 = vector.extract_strided_slice %23 {offsets = [0, 3], sizes = [1, 256], strides = [1, 1]} : vector<1x358xf32> to vector<1x256xf32>
      %252 = vector.broadcast %250 : f32 to vector<1x256xf32>
      %253 = arith.mulf %252, %251 : vector<1x256xf32>
      %254 = arith.addf %244, %253 : vector<1x256xf32>
      %c52 = arith.constant 52 : index
      %255 = memref.load %arg3[%c52] : memref<98xf32, #tpu.memory_space<smem>>
      %256 = vector.extract_strided_slice %28 {offsets = [0, 3], sizes = [1, 256], strides = [1, 1]} : vector<1x358xf32> to vector<1x256xf32>
      %257 = vector.broadcast %255 : f32 to vector<1x256xf32>
      %258 = arith.mulf %257, %256 : vector<1x256xf32>
      %259 = arith.addf %249, %258 : vector<1x256xf32>
      %c10 = arith.constant 10 : index
      %260 = memref.load %arg3[%c10] : memref<98xf32, #tpu.memory_space<smem>>
      %261 = vector.extract_strided_slice %23 {offsets = [0, 19], sizes = [1, 256], strides = [1, 1]} : vector<1x358xf32> to vector<1x256xf32>
      %262 = vector.broadcast %260 : f32 to vector<1x256xf32>
      %263 = arith.mulf %262, %261 : vector<1x256xf32>
      %264 = arith.addf %254, %263 : vector<1x256xf32>
      %c59 = arith.constant 59 : index
      %265 = memref.load %arg3[%c59] : memref<98xf32, #tpu.memory_space<smem>>
      %266 = vector.extract_strided_slice %28 {offsets = [0, 19], sizes = [1, 256], strides = [1, 1]} : vector<1x358xf32> to vector<1x256xf32>
      %267 = vector.broadcast %265 : f32 to vector<1x256xf32>
      %268 = arith.mulf %267, %266 : vector<1x256xf32>
      %269 = arith.addf %259, %268 : vector<1x256xf32>
      %c17 = arith.constant 17 : index
      %270 = memref.load %arg3[%c17] : memref<98xf32, #tpu.memory_space<smem>>
      %271 = vector.extract_strided_slice %23 {offsets = [0, 35], sizes = [1, 256], strides = [1, 1]} : vector<1x358xf32> to vector<1x256xf32>
      %272 = vector.broadcast %270 : f32 to vector<1x256xf32>
      %273 = arith.mulf %272, %271 : vector<1x256xf32>
      %274 = arith.addf %264, %273 : vector<1x256xf32>
      %c66 = arith.constant 66 : index
      %275 = memref.load %arg3[%c66] : memref<98xf32, #tpu.memory_space<smem>>
      %276 = vector.extract_strided_slice %28 {offsets = [0, 35], sizes = [1, 256], strides = [1, 1]} : vector<1x358xf32> to vector<1x256xf32>
      %277 = vector.broadcast %275 : f32 to vector<1x256xf32>
      %278 = arith.mulf %277, %276 : vector<1x256xf32>
      %279 = arith.addf %269, %278 : vector<1x256xf32>
      %c24 = arith.constant 24 : index
      %280 = memref.load %arg3[%c24] : memref<98xf32, #tpu.memory_space<smem>>
      %281 = vector.extract_strided_slice %23 {offsets = [0, 51], sizes = [1, 256], strides = [1, 1]} : vector<1x358xf32> to vector<1x256xf32>
      %282 = vector.broadcast %280 : f32 to vector<1x256xf32>
      %283 = arith.mulf %282, %281 : vector<1x256xf32>
      %284 = arith.addf %274, %283 : vector<1x256xf32>
      %c73 = arith.constant 73 : index
      %285 = memref.load %arg3[%c73] : memref<98xf32, #tpu.memory_space<smem>>
      %286 = vector.extract_strided_slice %28 {offsets = [0, 51], sizes = [1, 256], strides = [1, 1]} : vector<1x358xf32> to vector<1x256xf32>
      %287 = vector.broadcast %285 : f32 to vector<1x256xf32>
      %288 = arith.mulf %287, %286 : vector<1x256xf32>
      %289 = arith.addf %279, %288 : vector<1x256xf32>
      %c31 = arith.constant 31 : index
      %290 = memref.load %arg3[%c31] : memref<98xf32, #tpu.memory_space<smem>>
      %291 = vector.extract_strided_slice %23 {offsets = [0, 67], sizes = [1, 256], strides = [1, 1]} : vector<1x358xf32> to vector<1x256xf32>
      %292 = vector.broadcast %290 : f32 to vector<1x256xf32>
      %293 = arith.mulf %292, %291 : vector<1x256xf32>
      %294 = arith.addf %284, %293 : vector<1x256xf32>
      %c80 = arith.constant 80 : index
      %295 = memref.load %arg3[%c80] : memref<98xf32, #tpu.memory_space<smem>>
      %296 = vector.extract_strided_slice %28 {offsets = [0, 67], sizes = [1, 256], strides = [1, 1]} : vector<1x358xf32> to vector<1x256xf32>
      %297 = vector.broadcast %295 : f32 to vector<1x256xf32>
      %298 = arith.mulf %297, %296 : vector<1x256xf32>
      %299 = arith.addf %289, %298 : vector<1x256xf32>
      %c38 = arith.constant 38 : index
      %300 = memref.load %arg3[%c38] : memref<98xf32, #tpu.memory_space<smem>>
      %301 = vector.extract_strided_slice %23 {offsets = [0, 83], sizes = [1, 256], strides = [1, 1]} : vector<1x358xf32> to vector<1x256xf32>
      %302 = vector.broadcast %300 : f32 to vector<1x256xf32>
      %303 = arith.mulf %302, %301 : vector<1x256xf32>
      %304 = arith.addf %294, %303 : vector<1x256xf32>
      %c87 = arith.constant 87 : index
      %305 = memref.load %arg3[%c87] : memref<98xf32, #tpu.memory_space<smem>>
      %306 = vector.extract_strided_slice %28 {offsets = [0, 83], sizes = [1, 256], strides = [1, 1]} : vector<1x358xf32> to vector<1x256xf32>
      %307 = vector.broadcast %305 : f32 to vector<1x256xf32>
      %308 = arith.mulf %307, %306 : vector<1x256xf32>
      %309 = arith.addf %299, %308 : vector<1x256xf32>
      %c45 = arith.constant 45 : index
      %310 = memref.load %arg3[%c45] : memref<98xf32, #tpu.memory_space<smem>>
      %311 = vector.extract_strided_slice %23 {offsets = [0, 99], sizes = [1, 256], strides = [1, 1]} : vector<1x358xf32> to vector<1x256xf32>
      %312 = vector.broadcast %310 : f32 to vector<1x256xf32>
      %313 = arith.mulf %312, %311 : vector<1x256xf32>
      %314 = arith.addf %304, %313 : vector<1x256xf32>
      %c94 = arith.constant 94 : index
      %315 = memref.load %arg3[%c94] : memref<98xf32, #tpu.memory_space<smem>>
      %316 = vector.extract_strided_slice %28 {offsets = [0, 99], sizes = [1, 256], strides = [1, 1]} : vector<1x358xf32> to vector<1x256xf32>
      %317 = vector.broadcast %315 : f32 to vector<1x256xf32>
      %318 = arith.mulf %317, %316 : vector<1x256xf32>
      %319 = arith.addf %309, %318 : vector<1x256xf32>
      %c4 = arith.constant 4 : index
      %c0_30 = arith.constant 0 : index
      %320 = vector.load %arg4[%c4, %c0_30] : memref<7x358xf32, #tpu.memory_space<vmem>>, vector<1x358xf32>
      %321 = arith.mulf %23, %320 : vector<1x358xf32>
      %322 = arith.mulf %28, %320 : vector<1x358xf32>
      %c4_31 = arith.constant 4 : index
      %323 = memref.load %arg3[%c4_31] : memref<98xf32, #tpu.memory_space<smem>>
      %324 = vector.extract_strided_slice %321 {offsets = [0, 4], sizes = [1, 256], strides = [1, 1]} : vector<1x358xf32> to vector<1x256xf32>
      %325 = vector.broadcast %323 : f32 to vector<1x256xf32>
      %326 = arith.mulf %325, %324 : vector<1x256xf32>
      %327 = arith.addf %314, %326 : vector<1x256xf32>
      %c53 = arith.constant 53 : index
      %328 = memref.load %arg3[%c53] : memref<98xf32, #tpu.memory_space<smem>>
      %329 = vector.extract_strided_slice %322 {offsets = [0, 4], sizes = [1, 256], strides = [1, 1]} : vector<1x358xf32> to vector<1x256xf32>
      %330 = vector.broadcast %328 : f32 to vector<1x256xf32>
      %331 = arith.mulf %330, %329 : vector<1x256xf32>
      %332 = arith.addf %319, %331 : vector<1x256xf32>
      %c11 = arith.constant 11 : index
      %333 = memref.load %arg3[%c11] : memref<98xf32, #tpu.memory_space<smem>>
      %334 = vector.extract_strided_slice %321 {offsets = [0, 20], sizes = [1, 256], strides = [1, 1]} : vector<1x358xf32> to vector<1x256xf32>
      %335 = vector.broadcast %333 : f32 to vector<1x256xf32>
      %336 = arith.mulf %335, %334 : vector<1x256xf32>
      %337 = arith.addf %327, %336 : vector<1x256xf32>
      %c60 = arith.constant 60 : index
      %338 = memref.load %arg3[%c60] : memref<98xf32, #tpu.memory_space<smem>>
      %339 = vector.extract_strided_slice %322 {offsets = [0, 20], sizes = [1, 256], strides = [1, 1]} : vector<1x358xf32> to vector<1x256xf32>
      %340 = vector.broadcast %338 : f32 to vector<1x256xf32>
      %341 = arith.mulf %340, %339 : vector<1x256xf32>
      %342 = arith.addf %332, %341 : vector<1x256xf32>
      %c18 = arith.constant 18 : index
      %343 = memref.load %arg3[%c18] : memref<98xf32, #tpu.memory_space<smem>>
      %344 = vector.extract_strided_slice %321 {offsets = [0, 36], sizes = [1, 256], strides = [1, 1]} : vector<1x358xf32> to vector<1x256xf32>
      %345 = vector.broadcast %343 : f32 to vector<1x256xf32>
      %346 = arith.mulf %345, %344 : vector<1x256xf32>
      %347 = arith.addf %337, %346 : vector<1x256xf32>
      %c67 = arith.constant 67 : index
      %348 = memref.load %arg3[%c67] : memref<98xf32, #tpu.memory_space<smem>>
      %349 = vector.extract_strided_slice %322 {offsets = [0, 36], sizes = [1, 256], strides = [1, 1]} : vector<1x358xf32> to vector<1x256xf32>
      %350 = vector.broadcast %348 : f32 to vector<1x256xf32>
      %351 = arith.mulf %350, %349 : vector<1x256xf32>
      %352 = arith.addf %342, %351 : vector<1x256xf32>
      %c25 = arith.constant 25 : index
      %353 = memref.load %arg3[%c25] : memref<98xf32, #tpu.memory_space<smem>>
      %354 = vector.extract_strided_slice %321 {offsets = [0, 52], sizes = [1, 256], strides = [1, 1]} : vector<1x358xf32> to vector<1x256xf32>
      %355 = vector.broadcast %353 : f32 to vector<1x256xf32>
      %356 = arith.mulf %355, %354 : vector<1x256xf32>
      %357 = arith.addf %347, %356 : vector<1x256xf32>
      %c74 = arith.constant 74 : index
      %358 = memref.load %arg3[%c74] : memref<98xf32, #tpu.memory_space<smem>>
      %359 = vector.extract_strided_slice %322 {offsets = [0, 52], sizes = [1, 256], strides = [1, 1]} : vector<1x358xf32> to vector<1x256xf32>
      %360 = vector.broadcast %358 : f32 to vector<1x256xf32>
      %361 = arith.mulf %360, %359 : vector<1x256xf32>
      %362 = arith.addf %352, %361 : vector<1x256xf32>
      %c32 = arith.constant 32 : index
      %363 = memref.load %arg3[%c32] : memref<98xf32, #tpu.memory_space<smem>>
      %364 = vector.extract_strided_slice %321 {offsets = [0, 68], sizes = [1, 256], strides = [1, 1]} : vector<1x358xf32> to vector<1x256xf32>
      %365 = vector.broadcast %363 : f32 to vector<1x256xf32>
      %366 = arith.mulf %365, %364 : vector<1x256xf32>
      %367 = arith.addf %357, %366 : vector<1x256xf32>
      %c81 = arith.constant 81 : index
      %368 = memref.load %arg3[%c81] : memref<98xf32, #tpu.memory_space<smem>>
      %369 = vector.extract_strided_slice %322 {offsets = [0, 68], sizes = [1, 256], strides = [1, 1]} : vector<1x358xf32> to vector<1x256xf32>
      %370 = vector.broadcast %368 : f32 to vector<1x256xf32>
      %371 = arith.mulf %370, %369 : vector<1x256xf32>
      %372 = arith.addf %362, %371 : vector<1x256xf32>
      %c39 = arith.constant 39 : index
      %373 = memref.load %arg3[%c39] : memref<98xf32, #tpu.memory_space<smem>>
      %374 = vector.extract_strided_slice %321 {offsets = [0, 84], sizes = [1, 256], strides = [1, 1]} : vector<1x358xf32> to vector<1x256xf32>
      %375 = vector.broadcast %373 : f32 to vector<1x256xf32>
      %376 = arith.mulf %375, %374 : vector<1x256xf32>
      %377 = arith.addf %367, %376 : vector<1x256xf32>
      %c88 = arith.constant 88 : index
      %378 = memref.load %arg3[%c88] : memref<98xf32, #tpu.memory_space<smem>>
      %379 = vector.extract_strided_slice %322 {offsets = [0, 84], sizes = [1, 256], strides = [1, 1]} : vector<1x358xf32> to vector<1x256xf32>
      %380 = vector.broadcast %378 : f32 to vector<1x256xf32>
      %381 = arith.mulf %380, %379 : vector<1x256xf32>
      %382 = arith.addf %372, %381 : vector<1x256xf32>
      %c46 = arith.constant 46 : index
      %383 = memref.load %arg3[%c46] : memref<98xf32, #tpu.memory_space<smem>>
      %384 = vector.extract_strided_slice %321 {offsets = [0, 100], sizes = [1, 256], strides = [1, 1]} : vector<1x358xf32> to vector<1x256xf32>
      %385 = vector.broadcast %383 : f32 to vector<1x256xf32>
      %386 = arith.mulf %385, %384 : vector<1x256xf32>
      %387 = arith.addf %377, %386 : vector<1x256xf32>
      %c95 = arith.constant 95 : index
      %388 = memref.load %arg3[%c95] : memref<98xf32, #tpu.memory_space<smem>>
      %389 = vector.extract_strided_slice %322 {offsets = [0, 100], sizes = [1, 256], strides = [1, 1]} : vector<1x358xf32> to vector<1x256xf32>
      %390 = vector.broadcast %388 : f32 to vector<1x256xf32>
      %391 = arith.mulf %390, %389 : vector<1x256xf32>
      %392 = arith.addf %382, %391 : vector<1x256xf32>
      %c5 = arith.constant 5 : index
      %c0_32 = arith.constant 0 : index
      %393 = vector.load %arg4[%c5, %c0_32] : memref<7x358xf32, #tpu.memory_space<vmem>>, vector<1x358xf32>
      %394 = arith.mulf %23, %393 : vector<1x358xf32>
      %395 = arith.mulf %28, %393 : vector<1x358xf32>
      %c5_33 = arith.constant 5 : index
      %396 = memref.load %arg3[%c5_33] : memref<98xf32, #tpu.memory_space<smem>>
      %397 = vector.extract_strided_slice %394 {offsets = [0, 5], sizes = [1, 256], strides = [1, 1]} : vector<1x358xf32> to vector<1x256xf32>
      %398 = vector.broadcast %396 : f32 to vector<1x256xf32>
      %399 = arith.mulf %398, %397 : vector<1x256xf32>
      %400 = arith.addf %387, %399 : vector<1x256xf32>
      %c54 = arith.constant 54 : index
      %401 = memref.load %arg3[%c54] : memref<98xf32, #tpu.memory_space<smem>>
      %402 = vector.extract_strided_slice %395 {offsets = [0, 5], sizes = [1, 256], strides = [1, 1]} : vector<1x358xf32> to vector<1x256xf32>
      %403 = vector.broadcast %401 : f32 to vector<1x256xf32>
      %404 = arith.mulf %403, %402 : vector<1x256xf32>
      %405 = arith.addf %392, %404 : vector<1x256xf32>
      %c12 = arith.constant 12 : index
      %406 = memref.load %arg3[%c12] : memref<98xf32, #tpu.memory_space<smem>>
      %407 = vector.extract_strided_slice %394 {offsets = [0, 21], sizes = [1, 256], strides = [1, 1]} : vector<1x358xf32> to vector<1x256xf32>
      %408 = vector.broadcast %406 : f32 to vector<1x256xf32>
      %409 = arith.mulf %408, %407 : vector<1x256xf32>
      %410 = arith.addf %400, %409 : vector<1x256xf32>
      %c61 = arith.constant 61 : index
      %411 = memref.load %arg3[%c61] : memref<98xf32, #tpu.memory_space<smem>>
      %412 = vector.extract_strided_slice %395 {offsets = [0, 21], sizes = [1, 256], strides = [1, 1]} : vector<1x358xf32> to vector<1x256xf32>
      %413 = vector.broadcast %411 : f32 to vector<1x256xf32>
      %414 = arith.mulf %413, %412 : vector<1x256xf32>
      %415 = arith.addf %405, %414 : vector<1x256xf32>
      %c19 = arith.constant 19 : index
      %416 = memref.load %arg3[%c19] : memref<98xf32, #tpu.memory_space<smem>>
      %417 = vector.extract_strided_slice %394 {offsets = [0, 37], sizes = [1, 256], strides = [1, 1]} : vector<1x358xf32> to vector<1x256xf32>
      %418 = vector.broadcast %416 : f32 to vector<1x256xf32>
      %419 = arith.mulf %418, %417 : vector<1x256xf32>
      %420 = arith.addf %410, %419 : vector<1x256xf32>
      %c68 = arith.constant 68 : index
      %421 = memref.load %arg3[%c68] : memref<98xf32, #tpu.memory_space<smem>>
      %422 = vector.extract_strided_slice %395 {offsets = [0, 37], sizes = [1, 256], strides = [1, 1]} : vector<1x358xf32> to vector<1x256xf32>
      %423 = vector.broadcast %421 : f32 to vector<1x256xf32>
      %424 = arith.mulf %423, %422 : vector<1x256xf32>
      %425 = arith.addf %415, %424 : vector<1x256xf32>
      %c26 = arith.constant 26 : index
      %426 = memref.load %arg3[%c26] : memref<98xf32, #tpu.memory_space<smem>>
      %427 = vector.extract_strided_slice %394 {offsets = [0, 53], sizes = [1, 256], strides = [1, 1]} : vector<1x358xf32> to vector<1x256xf32>
      %428 = vector.broadcast %426 : f32 to vector<1x256xf32>
      %429 = arith.mulf %428, %427 : vector<1x256xf32>
      %430 = arith.addf %420, %429 : vector<1x256xf32>
      %c75 = arith.constant 75 : index
      %431 = memref.load %arg3[%c75] : memref<98xf32, #tpu.memory_space<smem>>
      %432 = vector.extract_strided_slice %395 {offsets = [0, 53], sizes = [1, 256], strides = [1, 1]} : vector<1x358xf32> to vector<1x256xf32>
      %433 = vector.broadcast %431 : f32 to vector<1x256xf32>
      %434 = arith.mulf %433, %432 : vector<1x256xf32>
      %435 = arith.addf %425, %434 : vector<1x256xf32>
      %c33 = arith.constant 33 : index
      %436 = memref.load %arg3[%c33] : memref<98xf32, #tpu.memory_space<smem>>
      %437 = vector.extract_strided_slice %394 {offsets = [0, 69], sizes = [1, 256], strides = [1, 1]} : vector<1x358xf32> to vector<1x256xf32>
      %438 = vector.broadcast %436 : f32 to vector<1x256xf32>
      %439 = arith.mulf %438, %437 : vector<1x256xf32>
      %440 = arith.addf %430, %439 : vector<1x256xf32>
      %c82 = arith.constant 82 : index
      %441 = memref.load %arg3[%c82] : memref<98xf32, #tpu.memory_space<smem>>
      %442 = vector.extract_strided_slice %395 {offsets = [0, 69], sizes = [1, 256], strides = [1, 1]} : vector<1x358xf32> to vector<1x256xf32>
      %443 = vector.broadcast %441 : f32 to vector<1x256xf32>
      %444 = arith.mulf %443, %442 : vector<1x256xf32>
      %445 = arith.addf %435, %444 : vector<1x256xf32>
      %c40 = arith.constant 40 : index
      %446 = memref.load %arg3[%c40] : memref<98xf32, #tpu.memory_space<smem>>
      %447 = vector.extract_strided_slice %394 {offsets = [0, 85], sizes = [1, 256], strides = [1, 1]} : vector<1x358xf32> to vector<1x256xf32>
      %448 = vector.broadcast %446 : f32 to vector<1x256xf32>
      %449 = arith.mulf %448, %447 : vector<1x256xf32>
      %450 = arith.addf %440, %449 : vector<1x256xf32>
      %c89 = arith.constant 89 : index
      %451 = memref.load %arg3[%c89] : memref<98xf32, #tpu.memory_space<smem>>
      %452 = vector.extract_strided_slice %395 {offsets = [0, 85], sizes = [1, 256], strides = [1, 1]} : vector<1x358xf32> to vector<1x256xf32>
      %453 = vector.broadcast %451 : f32 to vector<1x256xf32>
      %454 = arith.mulf %453, %452 : vector<1x256xf32>
      %455 = arith.addf %445, %454 : vector<1x256xf32>
      %c47 = arith.constant 47 : index
      %456 = memref.load %arg3[%c47] : memref<98xf32, #tpu.memory_space<smem>>
      %457 = vector.extract_strided_slice %394 {offsets = [0, 101], sizes = [1, 256], strides = [1, 1]} : vector<1x358xf32> to vector<1x256xf32>
      %458 = vector.broadcast %456 : f32 to vector<1x256xf32>
      %459 = arith.mulf %458, %457 : vector<1x256xf32>
      %460 = arith.addf %450, %459 : vector<1x256xf32>
      %c96 = arith.constant 96 : index
      %461 = memref.load %arg3[%c96] : memref<98xf32, #tpu.memory_space<smem>>
      %462 = vector.extract_strided_slice %395 {offsets = [0, 101], sizes = [1, 256], strides = [1, 1]} : vector<1x358xf32> to vector<1x256xf32>
      %463 = vector.broadcast %461 : f32 to vector<1x256xf32>
      %464 = arith.mulf %463, %462 : vector<1x256xf32>
      %465 = arith.addf %455, %464 : vector<1x256xf32>
      %c6 = arith.constant 6 : index
      %c0_34 = arith.constant 0 : index
      %466 = vector.load %arg4[%c6, %c0_34] : memref<7x358xf32, #tpu.memory_space<vmem>>, vector<1x358xf32>
      %467 = arith.mulf %23, %466 : vector<1x358xf32>
      %468 = arith.mulf %28, %466 : vector<1x358xf32>
      %c6_35 = arith.constant 6 : index
      %469 = memref.load %arg3[%c6_35] : memref<98xf32, #tpu.memory_space<smem>>
      %470 = vector.extract_strided_slice %467 {offsets = [0, 6], sizes = [1, 256], strides = [1, 1]} : vector<1x358xf32> to vector<1x256xf32>
      %471 = vector.broadcast %469 : f32 to vector<1x256xf32>
      %472 = arith.mulf %471, %470 : vector<1x256xf32>
      %473 = arith.addf %460, %472 : vector<1x256xf32>
      %c55 = arith.constant 55 : index
      %474 = memref.load %arg3[%c55] : memref<98xf32, #tpu.memory_space<smem>>
      %475 = vector.extract_strided_slice %468 {offsets = [0, 6], sizes = [1, 256], strides = [1, 1]} : vector<1x358xf32> to vector<1x256xf32>
      %476 = vector.broadcast %474 : f32 to vector<1x256xf32>
      %477 = arith.mulf %476, %475 : vector<1x256xf32>
      %478 = arith.addf %465, %477 : vector<1x256xf32>
      %c13 = arith.constant 13 : index
      %479 = memref.load %arg3[%c13] : memref<98xf32, #tpu.memory_space<smem>>
      %480 = vector.extract_strided_slice %467 {offsets = [0, 22], sizes = [1, 256], strides = [1, 1]} : vector<1x358xf32> to vector<1x256xf32>
      %481 = vector.broadcast %479 : f32 to vector<1x256xf32>
      %482 = arith.mulf %481, %480 : vector<1x256xf32>
      %483 = arith.addf %473, %482 : vector<1x256xf32>
      %c62 = arith.constant 62 : index
      %484 = memref.load %arg3[%c62] : memref<98xf32, #tpu.memory_space<smem>>
      %485 = vector.extract_strided_slice %468 {offsets = [0, 22], sizes = [1, 256], strides = [1, 1]} : vector<1x358xf32> to vector<1x256xf32>
      %486 = vector.broadcast %484 : f32 to vector<1x256xf32>
      %487 = arith.mulf %486, %485 : vector<1x256xf32>
      %488 = arith.addf %478, %487 : vector<1x256xf32>
      %c20 = arith.constant 20 : index
      %489 = memref.load %arg3[%c20] : memref<98xf32, #tpu.memory_space<smem>>
      %490 = vector.extract_strided_slice %467 {offsets = [0, 38], sizes = [1, 256], strides = [1, 1]} : vector<1x358xf32> to vector<1x256xf32>
      %491 = vector.broadcast %489 : f32 to vector<1x256xf32>
      %492 = arith.mulf %491, %490 : vector<1x256xf32>
      %493 = arith.addf %483, %492 : vector<1x256xf32>
      %c69 = arith.constant 69 : index
      %494 = memref.load %arg3[%c69] : memref<98xf32, #tpu.memory_space<smem>>
      %495 = vector.extract_strided_slice %468 {offsets = [0, 38], sizes = [1, 256], strides = [1, 1]} : vector<1x358xf32> to vector<1x256xf32>
      %496 = vector.broadcast %494 : f32 to vector<1x256xf32>
      %497 = arith.mulf %496, %495 : vector<1x256xf32>
      %498 = arith.addf %488, %497 : vector<1x256xf32>
      %c27 = arith.constant 27 : index
      %499 = memref.load %arg3[%c27] : memref<98xf32, #tpu.memory_space<smem>>
      %500 = vector.extract_strided_slice %467 {offsets = [0, 54], sizes = [1, 256], strides = [1, 1]} : vector<1x358xf32> to vector<1x256xf32>
      %501 = vector.broadcast %499 : f32 to vector<1x256xf32>
      %502 = arith.mulf %501, %500 : vector<1x256xf32>
      %503 = arith.addf %493, %502 : vector<1x256xf32>
      %c76 = arith.constant 76 : index
      %504 = memref.load %arg3[%c76] : memref<98xf32, #tpu.memory_space<smem>>
      %505 = vector.extract_strided_slice %468 {offsets = [0, 54], sizes = [1, 256], strides = [1, 1]} : vector<1x358xf32> to vector<1x256xf32>
      %506 = vector.broadcast %504 : f32 to vector<1x256xf32>
      %507 = arith.mulf %506, %505 : vector<1x256xf32>
      %508 = arith.addf %498, %507 : vector<1x256xf32>
      %c34 = arith.constant 34 : index
      %509 = memref.load %arg3[%c34] : memref<98xf32, #tpu.memory_space<smem>>
      %510 = vector.extract_strided_slice %467 {offsets = [0, 70], sizes = [1, 256], strides = [1, 1]} : vector<1x358xf32> to vector<1x256xf32>
      %511 = vector.broadcast %509 : f32 to vector<1x256xf32>
      %512 = arith.mulf %511, %510 : vector<1x256xf32>
      %513 = arith.addf %503, %512 : vector<1x256xf32>
      %c83 = arith.constant 83 : index
      %514 = memref.load %arg3[%c83] : memref<98xf32, #tpu.memory_space<smem>>
      %515 = vector.extract_strided_slice %468 {offsets = [0, 70], sizes = [1, 256], strides = [1, 1]} : vector<1x358xf32> to vector<1x256xf32>
      %516 = vector.broadcast %514 : f32 to vector<1x256xf32>
      %517 = arith.mulf %516, %515 : vector<1x256xf32>
      %518 = arith.addf %508, %517 : vector<1x256xf32>
      %c41 = arith.constant 41 : index
      %519 = memref.load %arg3[%c41] : memref<98xf32, #tpu.memory_space<smem>>
      %520 = vector.extract_strided_slice %467 {offsets = [0, 86], sizes = [1, 256], strides = [1, 1]} : vector<1x358xf32> to vector<1x256xf32>
      %521 = vector.broadcast %519 : f32 to vector<1x256xf32>
      %522 = arith.mulf %521, %520 : vector<1x256xf32>
      %523 = arith.addf %513, %522 : vector<1x256xf32>
      %c90 = arith.constant 90 : index
      %524 = memref.load %arg3[%c90] : memref<98xf32, #tpu.memory_space<smem>>
      %525 = vector.extract_strided_slice %468 {offsets = [0, 86], sizes = [1, 256], strides = [1, 1]} : vector<1x358xf32> to vector<1x256xf32>
      %526 = vector.broadcast %524 : f32 to vector<1x256xf32>
      %527 = arith.mulf %526, %525 : vector<1x256xf32>
      %528 = arith.addf %518, %527 : vector<1x256xf32>
      %c48 = arith.constant 48 : index
      %529 = memref.load %arg3[%c48] : memref<98xf32, #tpu.memory_space<smem>>
      %530 = vector.extract_strided_slice %467 {offsets = [0, 102], sizes = [1, 256], strides = [1, 1]} : vector<1x358xf32> to vector<1x256xf32>
      %531 = vector.broadcast %529 : f32 to vector<1x256xf32>
      %532 = arith.mulf %531, %530 : vector<1x256xf32>
      %533 = arith.addf %523, %532 : vector<1x256xf32>
      %c97 = arith.constant 97 : index
      %534 = memref.load %arg3[%c97] : memref<98xf32, #tpu.memory_space<smem>>
      %535 = vector.extract_strided_slice %468 {offsets = [0, 102], sizes = [1, 256], strides = [1, 1]} : vector<1x358xf32> to vector<1x256xf32>
      %536 = vector.broadcast %534 : f32 to vector<1x256xf32>
      %537 = arith.mulf %536, %535 : vector<1x256xf32>
      %538 = arith.addf %528, %537 : vector<1x256xf32>
      %539 = arith.addf %533, %538 : vector<1x256xf32>
      %540 = arith.negf %539 : vector<1x256xf32>
      %541 = math.exp %540 : vector<1x256xf32>
      %cst_36 = arith.constant 1.000000e+00 : f32
      %542 = vector.broadcast %cst_36 : f32 to vector<1x256xf32>
      %543 = arith.addf %542, %541 : vector<1x256xf32>
      %544 = arith.divf %542, %543 : vector<1x256xf32>
      %c0_37 = arith.constant 0 : index
      %c0_38 = arith.constant 0 : index
      %c0_39 = arith.constant 0 : index
      %545 = vector.load %arg5[%c0_37, %c0_38, %c0_39] : memref<1x1x256xf32, #tpu.memory_space<vmem>>, vector<1x1x256xf32>
      %546 = vector.shape_cast %545 : vector<1x1x256xf32> to vector<1x256xf32>
      %547 = vector.shape_cast %544 : vector<1x256xf32> to vector<1x1x256xf32>
      tpu.vector_store %arg5[%c0_37, %c0_38, %c0_39], %547 {strides = array<i32>} : memref<1x1x256xf32, #tpu.memory_space<vmem>>, vector<1x1x256xf32>,
    } else {
    }
    return
  }
  func.func @transform_0(%arg0: i32, %arg1: i32) -> (i32, i32, i32) {
    %c0_i32 = arith.constant 0 : i32
    %c0_i32_0 = arith.constant 0 : i32
    return %arg0, %arg1, %c0_i32 : i32, i32, i32
  }
  func.func @transform_1(%arg0: i32, %arg1: i32) -> i32 {
    %c0_i32 = arith.constant 0 : i32
    %c0_i32_0 = arith.constant 0 : i32
    return %c0_i32 : i32
  }
  func.func @transform_2(%arg0: i32, %arg1: i32) -> (i32, i32) {
    %c0_i32 = arith.constant 0 : i32
    %c0_i32_0 = arith.constant 0 : i32
    %c0_i32_1 = arith.constant 0 : i32
    return %c0_i32, %c0_i32_0 : i32, i32
  }
  func.func @transform_3(%arg0: i32, %arg1: i32) -> (i32, i32, i32) {
    %c0_i32 = arith.constant 0 : i32
    %c0_i32_0 = arith.constant 0 : i32
    %c0_i32_1 = arith.constant 0 : i32
    return %arg0, %c0_i32, %c0_i32_0 : i32, i32, i32
  }
}

</mosaic_0001>

<bundles_post_ra>
// kernel: tpu_custom_call.1
= control target key start
LH: loop header
LB: loop body
LE: loop exit
PB: predicated region body
PF: predicated region fallthrough
CT: control target
= control target key end

     0   :  { %s5039_s0 = inlined_call_operand.hbm [shape: f32[2,4,256], index: 0, kind: input, shape index: {}]   ;;  %s5040_s1 = inlined_call_operand.vmem [shape: f32[98], index: 1, kind: input, shape index: {}]   ;;  %s5041_s2 = inlined_call_operand.hbm [shape: f32[7,358], index: 2, kind: input, shape index: {}]   ;;  %s5042_s3 = inlined_call_operand.hbm [shape: f32[2,1,256], index: 3, kind: output, shape index: {}]  }
   0x1   :  { %5107 = sst [smem:[#allocation167_spill]] %s5039_s0 }
   0x2   :  { %5108 = sst [smem:[#allocation168_spill]] %s5040_s1 }
   0x3   :  { %8 = vsyncpa [#allocation5], 0 }
   0x4   :  { %10 = vsyncpa [#allocation5 + $0x1], 0 }
   0x5   :  { %11 = vsyncpa [#allocation7], 0 }
   0x6   :  { %12 = vsyncpa [#allocation10], 0 }
   0x7   :  { %13 = vsyncpa [#allocation6], 0 }
   0x8   :  { %15 = vsyncpa [#allocation6 + $0x1], 0  ;;  %s3143_s12 = smov 0   ;;  %s3145_s13 = smov 0  }
   0x9   :  { %s3147_s14 = smov 0   ;;  %s3149_s15 = smov 0  }
   0xa   :  { %s3151_s16 = smov 0   ;;  %s3153_s17 = smov 0  }
   0xb LB: > { %s2638_s18 = sadd.s32 4294967295, %s3065_s17   ;;  %s2639_s19 = sadd.s32 4294967294, %s3065_s17   ;;  %s3065_s17 = sphi %s3153_s17, %s21_s17   ;;  %s3061_s16 = sphi %s3151_s16, %s5436_s16   ;;  %s3057_s15 = sphi %s3149_s15, %s5435_s15   ;;  %s3053_s14 = sphi %s3147_s14, %s5434_s14   ;;  %s3049_s13 = sphi %s3145_s13, %s5433_s13   ;;  %s3045_s12 = sphi %s3143_s12, %s5432_s12  }
   0xc   : > { %p55_p0 = scmp.ne.s32.totalorder %s3049_s13, %s3045_s12  ;;  %p3177_p1 = scmp.eq.s32.totalorder %s2638_s18, 0 }
   0xd   : > { %p3181_p2 = scmp.eq.s32.totalorder %s2638_s18, 1  ;;  %p127_p3 = scmp.eq.s32.totalorder %s2639_s19, 1 }
   0xe   : > { %s5109_s20 = scalar_select %p3177_p1, 1, 0 }
   0xf   : > { %p3187_p4 = por %p3177_p1, %p55_p0  ;;  %p2640_p5 = scmp.ge.s32.totalorder %s3065_s17, 1 }
  0x10   : > { %p3192_p6 = por %p127_p3, %p55_p0  ;;  %p134_p7 = scmp.lt.s32.totalorder %s3065_s17, 3 }
  0x11   : > { %s5111_s22 = scalar_select %p3187_p4, 1, 0 }
  0x12   : > { %s5112_s23 = scalar_select %p3192_p6, 1, 0 }
  0x13   : > { %s5113_s1 = sld [smem:[#allocation168_spill]]  ;;  %p3200_p8 = pnand %p2640_p5, %p134_p7 }
  0x14   : > { %s3067_s28 = smov [#allocation9]  }
  0x15   : > { %p2770_p10 = pneg %p3200_p8  ;;  %s158_s29 = sshll.u32 %s3067_s28, 4  ;;  %s3213_s29 = int_to_ptr.vmem [resolvable:$true] %s158_s29 }
  0x17   : > { %p3209_p11 = pnand %p2770_p10, %p3177_p1 }
  0x19   : > { %s147_s26 = sshll.u32 %s5113_s1, 4  ;;  %p2904_p13 = pneg %p3209_p11  ;;  %s148_s26 = int_to_ptr.vmem [resolvable:$true] %s147_s26 }
  0x1a   : > { %s2902_s4 = scalar_lea.vmem %s148_s26, 16  ;;  %p2910_p5 = scmp.lt.s32.totalorder %s148_s26, %s148_s26 }
  0x1b   : > { %p2903_p12 = scmp.ne.s32.totalorder %s148_s26, %s2902_s4  ;;  %p2911_p7 = scmp.lt.s32.totalorder %s2902_s4, %s2902_s4 }
  0x1d   : > { %p2905_p0 = pnand %p2904_p13, %p2903_p12  ;;  %p2912_p9 = por %p2911_p7, %p2910_p5 }
  0x1f   : > { %p2906_p3 = pneg %p2905_p0 }
  0x21   : > { %p2913_p6 = pnand %p2912_p9, %p2906_p3 }
  0x23   : > { %2916 = shalt.err (!%p2913_p6)
}
  0x24   : > { %s3068_s5 = smov [#allocation8]   ;;  %s2917_s8 = scalar_lea.hbm %s5041_s2, 384 }
  0x25   : > { %2773 = dma.vmem_to_smem (!%p3209_p11), %s148_s26, 16, %s3068_s5, [#allocation7]  }
  0x26   : > { %p2918_p10 = scmp.ne.s32.totalorder %s5041_s2, %s2917_s8  ;;  %p2924_p6 = scmp.lt.u32.totalorder %s2917_s8, %s5041_s2 }
  0x28   : > { %p2920_p12 = pnand %p2918_p10, %p2904_p13 }
  0x2a   : > { %p2921_p0 = pneg %p2920_p12 }
  0x2c   : > { %p2926_p9 = pnand %p2924_p6, %p2921_p0 }
  0x2e   : > { %2929 = shalt.err (!%p2926_p9)
}
  0x2f   : > { %s2930_s19 = scalar_lea.vmem %s3213_s29, 384  ;;  %p2938_p1 = scmp.lt.s32.totalorder %s3213_s29, %s3213_s29 }
  0x30   : > { %p2931_p3 = scmp.ne.s32.totalorder %s3213_s29, %s2930_s19  ;;  %p2939_p10 = scmp.lt.s32.totalorder %s2930_s19, %s2930_s19 }
  0x32   : > { %p2933_p5 = pnand %p2931_p3, %p2904_p13  ;;  %p2940_p12 = por %p2939_p10, %p2938_p1 }
  0x34   : > { %p2934_p7 = pneg %p2933_p5 }
  0x36   : > { %p2941_p4 = pnand %p2940_p12, %p2934_p7 }
  0x38   : > { %2944 = shalt.err (!%p2941_p4)
}
  0x39   : > { %2776 = dma.hbm_to_vmem [thread:$0]  (!%p3209_p11), %s5041_s2, 384, %s3213_s29, [#allocation10]  }
  0x3a   : > { %s33_s26 = sadd.s32 1, %s3061_s16  ;;  %s42_s28 = sadd.s32 1, %s3053_s14 }
  0x3b   : > { %p35_p1 = scmp.ge.s32.totalorder %s33_s26, 2  ;;  %p49_p4 = scmp.ne.s32.totalorder %s3053_s14, %s3049_s13 }
  0x3c   : > { %p50_p13 = scmp.eq.s32.totalorder %s3065_s17, 0  ;;  %p2787_p0 = scmp.lt.s32.totalorder %s3065_s17, 2 }
  0x3d   : > { %s5438_s26 = smov (%p35_p1, %s33_s26), 0  ;;  %p3257_p9 = por %p3181_p2, %p49_p4 }
  0x3e   : > { %p51_p6 = por %p50_p13, %p49_p4  ;;  %s37_s4 = ssub.s32 %s3061_s16, %s5438_s26 }
  0x3f   : > { %s5116_s30 = scalar_select %p3257_p9, 1, 0 }
  0x40   : > { %s169_s5 = sand.u32 1, %s3053_s14   ;;  %p40_p3 = scmp.eq.s32.totalorder %s37_s4, 0 }
  0x41   : > { %s2644_s29 = sshll.u32 %s169_s5, 3  ;;  %s2756_s6 = sshll.u32 %s3061_s16, 7 }
  0x42   : > { %s3266_s7 = scalar_select %p40_p3, %s3053_s14, %s42_s28  }
  0x43   : > { %s5117_s0 = sld [smem:[#allocation167_spill]]  ;;  %s173_s21 = scalar_lea.vmem [#allocation4], %s2644_s29 }
  0x44   : > { %s183_s11 = sshll.u32 %s173_s21, 4  ;;  %p3275_p2 = pnand %p2787_p0, %p51_p6  ;;  %s3279_s11 = int_to_ptr.vmem [resolvable:$true] %s183_s11 }
  0x45   : > { %s170_s19 = scalar_lea.sflag [#allocation5], %s169_s5 }
  0x46   : > { %p2947_p5 = pneg %p3275_p2 }
  0x49   : > { %s3271_s10 = scalar_lea.hbm %s5117_s0, %s2756_s6  ;;  %s2950_s4 = scalar_lea.hbm %s5117_s0, 256 }
  0x4a   : > { %s2945_s24 = scalar_lea.hbm %s3271_s10, 128  ;;  %p2951_p12 = scmp.lt.u32.totalorder %s3271_s10, %s5117_s0 }
  0x4b   : > { %p2946_p11 = scmp.ne.s32.totalorder %s3271_s10, %s2945_s24  ;;  %p2952_p1 = scmp.lt.u32.totalorder %s2950_s4, %s2945_s24 }
  0x4c   : > { %p2954_p13 = scmp.lt.u32.totalorder %s2945_s24, %s3271_s10 }
  0x4d   : > { %p2948_p7 = pnand %p2947_p5, %p2946_p11  ;;  %p2953_p4 = por %p2952_p1, %p2951_p12 }
  0x4f   : > { %p2949_p10 = pneg %p2948_p7  ;;  %p2955_p0 = por %p2954_p13, %p2953_p4 }
  0x51   : > { %p2956_p6 = pnand %p2955_p0, %p2949_p10 }
  0x53   : > { %2959 = shalt.err (!%p2956_p6)
}
  0x54   : > { %s2960_s5 = scalar_lea.vmem %s3279_s11, 128  ;;  %s3069_s8 = smov [#allocation4]  }
  0x55   : > { %p2961_p3 = scmp.ne.s32.totalorder %s3279_s11, %s2960_s5  ;;  %s2965_s9 = sshll.u32 %s3069_s8, 4  ;;  %s2966_s9 = int_to_ptr.vmem [resolvable:$false] %s2965_s9 }
  0x56   : > { %s2967_s21 = scalar_lea.vmem %s2966_s9, 256  ;;  %p2968_p9 = scmp.lt.s32.totalorder %s3279_s11, %s2966_s9 }
  0x57   : > { %p2963_p11 = pnand %p2961_p3, %p2947_p5  ;;  %p2969_p12 = scmp.lt.s32.totalorder %s2967_s21, %s2960_s5 }
  0x59   : > { %p2964_p7 = pneg %p2963_p11  ;;  %p2970_p1 = por %p2969_p12, %p2968_p9 }
  0x5b   : > { %p2971_p4 = pnand %p2970_p1, %p2964_p7 }
  0x5d   : > { %2974 = shalt.err (!%p2971_p4)
}
  0x5e   : > { %2780 = dma.hbm_to_vmem [thread:$0]  (!%p3275_p2), %s3271_s10, 128, %s3279_s11, %s170_s19  }
  0x5f   : > { %192 = sbr.rel (%p3200_p8) target bundleno = 1011 (0x3f3), region = 32 }
  0x66   : > { %s3309_s24 = sand.u32 1, %s3049_s13   ;;  %p5119_p9 = scmp.ne.s32.totalorder %s5111_s22, 0 }
  0x67   : > { %s2648_s25 = sshll.u32 %s3309_s24, 3  ;;  %s195_s28 = scalar_lea.sflag [#allocation5], %s3309_s24 }
  0x68   : > { %s198_s4 = scalar_lea.vmem [#allocation4], %s2648_s25 }
  0x69   : > { %3028 = dma.done.wait (%p5119_p9), %s195_s28, 128  }
  0x6a   : > { %3030 = vsyncadd (%p5119_p9), %s195_s28, 4294967168  ;;  %p5120_p5 = scmp.ne.s32.totalorder %s5109_s20, 0 }
  0x6c   : > { %3032 = dma.done.wait (%p5120_p5), [#allocation7], 16  }
  0x6d   : > { %3034 = vsyncadd (%p5120_p5), [#allocation7], 4294967280 }
  0x6e   : > { %3036 = dma.done.wait (%p5120_p5), [#allocation10], 384  }
  0x6f   : > { %3038 = vsyncadd (%p5120_p5), [#allocation10], 4294966912 }
  0x70   : > { %211 = sfence }
  0x71   : > { %v234_v0 = vlaneseq  ;;  %v240_v1 = vld [vmem:[%s198_s4] sm:$0xff]  ;;  %vm245_vm0 = vcmask 1043456   ;;  %v5121_v4 = vmov 0  ;;  %v3070_v7 = vmov -inf   ;;  %s3073_s20 = smov 51   ;;  %s2654_s22 = sld [smem:[#allocation8 + $0x38]] }
  0x72   : > { %v243_v2 = vcombine.high %v240_v1, %v240_v1  ;;  %v285_v3 = vsel %vm245_vm0, %v240_v1, -inf  ;;  %v246_v6 = vsel %vm245_vm0, %v240_v1, 0.0  ;;  %v3071_v9 = vmov 0.0   ;;  %v364_v58 = vld [vmem:[#allocation9] ss:$8 sm:$0x7] }
  0x73   : > { %vm3325_vm1 = vcmp.lt.s32.totalorder %v234_v0, 256  ;;  %v286_v5 = vrot.slane %v285_v3, 4  ;;  %v247_v10 = vrot.slane %v246_v6, 4  ;;  %v3072_v16 = vmov 1966171168   ;;  %s2656_s27 = sld [smem:[#allocation8 + $0x3f]] }
  0x74   : > { %v5122_v4 = vsel %vm3325_vm1, 4294967295, %v5121_v4  ;;  %239 = vst.msk [vmem:[#allocation3] sm:$0x3] %vm3325_vm1, %v3070_v7  ;;  %v292_v8 = vsel %vm245_vm0, %v243_v2, -inf  ;;  %238 = vst.msk [vmem:[#allocation2] sm:$0x3] %vm3325_vm1, %v3071_v9  ;;  %v264_v17 = vunpack.c.l.s4 %v3072_v16 }
  0x75   : > { %5123 = vst [vmem:[#allocation16_spill] sm:$0xff] %v5122_v4  ;;  %v253_v11 = vsel %vm245_vm0, %v243_v2, 0.0  ;;  %v287_v12 = vmax.f32 %v285_v3, %v286_v5  ;;  %v293_v13 = vrot.slane %v292_v8, 4  ;;  %v248_v14 = vadd.f32 %v247_v10, %v246_v6  ;;  %s3074_s10 = smov 112   ;;  %s2658_s11 = sld [smem:[#allocation8 + $0x46]] }
  0x76   : > { %v254_v15 = vrot.slane %v253_v11, 4  ;;  %v265_v26 = vunpack.c.0.s8 %v264_v17  ;;  %v267_v27 = vshrl.u32 %v234_v0, 7  ;;  %vm338_vm2 = vcmask 416768   ;;  %s2660_s18 = sld [smem:[#allocation8 + $0x4d]]  ;;  %s3075_s19 = smov 96  }
  0x77   : > { %v288_v18 = vrot.slane %v287_v12, 2  ;;  %v294_v19 = vmax.f32 %v292_v8, %v293_v13  ;;  %v249_v20 = vrot.slane %v248_v14, 2  ;;  %v421_v63 = vstv %s2654_s22  ;;  %s2662_s29 = sld [smem:[#allocation8 + $0x54]]  ;;  %s3076_s6 = smov 80  }
  0x78   : > { %v255_v21 = vadd.f32 %v254_v15, %v253_v11  ;;  %v3333_v36 = vsub.s32 %v265_v26, %v267_v27  ;;  %v3343_v49 = vsub.s32 0, %v267_v27  ;;  %v3345_v50 = vsub.s32 1, %v267_v27  ;;  %s2664_s5 = sld [smem:[#allocation8 + $0x5b]]  ;;  %s3077_s8 = smov 64  }
  0x79   : > { %v289_v22 = vmax.f32 %v287_v12, %v288_v18  ;;  %v295_v23 = vrot.slane %v294_v19, 2  ;;  %v250_v24 = vadd.f32 %v249_v20, %v248_v14  ;;  %v3354_v60 = vsub.s32 2, %v267_v27  ;;  %s2666_s9 = sld [smem:[#allocation8 + $0x32]]  ;;  %s3078_s21 = smov 48  }
  0x7a   : > { %v256_v25 = vrot.slane %v255_v21, 2  ;;  %5124 = vst [vmem:[#allocation17_spill] sm:$0xff] %v3333_v36  ;;  %v3352_v59 = vrot.slane %v364_v58, %v3343_v49  ;;  %v373_v2 = vrot.slane %v364_v58, %v3345_v50  ;;  %v462_v13 = vstv %s2656_s27  ;;  %s2668_s25 = sld [smem:[#allocation8 + $0x39]]  ;;  %s3079_s28 = smov 32  }
  0x7b   : > { %v290_v28 = vrot.slane %v289_v22, 1  ;;  %v296_v29 = vmax.f32 %v294_v19, %v295_v23  ;;  %v251_v30 = vrot.slane %v250_v24, 1  ;;  %v284_v42 = vld [vmem:[#allocation3] sm:$0x3]  ;;  %v241_v45 = vld [vmem:[#allocation2] sm:$0x3]  ;;  %v3364_v1 = vrot.slane %v364_v58, %v3354_v60 }
  0x7c   : > { %v257_v31 = vadd.f32 %v256_v25, %v255_v21  ;;  %v503_v17 = vstv %s2658_s11  ;;  %v3401_v21 = vld [vmem:[#allocation9 + $0x1] ss:$8 sm:$0x7]  ;;  %v544_v23 = vstv %s2660_s18  ;;  %s2670_s4 = sld [smem:[#allocation8 + $0x40]]  ;;  %s2672_s22 = sld [smem:[#allocation8 + $0x47]]  ;;  %vm413_vm3 = vcmask 916480  }
  0x7d   : > { %v291_v32 = vmax.f32 %v289_v22, %v290_v28  ;;  %v297_v33 = vrot.slane %v296_v29, 1  ;;  %v252_v34 = vadd.f32 %v251_v30, %v250_v24  ;;  %v655_v22 = vrot.slane %v3401_v21, %v3345_v50  ;;  %s3081_s27 = smov 111   ;;  %s2674_s11 = sld [smem:[#allocation8 + $0x4e]] }
  0x7e   : > { %v258_v35 = vrot.slane %v257_v31, 1  ;;  %v585_v28 = vstv %s2662_s29  ;;  %s3082_s18 = smov 95   ;;  %s2676_s29 = sld [smem:[#allocation8 + $0x55]]  ;;  %vm454_vm4 = vcmask 785408   ;;  %vm495_vm5 = vcmask 654336  }
  0x7f   : > { %v298_v37 = vmax.f32 %v296_v29, %v297_v33  ;;  %s4119_s0 = sld [smem:[#allocation8 + $0x28]]  ;;  %s4121_s1 = sld [smem:[#allocation8 + $0x2f]]  ;;  %vm536_vm6 = vcmask 523264   ;;  %vm577_vm7 = vcmask 392192   ;;  %vm618_vm8 = vcmask 261120  }
  0x80   : > { %v259_v38 = vadd.f32 %v258_v35, %v257_v31  ;;  %v626_v31 = vstv %s2664_s5  ;;  %v691_v35 = vstv %s2666_s9  ;;  %s2653_s5 = sld [smem:[#allocation8 + $0x7]]  ;;  %s3083_s9 = smov 79   ;;  %vm683_vm9 = vcmask 1039360  }
  0x81   : > { %v301_v39 = vcombine.low %v291_v32, %v298_v37  ;;  %vm724_vm10 = vcmask 908288   ;;  %vm765_vm11 = vcmask 777216   ;;  %vm806_vm12 = vcmask 646144   ;;  %p5429_p2 = scmp.ne.s32.totalorder %s5116_s30, 0 }
  0x82   : > { %v262_v40 = vcombine.low %v252_v34, %v259_v38  ;;  %vm847_vm13 = vcmask 515072   ;;  %vm888_vm14 = vcmask 384000   ;;  %vm929_vm15 = vcmask 252928  }
  0x83   : > { %v308_v41 = vrot.slane %v301_v39, %v3333_v36  ;;  %v732_v39 = vstv %s2668_s25  ;;  %s3084_s25 = smov 63   ;;  %vm994_vm0 = vcmask 1031168  }
  0x84   : > { %v269_v43 = vrot.slane %v262_v40, %v3333_v36 }
  0x85   : > { %v315_v44 = vrot.slane %v308_v41, %v3333_v36 }
  0x86   : > { %v276_v46 = vrot.slane %v269_v43, %v3333_v36 }
  0x87   : > { %v317_v47 = vmax.f32 %v284_v42, %v315_v44  ;;  %v773_v42 = vstv %s2670_s4  ;;  %s2655_s4 = sld [smem:[#allocation8 + $0xe]] }
  0x88   : > { %v278_v48 = vadd.f32 %v276_v46, %v241_v45  ;;  %v814_v45 = vstv %s2672_s22  ;;  %s3085_s22 = smov 47  }
  0x89   : > { %318 = vst.msk [vmem:[#allocation3] sm:$0x3] %vm3325_vm1, %v317_v47 }
  0x8a   : > { %283 = vst.msk [vmem:[#allocation2] sm:$0x3] %vm3325_vm1, %v278_v48  ;;  %v3444_v48 = vrot.slane %v3401_v21, %v3343_v49 }
  0x90   : > { %v324_v51 = vld [vmem:[#allocation3] sm:$0x3] }
  0x91   : > { %v349_v52 = vrot.slane %v324_v51, %v3343_v49  ;;  %v322_v53 = vld [vmem:[#allocation2] sm:$0x3]  ;;  %v353_v55 = vrot.slane %v324_v51, %v3345_v50 }
  0x92   : > { %v323_v54 = vmul.f32 0.25, %v322_v53 }
  0x93   : > { %354 = vrot.lane.b32.xlu1 %v349_v52, %s3073_s20  ;;  %v855_v52 = vstv %s2674_s11  ;;  %s2657_s11 = sld [smem:[#allocation8 + $0x15]] }
  0x94   : > { %v329_v56 = vrot.slane %v323_v54, %v3343_v49  ;;  %v333_v57 = vrot.slane %v323_v54, %v3345_v50 }
  0x96   : > { %334 = vrot.lane.b32.xlu0 %v329_v56, %s3073_s20  ;;  %v3460_v56 = vrot.slane %v3401_v21, %v3354_v60 }
  0x97   : > { %356 = vrot.lane.b32.xlu1 %v353_v55, %s3073_s20 }
  0x9a   : > { %336 = vrot.lane.b32.xlu0 %v333_v57, %s3073_s20  ;;  %s3080_s20 = smov 127  }
 0x105   : > { %v355_v61 = vpop.permute.xlu1 %354 }
 0x106   : > { %v3357_v62 = vsel %vm338_vm2, 0.0, %v355_v61 }
 0x107   : > { %5125 = vst [vmem:[#allocation18_spill] sm:$0xff] %v3357_v62  ;;  %v3361_v0 = vmul.f32 %v3352_v59, %v3357_v62  ;;  %v3456_v55 = vmul.f32 %v3444_v48, %v3357_v62 }
 0x108   : > { %v3382_v10 = vpop.permute.xlu0 %334 }
 0x109   : > { %v357_v3 = vpop.permute.xlu1 %356  ;;  %v422_v5 = vmul.f32 %v421_v63, %v3361_v0  ;;  %v463_v14 = vmul.f32 %v462_v13, %v3361_v0  ;;  %v504_v25 = vmul.f32 %v503_v17, %v3361_v0  ;;  %v545_v32 = vmul.f32 %v544_v23, %v3361_v0 }
 0x10a   : > { %v3369_v6 = vsel %vm338_vm2, %v355_v61, %v357_v3  ;;  %v3372_v7 = vsel %vm338_vm2, %v357_v3, 0.0  ;;  %v586_v40 = vmul.f32 %v585_v28, %v3361_v0  ;;  %v627_v46 = vmul.f32 %v626_v31, %v3361_v0 }
 0x10b   : > { %5126 = vst [vmem:[#allocation19_spill] sm:$0xff] %v3369_v6  ;;  %5127 = vst [vmem:[#allocation20_spill] sm:$0xff] %v3372_v7  ;;  %428 = vrot.lane.b32.xlu1 %v422_v5, %s3074_s10  ;;  %v3377_v8 = vmul.f32 %v3364_v1, %v3372_v7  ;;  %v3380_v9 = vmul.f32 %v373_v2, %v3369_v6  ;;  %v3424_v34 = vmul.f32 %v655_v22, %v3369_v6 }
 0x10c   : > { %v3390_v16 = vpop.permute.xlu0 %336  ;;  %v3450_v51 = vsel %vm338_vm2, 0.0, %v3382_v10  ;;  %v896_v61 = vstv %s2676_s29  ;;  %v3478_v5 = vmul.f32 %v3460_v56, %v3372_v7  ;;  %s2659_s29 = sld [smem:[#allocation8 + $0x1c]]  ;;  %v815_v21 = vmul.f32 %v814_v45, %v3456_v55 }
 0x10d   : > { %v424_v11 = vmul.f32 %v421_v63, %v3377_v8  ;;  %v423_v12 = vmul.f32 %v421_v63, %v3380_v9  ;;  %v464_v15 = vmul.f32 %v462_v13, %v3380_v9  ;;  %v465_v18 = vmul.f32 %v462_v13, %v3377_v8  ;;  %5128 = vst [vmem:[#allocation21_spill] sm:$0xff] %v3450_v51 }
 0x10e   : > { %v505_v19 = vmul.f32 %v503_v17, %v3380_v9  ;;  %v3399_v20 = vsel %vm338_vm2, %v3382_v10, %v3390_v16  ;;  %v546_v26 = vmul.f32 %v544_v23, %v3380_v9  ;;  %v506_v29 = vmul.f32 %v503_v17, %v3377_v8 }
 0x10f   : > { %432 = vrot.lane.b32.xlu1 %v424_v11, %s3074_s10  ;;  %430 = vrot.lane.b32.xlu0 %v423_v12, %s3074_s10  ;;  %v3408_v24 = vmul.f32 %v373_v2, %v3399_v20  ;;  %v3413_v27 = vmul.f32 %v655_v22, %v3399_v20  ;;  %v587_v30 = vmul.f32 %v585_v28, %v3380_v9  ;;  %v3470_v58 = vsel %vm338_vm2, %v3390_v16, 0.0 }
 0x110   : > { %v628_v33 = vmul.f32 %v626_v31, %v3380_v9  ;;  %v547_v37 = vmul.f32 %v544_v23, %v3377_v8  ;;  %v693_v38 = vmul.f32 %v691_v35, %v3424_v34  ;;  %v734_v41 = vmul.f32 %v732_v39, %v3424_v34  ;;  %5129 = vst [vmem:[#allocation22_spill] sm:$0xff] %v3470_v58 }
 0x111   : > { %v588_v43 = vmul.f32 %v585_v28, %v3377_v8  ;;  %v775_v44 = vmul.f32 %v773_v42, %v3424_v34  ;;  %v816_v47 = vmul.f32 %v814_v45, %v3424_v34  ;;  %v629_v53 = vmul.f32 %v626_v31, %v3377_v8 }
 0x112   : > { %v857_v54 = vmul.f32 %v855_v52, %v3424_v34  ;;  %v3466_v57 = vmul.f32 %v3352_v59, %v3450_v51  ;;  %v3472_v63 = vstv %s2653_s5  ;;  %v692_v2 = vmul.f32 %v691_v35, %v3456_v55  ;;  %s2661_s5 = sld [smem:[#allocation8 + $0x23]] }
 0x113   : > { %469 = vrot.lane.b32.xlu1 %v463_v14, %s3075_s19  ;;  %471 = vrot.lane.b32.xlu0 %v464_v15, %s3075_s19  ;;  %v898_v3 = vmul.f32 %v896_v61, %v3424_v34  ;;  %v383_v8 = vmul.f32 %v3364_v1, %v3470_v58  ;;  %v694_v10 = vmul.f32 %v691_v35, %v3478_v5  ;;  %v3491_v13 = vstv %s2655_s4  ;;  %s2663_s4 = sld [smem:[#allocation8 + $0x2a]] }
 0x114   : > { %v401_v59 = vmul.f32 %v3472_v63, %v3466_v57  ;;  %v733_v12 = vmul.f32 %v732_v39, %v3456_v55  ;;  %v735_v14 = vmul.f32 %v732_v39, %v3478_v5  ;;  %v442_v1 = vmul.f32 %v3491_v13, %v3466_v57 }
 0x115   : > { %v403_v11 = vmul.f32 %v3472_v63, %v383_v8  ;;  %v774_v15 = vmul.f32 %v773_v42, %v3456_v55  ;;  %v444_v16 = vmul.f32 %v3491_v13, %v383_v8  ;;  %v482_v17 = vstv %s2657_s11  ;;  %s2678_s11 = sld [smem:[#allocation8 + $0x5c]] }
 0x116   : > { %v485_v22 = vmul.f32 %v482_v17, %v383_v8  ;;  %v523_v23 = vstv %s2659_s29  ;;  %v856_v28 = vmul.f32 %v855_v52, %v3456_v55  ;;  %v858_v31 = vmul.f32 %v855_v52, %v3478_v5  ;;  %s2665_s29 = sld [smem:[#allocation8 + $0x1]] }
 0x117   : > { %473 = vrot.lane.b32.xlu1 %v465_v18, %s3075_s19  ;;  %512 = vrot.lane.b32.xlu0 %v505_v19, %s3076_s6  ;;  %v776_v18 = vmul.f32 %v773_v42, %v3478_v5  ;;  %v483_v19 = vmul.f32 %v482_v17, %v3466_v57  ;;  %v443_v52 = vmul.f32 %v3491_v13, %v3408_v24  ;;  %vm1035_vm2 = vcmask 900096  }
 0x11b   : > { %510 = vrot.lane.b32.xlu1 %v504_v25, %s3076_s6  ;;  %553 = vrot.lane.b32.xlu0 %v546_v26, %s3077_s8  ;;  %v817_v25 = vmul.f32 %v814_v45, %v3478_v5  ;;  %v524_v26 = vmul.f32 %v523_v23, %v3466_v57 }
 0x11f   : > { %514 = vrot.lane.b32.xlu1 %v506_v29, %s3076_s6  ;;  %594 = vrot.lane.b32.xlu0 %v587_v30, %s3078_s21  ;;  %v526_v29 = vmul.f32 %v523_v23, %v383_v8  ;;  %v564_v30 = vstv %s2661_s5  ;;  %s2667_s5 = sld [smem:[#allocation8 + $0x8]] }
 0x120   : > { %v567_v35 = vmul.f32 %v564_v30, %v383_v8 }
 0x123   : > { %551 = vrot.lane.b32.xlu1 %v545_v32, %s3077_s8  ;;  %635 = vrot.lane.b32.xlu0 %v628_v33, %s3079_s28  ;;  %v565_v32 = vmul.f32 %v564_v30, %v3466_v57  ;;  %v897_v33 = vmul.f32 %v896_v61, %v3456_v55 }
 0x127   : > { %555 = vrot.lane.b32.xlu1 %v547_v37, %s3077_s8  ;;  %700 = vrot.lane.b32.xlu0 %v693_v38, %s3080_s20  ;;  %v605_v37 = vstv %s2663_s4  ;;  %v899_v38 = vmul.f32 %v896_v61, %v3478_v5  ;;  %s3086_s4 = smov 31   ;;  %v525_v61 = vmul.f32 %v523_v23, %v3408_v24 }
 0x128   : > { %v606_v39 = vmul.f32 %v605_v37, %v3466_v57  ;;  %v608_v42 = vmul.f32 %v605_v37, %v383_v8 }
 0x12b   : > { %592 = vrot.lane.b32.xlu1 %v586_v40, %s3078_s21  ;;  %741 = vrot.lane.b32.xlu0 %v734_v41, %s3081_s27  ;;  %v3527_v40 = vstv %s2678_s11  ;;  %s2669_s11 = sld [smem:[#allocation8 + $0xf]] }
 0x12c   : > { %v938_v41 = vmul.f32 %v3527_v40, %v3456_v55  ;;  %v484_v55 = vmul.f32 %v482_v17, %v3408_v24 }
 0x12f   : > { %596 = vrot.lane.b32.xlu1 %v588_v43, %s3078_s21  ;;  %782 = vrot.lane.b32.xlu0 %v775_v44, %s3082_s18  ;;  %v3535_v43 = vmul.f32 %v3444_v48, %v3450_v51  ;;  %v670_v44 = vstv %s2665_s29  ;;  %s2685_s29 = sld [smem:[#allocation8 + $0x17]] }
 0x131   : > { %v671_v45 = vmul.f32 %v670_v44, %v3535_v43 }
 0x133   : > { %633 = vrot.lane.b32.xlu1 %v627_v46, %s3079_s28  ;;  %823 = vrot.lane.b32.xlu0 %v816_v47, %s3083_s9  ;;  %v402_v46 = vmul.f32 %v3472_v63, %v3408_v24  ;;  %v3544_v47 = vmul.f32 %v3460_v56, %v3470_v58  ;;  %v752_v63 = vstv %s2669_s11  ;;  %s2687_s11 = sld [smem:[#allocation8 + $0x1e]] }
 0x135   : > { %v673_v48 = vmul.f32 %v670_v44, %v3544_v47 }
 0x137   : > { %637 = vrot.lane.b32.xlu1 %v629_v53, %s3079_s28  ;;  %864 = vrot.lane.b32.xlu0 %v857_v54, %s3084_s25  ;;  %v711_v53 = vstv %s2667_s5  ;;  %s3089_s5 = smov 94  }
 0x138   : > { %v712_v54 = vmul.f32 %v711_v53, %v3535_v43  ;;  %v714_v56 = vmul.f32 %v711_v53, %v3544_v47 }
 0x13b   : > { %698 = vrot.lane.b32.xlu1 %v692_v2, %s3080_s20  ;;  %905 = vrot.lane.b32.xlu0 %v898_v3, %s3085_s22  ;;  %v753_v3 = vmul.f32 %v752_v63, %v3535_v43 }
 0x13f   : > { %702 = vrot.lane.b32.xlu1 %v694_v10, %s3080_s20  ;;  %407 = vrot.lane.b32.xlu0 %v401_v59, %s3074_s10  ;;  %v566_v59 = vmul.f32 %v564_v30, %v3408_v24 }
 0x143   : > { %739 = vrot.lane.b32.xlu1 %v733_v12, %s3081_s27  ;;  %411 = vrot.lane.b32.xlu0 %v403_v11, %s3074_s10  ;;  %v755_v11 = vmul.f32 %v752_v63, %v3544_v47  ;;  %v607_v12 = vmul.f32 %v605_v37, %v3408_v24 }
 0x147   : > { %743 = vrot.lane.b32.xlu1 %v735_v14, %s3081_s27  ;;  %448 = vrot.lane.b32.xlu0 %v442_v1, %s3075_s19 }
 0x14b   : > { %780 = vrot.lane.b32.xlu1 %v774_v15, %s3082_s18  ;;  %452 = vrot.lane.b32.xlu0 %v444_v16, %s3075_s19  ;;  %v672_v16 = vmul.f32 %v670_v44, %v3413_v27 }
 0x14f   : > { %784 = vrot.lane.b32.xlu1 %v776_v18, %s3082_s18  ;;  %489 = vrot.lane.b32.xlu0 %v483_v19, %s3076_s6 }
 0x153   : > { %821 = vrot.lane.b32.xlu1 %v815_v21, %s3083_s9  ;;  %493 = vrot.lane.b32.xlu0 %v485_v22, %s3076_s6  ;;  %v713_v21 = vmul.f32 %v711_v53, %v3413_v27 }
 0x157   : > { %825 = vrot.lane.b32.xlu1 %v817_v25, %s3083_s9  ;;  %530 = vrot.lane.b32.xlu0 %v524_v26, %s3077_s8 }
 0x15b   : > { %862 = vrot.lane.b32.xlu1 %v856_v28, %s3084_s25  ;;  %534 = vrot.lane.b32.xlu0 %v526_v29, %s3077_s8  ;;  %v754_v28 = vmul.f32 %v752_v63, %v3413_v27 }
 0x15f   : > { %866 = vrot.lane.b32.xlu1 %v858_v31, %s3084_s25  ;;  %571 = vrot.lane.b32.xlu0 %v565_v32, %s3078_s21 }
 0x163   : > { %903 = vrot.lane.b32.xlu1 %v897_v33, %s3085_s22  ;;  %575 = vrot.lane.b32.xlu0 %v567_v35, %s3078_s21 }
 0x167   : > { %907 = vrot.lane.b32.xlu1 %v899_v38, %s3085_s22  ;;  %612 = vrot.lane.b32.xlu0 %v606_v39, %s3079_s28 }
 0x16b   : > { %944 = vrot.lane.b32.xlu1 %v938_v41, %s3086_s4  ;;  %616 = vrot.lane.b32.xlu0 %v608_v42, %s3079_s28 }
 0x16f   : > { %677 = vrot.lane.b32.xlu0 %v671_v45, %s3080_s20  ;;  %409 = vrot.lane.b32.xlu1 %v402_v46, %s3074_s10  ;;  %s2671_s10 = sld [smem:[#allocation8 + $0x16]] }
 0x173   : > { %681 = vrot.lane.b32.xlu0 %v673_v48, %s3080_s20  ;;  %450 = vrot.lane.b32.xlu1 %v443_v52, %s3075_s19  ;;  %s2673_s19 = sld [smem:[#allocation8 + $0x1d]] }
 0x175   : > { %v793_v13 = vstv %s2671_s10  ;;  %s3090_s10 = smov 78  }
 0x176   : > { %v794_v15 = vmul.f32 %v793_v13, %v3535_v43  ;;  %v796_v19 = vmul.f32 %v793_v13, %v3544_v47  ;;  %v795_v32 = vmul.f32 %v793_v13, %v3413_v27 }
 0x177   : > { %718 = vrot.lane.b32.xlu0 %v712_v54, %s3081_s27  ;;  %491 = vrot.lane.b32.xlu1 %v484_v55, %s3076_s6  ;;  %s2675_s6 = sld [smem:[#allocation8 + $0x24]]  ;;  %v957_v55 = vld [vmem:[#allocation9 + $0x2] ss:$8 sm:$0x7] }
 0x179   : > { %v834_v22 = vstv %s2673_s19  ;;  %s2688_s19 = sld [smem:[#allocation8 + $0x4f]] }
 0x17a   : > { %v835_v26 = vmul.f32 %v834_v22, %v3535_v43  ;;  %v837_v31 = vmul.f32 %v834_v22, %v3544_v47  ;;  %v836_v39 = vmul.f32 %v834_v22, %v3413_v27 }
 0x17b   : > { %722 = vrot.lane.b32.xlu0 %v714_v56, %s3081_s27  ;;  %532 = vrot.lane.b32.xlu1 %v525_v61, %s3077_s8  ;;  %s2677_s8 = sld [smem:[#allocation8 + $0x2b]]  ;;  %v966_v56 = vrot.slane %v957_v55, %v3345_v50 }
 0x17d   : > { %v3561_v2 = vpop.permute.xlu1 %428  ;;  %v875_v33 = vstv %s2675_s6  ;;  %s2689_s6 = sld [smem:[#allocation8 + $0x25]] }
 0x17e   : > { %v876_v38 = vmul.f32 %v875_v33, %v3535_v43  ;;  %v878_v44 = vmul.f32 %v875_v33, %v3544_v47  ;;  %v877_v45 = vmul.f32 %v875_v33, %v3413_v27 }
 0x17f   : > { %759 = vrot.lane.b32.xlu0 %v753_v3, %s3082_s18  ;;  %573 = vrot.lane.b32.xlu1 %v566_v59, %s3078_s21  ;;  %s2679_s21 = sld [smem:[#allocation8 + $0x2]]  ;;  %v940_v59 = vmul.f32 %v3527_v40, %v3478_v5 }
 0x181   : > { %v3567_v8 = vpop.permute.xlu1 %432  ;;  %v3569_v10 = vpop.permute.xlu0 %430  ;;  %v916_v46 = vstv %s2677_s8  ;;  %s3091_s8 = smov 62  }
 0x182   : > { %v917_v53 = vmul.f32 %v916_v46, %v3535_v43  ;;  %v918_v54 = vmul.f32 %v916_v46, %v3413_v27  ;;  %v919_v3 = vmul.f32 %v916_v46, %v3544_v47  ;;  %v3640_v43 = vmul.f32 %v966_v56, %v3399_v20 }
 0x183   : > { %763 = vrot.lane.b32.xlu0 %v755_v11, %s3082_s18  ;;  %614 = vrot.lane.b32.xlu1 %v607_v12, %s3079_s28  ;;  %s2680_s28 = sld [smem:[#allocation8 + $0x33]]  ;;  %v962_v27 = vrot.slane %v957_v55, %v3343_v49  ;;  %v970_v12 = vrot.slane %v957_v55, %v3354_v60  ;;  %v939_v47 = vmul.f32 %v3527_v40, %v3424_v34 }
 0x185   : > { %v3575_v14 = vpop.permute.xlu1 %469  ;;  %v3577_v1 = vpop.permute.xlu0 %471  ;;  %v981_v11 = vstv %s2679_s21  ;;  %s2690_s21 = sld [smem:[#allocation8 + $0x56]] }
 0x186   : > { %v983_v5 = vmul.f32 %v981_v11, %v3640_v43 }
 0x187   : > { %800 = vrot.lane.b32.xlu0 %v794_v15, %s3083_s9  ;;  %679 = vrot.lane.b32.xlu1 %v672_v16, %s3080_s20  ;;  %v3654_v16 = vmul.f32 %v962_v27, %v3450_v51  ;;  %s2681_s20 = sld [smem:[#allocation8 + $0x9]] }
 0x189   : > { %v3583_v17 = vpop.permute.xlu1 %473  ;;  %v3585_v18 = vpop.permute.xlu0 %512  ;;  %v982_v34 = vmul.f32 %v981_v11, %v3654_v16 }
 0x18b   : > { %804 = vrot.lane.b32.xlu0 %v796_v19, %s3083_s9  ;;  %720 = vrot.lane.b32.xlu1 %v713_v21, %s3081_s27  ;;  %v3657_v19 = vmul.f32 %v962_v27, %v3357_v62  ;;  %v1002_v21 = vstv %s2680_s28  ;;  %s3087_s27 = smov 126   ;;  %s2691_s28 = sld [smem:[#allocation8 + $0x2c]] }
 0x18d   : > { %v3591_v23 = vpop.permute.xlu1 %510  ;;  %v3593_v25 = vpop.permute.xlu0 %553  ;;  %v1003_v40 = vmul.f32 %v1002_v21, %v3657_v19 }
 0x18f   : > { %841 = vrot.lane.b32.xlu0 %v835_v26, %s3084_s25  ;;  %761 = vrot.lane.b32.xlu1 %v754_v28, %s3082_s18  ;;  %v3667_v28 = vmul.f32 %v970_v12, %v3470_v58  ;;  %s2682_s18 = sld [smem:[#allocation8 + $0x3a]] }
 0x191   : > { %v3599_v29 = vpop.permute.xlu1 %514  ;;  %v3601_v30 = vpop.permute.xlu0 %594 }
 0x193   : > { %845 = vrot.lane.b32.xlu0 %v837_v31, %s3084_s25  ;;  %802 = vrot.lane.b32.xlu1 %v795_v32, %s3083_s9  ;;  %v3670_v31 = vmul.f32 %v970_v12, %v3372_v7  ;;  %s2683_s9 = sld [smem:[#allocation8 + $0x10]] }
 0x195   : > { %v3607_v35 = vpop.permute.xlu1 %551  ;;  %v3609_v37 = vpop.permute.xlu0 %635 }
 0x197   : > { %882 = vrot.lane.b32.xlu0 %v876_v38, %s3085_s22  ;;  %843 = vrot.lane.b32.xlu1 %v836_v39, %s3084_s25  ;;  %v984_v38 = vmul.f32 %v981_v11, %v3667_v28  ;;  %v1005_v39 = vmul.f32 %v1002_v21, %v3670_v31  ;;  %s3088_s25 = smov 110  }
 0x199   : > { %v3615_v41 = vpop.permute.xlu1 %555  ;;  %v3617_v42 = vpop.permute.xlu0 %700 }
 0x19a   : > { %5130 = vst [vmem:[#allocation23_spill] sm:$0xff] %v3617_v42 }
 0x19b   : > { %886 = vrot.lane.b32.xlu0 %v878_v44, %s3085_s22  ;;  %884 = vrot.lane.b32.xlu1 %v877_v45, %s3085_s22  ;;  %v3679_v44 = vmul.f32 %v966_v56, %v3369_v6  ;;  %v1022_v45 = vstv %s2681_s20  ;;  %s2684_s22 = sld [smem:[#allocation8 + $0x41]]  ;;  %s3092_s20 = smov 46  }
 0x19c   : > { %v1024_v55 = vmul.f32 %v1022_v45, %v3640_v43  ;;  %v1023_v27 = vmul.f32 %v1022_v45, %v3654_v16 }
 0x19d   : > { %v3623_v48 = vpop.permute.xlu1 %592  ;;  %v3625_v52 = vpop.permute.xlu0 %741 }
 0x19e   : > { %5131 = vst [vmem:[#allocation24_spill] sm:$0xff] %v3625_v52 }
 0x19f   : > { %923 = vrot.lane.b32.xlu0 %v917_v53, %s3086_s4  ;;  %925 = vrot.lane.b32.xlu1 %v918_v54, %s3086_s4  ;;  %v1004_v54 = vmul.f32 %v1002_v21, %v3679_v44 }
 0x1a1   : > { %v3632_v61 = vpop.permute.xlu1 %596  ;;  %v3634_v63 = vpop.permute.xlu0 %782 }
 0x1a2   : > { %5132 = vst [vmem:[#allocation25_spill] sm:$0xff] %v3634_v63 }
 0x1a3   : > { %927 = vrot.lane.b32.xlu0 %v919_v3, %s3086_s4  ;;  %948 = vrot.lane.b32.xlu1 %v940_v59, %s3086_s4  ;;  %v1043_v3 = vstv %s2682_s18  ;;  %s2693_s18 = sld [smem:[#allocation8 + $0x3]] }
 0x1a4   : > { %v1044_v11 = vmul.f32 %v1043_v3, %v3657_v19  ;;  %v1046_v21 = vmul.f32 %v1043_v3, %v3670_v31 }
 0x1a5   : > { %v3646_v13 = vpop.permute.xlu1 %633  ;;  %v3648_v15 = vpop.permute.xlu0 %823 }
 0x1a6   : > { %5133 = vst [vmem:[#allocation26_spill] sm:$0xff] %v3648_v15 }
 0x1a7   : > { %946 = vrot.lane.b32.xlu0 %v939_v47, %s3086_s4  ;;  %990 = vrot.lane.b32.xlu1 %v983_v5, %s3087_s27  ;;  %v1025_v5 = vmul.f32 %v1022_v45, %v3667_v28  ;;  %s2686_s4 = sld [smem:[#allocation8 + $0x48]] }
 0x1a9   : > { %v3660_v22 = vpop.permute.xlu1 %637  ;;  %v3662_v26 = vpop.permute.xlu0 %864 }
 0x1aa   : > { %5134 = vst [vmem:[#allocation27_spill] sm:$0xff] %v3660_v22  ;;  %5135 = vst [vmem:[#allocation28_spill] sm:$0xff] %v3662_v26 }
 0x1ab   : > { %988 = vrot.lane.b32.xlu0 %v982_v34, %s3087_s27  ;;  %1009 = vrot.lane.b32.xlu1 %v1003_v40, %s3087_s27  ;;  %v1063_v34 = vstv %s2683_s9  ;;  %s3093_s9 = smov 30  }
 0x1ac   : > { %v1066_v4 = vmul.f32 %v1063_v34, %v3667_v28 }
 0x1ad   : > { %v3672_v32 = vpop.permute.xlu1 %698  ;;  %v3674_v33 = vpop.permute.xlu0 %905 }
 0x1ae   : > { %5136 = vst [vmem:[#allocation29_spill] sm:$0xff] %v3672_v32  ;;  %5137 = vst [vmem:[#allocation30_spill] sm:$0xff] %v3674_v33 }
 0x1af   : > { %992 = vrot.lane.b32.xlu0 %v984_v38, %s3087_s27  ;;  %1013 = vrot.lane.b32.xlu1 %v1005_v39, %s3087_s27  ;;  %v1045_v39 = vmul.f32 %v1043_v3, %v3679_v44 }
 0x1b1   : > { %v3681_v46 = vpop.permute.xlu1 %702  ;;  %v3683_v53 = vpop.permute.xlu0 %407 }
 0x1b2   : > { %5138 = vst [vmem:[#allocation31_spill] sm:$0xff] %v3681_v46 }
 0x1b3   : > { %1011 = vrot.lane.b32.xlu0 %v1004_v54, %s3087_s27  ;;  %1031 = vrot.lane.b32.xlu1 %v1024_v55, %s3088_s25  ;;  %v1065_v54 = vmul.f32 %v1063_v34, %v3640_v43  ;;  %v1084_v55 = vstv %s2684_s22  ;;  %s2692_s27 = sld [smem:[#allocation8 + $0x5d]]  ;;  %s2695_s22 = sld [smem:[#allocation8 + $0xa]] }
 0x1b4   : > { %v1086_v26 = vmul.f32 %v1084_v55, %v3679_v44 }
 0x1b5   : > { %v3687_v59 = vpop.permute.xlu1 %739  ;;  %v3689_v56 = vpop.permute.xlu0 %411 }
 0x1b6   : > { %5139 = vst [vmem:[#allocation32_spill] sm:$0xff] %v3687_v59 }
 0x1b7   : > { %1029 = vrot.lane.b32.xlu0 %v1023_v27, %s3088_s25  ;;  %1050 = vrot.lane.b32.xlu1 %v1044_v11, %s3088_s25  ;;  %v1064_v11 = vmul.f32 %v1063_v34, %v3654_v16 }
 0x1b9   : > { %v3693_v12 = vpop.permute.xlu1 %743  ;;  %v3695_v47 = vpop.permute.xlu0 %448 }
 0x1ba   : > { %5140 = vst [vmem:[#allocation33_spill] sm:$0xff] %v3693_v12 }
 0x1bb   : > { %1033 = vrot.lane.b32.xlu0 %v1025_v5, %s3088_s25  ;;  %1054 = vrot.lane.b32.xlu1 %v1046_v21, %s3088_s25  ;;  %v1085_v5 = vmul.f32 %v1084_v55, %v3657_v19 }
 0x1bd   : > { %v3699_v40 = vpop.permute.xlu1 %780  ;;  %v3701_v38 = vpop.permute.xlu0 %452 }
 0x1be   : > { %5141 = vst [vmem:[#allocation34_spill] sm:$0xff] %v3699_v40 }
 0x1bf   : > { %1052 = vrot.lane.b32.xlu0 %v1045_v39, %s3088_s25  ;;  %1072 = vrot.lane.b32.xlu1 %v1065_v54, %s3089_s5  ;;  %v1087_v39 = vmul.f32 %v1084_v55, %v3670_v31  ;;  %v1104_v54 = vstv %s2685_s29  ;;  %s2694_s25 = sld [smem:[#allocation8 + $0x34]]  ;;  %s3094_s29 = smov 125  }
 0x1c1   : > { %v3705_v27 = vpop.permute.xlu1 %784  ;;  %v3707_v45 = vpop.permute.xlu0 %489 }
 0x1c2   : > { %5142 = vst [vmem:[#allocation35_spill] sm:$0xff] %v3705_v27 }
 0x1c3   : > { %1070 = vrot.lane.b32.xlu0 %v1064_v11, %s3089_s5  ;;  %1091 = vrot.lane.b32.xlu1 %v1085_v5, %s3089_s5  ;;  %v1106_v11 = vmul.f32 %v1104_v54, %v3640_v43  ;;  %v1125_v5 = vstv %s2686_s4  ;;  %s2697_s4 = sld [smem:[#allocation8 + $0x11]] }
 0x1c4   : > { %v1128_v15 = vmul.f32 %v1125_v5, %v3670_v31 }
 0x1c5   : > { %v3711_v21 = vpop.permute.xlu1 %821  ;;  %v3713_v3 = vpop.permute.xlu0 %493 }
 0x1c6   : > { %5143 = vst [vmem:[#allocation36_spill] sm:$0xff] %v3711_v21 }
 0x1c7   : > { %1074 = vrot.lane.b32.xlu0 %v1066_v4, %s3089_s5  ;;  %1095 = vrot.lane.b32.xlu1 %v1087_v39, %s3089_s5  ;;  %v1105_v4 = vmul.f32 %v1104_v54, %v3654_v16  ;;  %v1126_v39 = vmul.f32 %v1125_v5, %v3657_v19 }
 0x1c9   : > { %v3717_v36 = vpop.permute.xlu1 %825  ;;  %v3719_v33 = vpop.permute.xlu0 %530 }
 0x1ca   : > { %5144 = vst [vmem:[#allocation37_spill] sm:$0xff] %v3717_v36  ;;  %5145 = vst [vmem:[#allocation38_spill] sm:$0xff] %v3719_v33 }
 0x1cb   : > { %1093 = vrot.lane.b32.xlu0 %v1086_v26, %s3089_s5  ;;  %1113 = vrot.lane.b32.xlu1 %v1106_v11, %s3090_s10  ;;  %v1107_v26 = vmul.f32 %v1104_v54, %v3667_v28  ;;  %v1145_v11 = vstv %s2687_s11  ;;  %s2696_s5 = sld [smem:[#allocation8 + $0x3b]]  ;;  %s3095_s11 = smov 109  }
 0x1cc   : > { %v1147_v40 = vmul.f32 %v1145_v11, %v3640_v43  ;;  %v1146_v54 = vmul.f32 %v1145_v11, %v3654_v16 }
 0x1cd   : > { %v3723_v21 = vpop.permute.xlu1 %862  ;;  %v3725_v34 = vpop.permute.xlu0 %534 }
 0x1ce   : > { %5146 = vst [vmem:[#allocation39_spill] sm:$0xff] %v3723_v21  ;;  %5147 = vst [vmem:[#allocation40_spill] sm:$0xff] %v3725_v34 }
 0x1cf   : > { %1111 = vrot.lane.b32.xlu0 %v1105_v4, %s3090_s10  ;;  %1132 = vrot.lane.b32.xlu1 %v1126_v39, %s3090_s10  ;;  %v1127_v4 = vmul.f32 %v1125_v5, %v3679_v44  ;;  %v1166_v39 = vstv %s2688_s19  ;;  %s2699_s19 = sld [smem:[#allocation8 + $0x18]] }
 0x1d0   : > { %v1169_v5 = vmul.f32 %v1166_v39, %v3670_v31 }
 0x1d1   : > { %v3729_v36 = vpop.permute.xlu1 %866  ;;  %v3731_v55 = vpop.permute.xlu0 %571 }
 0x1d2   : > { %5148 = vst [vmem:[#allocation41_spill] sm:$0xff] %v3729_v36  ;;  %5149 = vst [vmem:[#allocation42_spill] sm:$0xff] %v3731_v55 }
 0x1d3   : > { %1136 = vrot.lane.b32.xlu1 %v1128_v15, %s3090_s10  ;;  %1115 = vrot.lane.b32.xlu0 %v1107_v26, %s3090_s10  ;;  %v1167_v15 = vmul.f32 %v1166_v39, %v3657_v19 }
 0x1d5   : > { %v3735_v21 = vpop.permute.xlu1 %903  ;;  %v3737_v27 = vpop.permute.xlu0 %575 }
 0x1d6   : > { %5150 = vst [vmem:[#allocation43_spill] sm:$0xff] %v3735_v21  ;;  %5151 = vst [vmem:[#allocation44_spill] sm:$0xff] %v3737_v27 }
 0x1d7   : > { %1154 = vrot.lane.b32.xlu1 %v1147_v40, %s3091_s8  ;;  %1134 = vrot.lane.b32.xlu0 %v1127_v4, %s3090_s10  ;;  %v1148_v40 = vmul.f32 %v1145_v11, %v3667_v28  ;;  %v1186_v4 = vstv %s2689_s6  ;;  %s2698_s10 = sld [smem:[#allocation8 + $0x42]]  ;;  %s3096_s6 = smov 93  }
 0x1d8   : > { %v1188_v59 = vmul.f32 %v1186_v4, %v3640_v43 }
 0x1d9   : > { %v3741_v36 = vpop.permute.xlu1 %907  ;;  %v3743_v63 = vpop.permute.xlu0 %612 }
 0x1da   : > { %5152 = vst [vmem:[#allocation45_spill] sm:$0xff] %v3741_v36  ;;  %5153 = vst [vmem:[#allocation46_spill] sm:$0xff] %v3743_v63 }
 0x1db   : > { %1173 = vrot.lane.b32.xlu1 %v1167_v15, %s3091_s8  ;;  %1152 = vrot.lane.b32.xlu0 %v1146_v54, %s3091_s8  ;;  %v1168_v15 = vmul.f32 %v1166_v39, %v3679_v44  ;;  %v1207_v54 = vstv %s2690_s21  ;;  %s2701_s21 = sld [smem:[#allocation8 + $0x1f]] }
 0x1dc   : > { %v1208_v11 = vmul.f32 %v1207_v54, %v3657_v19  ;;  %v1210_v39 = vmul.f32 %v1207_v54, %v3670_v31 }
 0x1dd   : > { %v3747_v26 = vpop.permute.xlu1 %944  ;;  %v3749_v21 = vpop.permute.xlu0 %616 }
 0x1de   : > { %5154 = vst [vmem:[#allocation47_spill] sm:$0xff] %v3747_v26  ;;  %5155 = vst [vmem:[#allocation48_spill] sm:$0xff] %v3749_v21 }
 0x1df   : > { %1177 = vrot.lane.b32.xlu1 %v1169_v5, %s3091_s8  ;;  %1156 = vrot.lane.b32.xlu0 %v1148_v40, %s3091_s8  ;;  %v1187_v5 = vmul.f32 %v1186_v4, %v3654_v16 }
 0x1e1   : > { %v3753_v36 = vpop.permute.xlu1 %409  ;;  %v3755_v12 = vpop.permute.xlu0 %677 }
 0x1e2   : > { %5156 = vst [vmem:[#allocation49_spill] sm:$0xff] %v3755_v12 }
 0x1e3   : > { %1195 = vrot.lane.b32.xlu1 %v1188_v59, %s3092_s20  ;;  %1175 = vrot.lane.b32.xlu0 %v1168_v15, %s3091_s8  ;;  %v1189_v59 = vmul.f32 %v1186_v4, %v3667_v28  ;;  %v1227_v15 = vstv %s2691_s28  ;;  %s2700_s8 = sld [smem:[#allocation8 + $0x49]]  ;;  %s3097_s28 = smov 77  }
 0x1e4   : > { %v1229_v63 = vmul.f32 %v1227_v15, %v3640_v43 }
 0x1e5   : > { %v3759_v26 = vpop.permute.xlu1 %450  ;;  %v3761_v52 = vpop.permute.xlu0 %681 }
 0x1e6   : > { %5157 = vst [vmem:[#allocation50_spill] sm:$0xff] %v3761_v52 }
 0x1e7   : > { %1214 = vrot.lane.b32.xlu1 %v1208_v11, %s3092_s20  ;;  %1193 = vrot.lane.b32.xlu0 %v1187_v5, %s3092_s20  ;;  %v1209_v11 = vmul.f32 %v1207_v54, %v3679_v44  ;;  %v1248_v5 = vstv %s2692_s27  ;;  %s2703_s27 = sld [smem:[#allocation8 + $0x26]] }
 0x1e8   : > { %v1249_v4 = vmul.f32 %v1248_v5, %v3657_v19  ;;  %v1251_v54 = vmul.f32 %v1248_v5, %v3670_v31  ;;  %v1250_v19 = vmul.f32 %v1248_v5, %v3679_v44 }
 0x1e9   : > { %v3765_v40 = vpop.permute.xlu1 %491  ;;  %v3767_v12 = vpop.permute.xlu0 %718 }
 0x1ea   : > { %5158 = vst [vmem:[#allocation51_spill] sm:$0xff] %v3767_v12 }
 0x1eb   : > { %1218 = vrot.lane.b32.xlu1 %v1210_v39, %s3092_s20  ;;  %1197 = vrot.lane.b32.xlu0 %v1189_v59, %s3092_s20  ;;  %v1228_v39 = vmul.f32 %v1227_v15, %v3654_v16 }
 0x1ed   : > { %v3771_v21 = vpop.permute.xlu1 %532  ;;  %v3773_v52 = vpop.permute.xlu0 %722 }
 0x1ee   : > { %5159 = vst [vmem:[#allocation52_spill] sm:$0xff] %v3773_v52 }
 0x1ef   : > { %1236 = vrot.lane.b32.xlu1 %v1229_v63, %s3093_s9  ;;  %1216 = vrot.lane.b32.xlu0 %v1209_v11, %s3092_s20  ;;  %v1230_v63 = vmul.f32 %v1227_v15, %v3667_v28  ;;  %v1268_v11 = vstv %s2693_s18  ;;  %s2702_s20 = sld [smem:[#allocation8 + $0x50]]  ;;  %s3098_s18 = smov 61  }
 0x1f0   : > { %v1270_v16 = vmul.f32 %v1268_v11, %v3399_v20  ;;  %v1269_v15 = vmul.f32 %v1268_v11, %v3450_v51  ;;  %v1271_v5 = vmul.f32 %v1268_v11, %v3470_v58 }
 0x1f1   : > { %v3777_v12 = vpop.permute.xlu1 %573  ;;  %v3779_v46 = vpop.permute.xlu0 %759 }
 0x1f2   : > { %5160 = vst [vmem:[#allocation53_spill] sm:$0xff] %v3777_v12  ;;  %5161 = vst [vmem:[#allocation54_spill] sm:$0xff] %v3779_v46 }
 0x1f3   : > { %1255 = vrot.lane.b32.xlu1 %v1249_v4, %s3093_s9  ;;  %1234 = vrot.lane.b32.xlu0 %v1228_v39, %s3093_s9  ;;  %v1289_v4 = vstv %s2694_s25  ;;  %s2705_s25 = sld [smem:[#allocation8 + $0x2d]] }
 0x1f4   : > { %v1290_v28 = vmul.f32 %v1289_v4, %v3357_v62  ;;  %v1292_v44 = vmul.f32 %v1289_v4, %v3372_v7 }
 0x1f5   : > { %v3783_v59 = vpop.permute.xlu1 %614  ;;  %v3785_v43 = vpop.permute.xlu0 %763 }
 0x1f6   : > { %5162 = vst [vmem:[#allocation55_spill] sm:$0xff] %v3783_v59  ;;  %5163 = vst [vmem:[#allocation56_spill] sm:$0xff] %v3785_v43 }
 0x1f7   : > { %1259 = vrot.lane.b32.xlu1 %v1251_v54, %s3093_s9  ;;  %1238 = vrot.lane.b32.xlu0 %v1230_v63, %s3093_s9 }
 0x1f9   : > { %v3789_v52 = vpop.permute.xlu1 %679  ;;  %v3791_v46 = vpop.permute.xlu0 %800 }
 0x1fa   : > { %5164 = vst [vmem:[#allocation57_spill] sm:$0xff] %v3789_v52  ;;  %5165 = vst [vmem:[#allocation58_spill] sm:$0xff] %v3791_v46 }
 0x1fb   : > { %1277 = vrot.lane.b32.xlu1 %v1270_v16, %s3094_s29  ;;  %1257 = vrot.lane.b32.xlu0 %v1250_v19, %s3093_s9  ;;  %v1309_v16 = vstv %s2695_s22  ;;  %s2704_s9 = sld [smem:[#allocation8 + $0x57]]  ;;  %s3099_s22 = smov 45  }
 0x1fc   : > { %v1311_v46 = vmul.f32 %v1309_v16, %v3399_v20 }
 0x1fd   : > { %v3795_v39 = vpop.permute.xlu1 %720  ;;  %v3797_v31 = vpop.permute.xlu0 %804 }
 0x1fe   : > { %5166 = vst [vmem:[#allocation59_spill] sm:$0xff] %v3795_v39  ;;  %5167 = vst [vmem:[#allocation60_spill] sm:$0xff] %v3797_v31 }
 0x1ff   : > { %1296 = vrot.lane.b32.xlu1 %v1290_v28, %s3094_s29  ;;  %1275 = vrot.lane.b32.xlu0 %v1269_v15, %s3094_s29  ;;  %v1291_v28 = vmul.f32 %v1289_v4, %v3369_v6  ;;  %v1330_v15 = vstv %s2696_s5  ;;  %s2707_s5 = sld [smem:[#allocation8 + $0x4]] }
 0x200   : > { %v1331_v11 = vmul.f32 %v1330_v15, %v3357_v62  ;;  %v1333_v4 = vmul.f32 %v1330_v15, %v3372_v7 }
 0x201   : > { %v3801_v54 = vpop.permute.xlu1 %761  ;;  %v3803_v63 = vpop.permute.xlu0 %841 }
 0x202   : > { %5168 = vst [vmem:[#allocation61_spill] sm:$0xff] %v3801_v54  ;;  %5169 = vst [vmem:[#allocation62_spill] sm:$0xff] %v3803_v63 }
 0x203   : > { %1300 = vrot.lane.b32.xlu1 %v1292_v44, %s3094_s29  ;;  %1279 = vrot.lane.b32.xlu0 %v1271_v5, %s3094_s29  ;;  %v1310_v44 = vmul.f32 %v1309_v16, %v3450_v51 }
 0x205   : > { %v3807_v19 = vpop.permute.xlu1 %802  ;;  %v3809_v31 = vpop.permute.xlu0 %845  ;;  %v1579_v54 = vstv %s2707_s5  ;;  %s3105_s5 = smov 60  }
 0x206   : > { %5170 = vst [vmem:[#allocation63_spill] sm:$0xff] %v3807_v19  ;;  %5171 = vst [vmem:[#allocation64_spill] sm:$0xff] %v3809_v31 }
 0x207   : > { %1318 = vrot.lane.b32.xlu1 %v1311_v46, %s3095_s11  ;;  %1298 = vrot.lane.b32.xlu0 %v1291_v28, %s3094_s29  ;;  %v1312_v46 = vmul.f32 %v1309_v16, %v3470_v58  ;;  %v1350_v28 = vstv %s2697_s4  ;;  %s2706_s29 = sld [smem:[#allocation8 + $0x5e]]  ;;  %s3100_s4 = smov 29  }
 0x208   : > { %v1352_v19 = vmul.f32 %v1350_v28, %v3399_v20 }
 0x209   : > { %v3813_v63 = vpop.permute.xlu1 %843  ;;  %v3815_v43 = vpop.permute.xlu0 %882 }
 0x20a   : > { %5172 = vst [vmem:[#allocation65_spill] sm:$0xff] %v3813_v63  ;;  %5173 = vst [vmem:[#allocation66_spill] sm:$0xff] %v3815_v43 }
 0x20b   : > { %1337 = vrot.lane.b32.xlu1 %v1331_v11, %s3095_s11  ;;  %1316 = vrot.lane.b32.xlu0 %v1310_v44, %s3095_s11  ;;  %v1332_v11 = vmul.f32 %v1330_v15, %v3369_v6  ;;  %v1371_v44 = vstv %s2698_s10  ;;  %s2709_s10 = sld [smem:[#allocation8 + $0xb]] }
 0x20c   : > { %v1372_v16 = vmul.f32 %v1371_v44, %v3357_v62  ;;  %v1374_v15 = vmul.f32 %v1371_v44, %v3372_v7 }
 0x20d   : > { %v3819_v5 = vpop.permute.xlu1 %884  ;;  %v3821_v31 = vpop.permute.xlu0 %886 }
 0x20e   : > { %5174 = vst [vmem:[#allocation67_spill] sm:$0xff] %v3819_v5  ;;  %5175 = vst [vmem:[#allocation68_spill] sm:$0xff] %v3821_v31 }
 0x20f   : > { %1341 = vrot.lane.b32.xlu1 %v1333_v4, %s3095_s11  ;;  %1320 = vrot.lane.b32.xlu0 %v1312_v46, %s3095_s11  ;;  %v1351_v4 = vmul.f32 %v1350_v28, %v3450_v51 }
 0x211   : > { %v3825_v63 = vpop.permute.xlu1 %925  ;;  %v3827_v43 = vpop.permute.xlu0 %923  ;;  %v1620_v27 = vstv %s2709_s10  ;;  %s3106_s10 = smov 44  }
 0x212   : > { %5176 = vst [vmem:[#allocation69_spill] sm:$0xff] %v3825_v63  ;;  %5177 = vst [vmem:[#allocation70_spill] sm:$0xff] %v3827_v43 }
 0x213   : > { %1359 = vrot.lane.b32.xlu1 %v1352_v19, %s3096_s6  ;;  %1339 = vrot.lane.b32.xlu0 %v1332_v11, %s3095_s11  ;;  %v1353_v19 = vmul.f32 %v1350_v28, %v3470_v58  ;;  %v1391_v11 = vstv %s2699_s19  ;;  %s2708_s11 = sld [smem:[#allocation8 + $0x35]]  ;;  %s3101_s19 = smov 124  }
 0x214   : > { %v1393_v63 = vmul.f32 %v1391_v11, %v3399_v20 }
 0x215   : > { %v3831_v31 = vpop.permute.xlu1 %948  ;;  %v3833_v5 = vpop.permute.xlu0 %927 }
 0x216   : > { %5178 = vst [vmem:[#allocation71_spill] sm:$0xff] %v3831_v31  ;;  %5179 = vst [vmem:[#allocation72_spill] sm:$0xff] %v3833_v5 }
 0x217   : > { %1378 = vrot.lane.b32.xlu1 %v1372_v16, %s3096_s6  ;;  %1357 = vrot.lane.b32.xlu0 %v1351_v4, %s3096_s6  ;;  %v1373_v16 = vmul.f32 %v1371_v44, %v3369_v6  ;;  %v1412_v4 = vstv %s2700_s8  ;;  %s2711_s8 = sld [smem:[#allocation8 + $0x12]] }
 0x218   : > { %v1413_v28 = vmul.f32 %v1412_v4, %v3357_v62  ;;  %v1415_v44 = vmul.f32 %v1412_v4, %v3372_v7 }
 0x219   : > { %v3837_v46 = vpop.permute.xlu1 %990  ;;  %v3839_v43 = vpop.permute.xlu0 %946  ;;  %v1600_v59 = vstv %s2708_s11  ;;  %s2719_s11 = sld [smem:[#allocation8 + $0x2e]] }
 0x21a   : > { %5180 = vst [vmem:[#allocation73_spill] sm:$0xff] %v3837_v46  ;;  %5181 = vst [vmem:[#allocation74_spill] sm:$0xff] %v3839_v43 }
 0x21b   : > { %1382 = vrot.lane.b32.xlu1 %v1374_v15, %s3096_s6  ;;  %1361 = vrot.lane.b32.xlu0 %v1353_v19, %s3096_s6  ;;  %v1392_v15 = vmul.f32 %v1391_v11, %v3450_v51 }
 0x21d   : > { %v3843_v31 = vpop.permute.xlu1 %1009  ;;  %v3845_v5 = vpop.permute.xlu0 %988 }
 0x21e   : > { %5182 = vst [vmem:[#allocation75_spill] sm:$0xff] %v3843_v31  ;;  %5183 = vst [vmem:[#allocation76_spill] sm:$0xff] %v3845_v5 }
 0x21f   : > { %1400 = vrot.lane.b32.xlu1 %v1393_v63, %s3097_s28  ;;  %1380 = vrot.lane.b32.xlu0 %v1373_v16, %s3096_s6  ;;  %v1394_v63 = vmul.f32 %v1391_v11, %v3470_v58  ;;  %v1432_v16 = vstv %s2701_s21  ;;  %s2710_s6 = sld [smem:[#allocation8 + $0x3c]]  ;;  %s3102_s21 = smov 108  }
 0x220   : > { %v1434_v5 = vmul.f32 %v1432_v16, %v3399_v20 }
 0x221   : > { %v3849_v46 = vpop.permute.xlu1 %1013  ;;  %v3851_v43 = vpop.permute.xlu0 %992 }
 0x222   : > { %5184 = vst [vmem:[#allocation77_spill] sm:$0xff] %v3849_v46  ;;  %5185 = vst [vmem:[#allocation78_spill] sm:$0xff] %v3851_v43 }
 0x223   : > { %1419 = vrot.lane.b32.xlu1 %v1413_v28, %s3097_s28  ;;  %1398 = vrot.lane.b32.xlu0 %v1392_v15, %s3097_s28  ;;  %v1414_v28 = vmul.f32 %v1412_v4, %v3369_v6  ;;  %v1453_v15 = vstv %s2702_s20  ;;  %s2713_s20 = sld [smem:[#allocation8 + $0x19]] }
 0x224   : > { %v1454_v11 = vmul.f32 %v1453_v15, %v3357_v62  ;;  %v1456_v4 = vmul.f32 %v1453_v15, %v3372_v7 }
 0x225   : > { %v3855_v19 = vpop.permute.xlu1 %1031  ;;  %v3857_v31 = vpop.permute.xlu0 %1011 }
 0x226   : > { %5186 = vst [vmem:[#allocation79_spill] sm:$0xff] %v3855_v19  ;;  %5187 = vst [vmem:[#allocation80_spill] sm:$0xff] %v3857_v31 }
 0x227   : > { %1423 = vrot.lane.b32.xlu1 %v1415_v44, %s3097_s28  ;;  %1402 = vrot.lane.b32.xlu0 %v1394_v63, %s3097_s28  ;;  %v1433_v44 = vmul.f32 %v1432_v16, %v3450_v51 }
 0x229   : > { %v3861_v46 = vpop.permute.xlu1 %1050  ;;  %v3863_v43 = vpop.permute.xlu0 %1029 }
 0x22a   : > { %5188 = vst [vmem:[#allocation81_spill] sm:$0xff] %v3861_v46  ;;  %5189 = vst [vmem:[#allocation82_spill] sm:$0xff] %v3863_v43 }
 0x22b   : > { %1441 = vrot.lane.b32.xlu1 %v1434_v5, %s3098_s18  ;;  %1421 = vrot.lane.b32.xlu0 %v1414_v28, %s3097_s28  ;;  %v1435_v5 = vmul.f32 %v1432_v16, %v3470_v58  ;;  %v1473_v28 = vstv %s2703_s27  ;;  %s2712_s28 = sld [smem:[#allocation8 + $0x43]]  ;;  %s3103_s27 = smov 92  }
 0x22c   : > { %v1475_v43 = vmul.f32 %v1473_v28, %v3399_v20 }
 0x22d   : > { %v3867_v19 = vpop.permute.xlu1 %1054  ;;  %v3869_v31 = vpop.permute.xlu0 %1033 }
 0x22e   : > { %5190 = vst [vmem:[#allocation83_spill] sm:$0xff] %v3867_v19  ;;  %5191 = vst [vmem:[#allocation84_spill] sm:$0xff] %v3869_v31 }
 0x22f   : > { %1460 = vrot.lane.b32.xlu1 %v1454_v11, %s3098_s18  ;;  %1439 = vrot.lane.b32.xlu0 %v1433_v44, %s3098_s18  ;;  %v1455_v11 = vmul.f32 %v1453_v15, %v3369_v6  ;;  %v1494_v44 = vstv %s2704_s9  ;;  %s2715_s9 = sld [smem:[#allocation8 + $0x20]] }
 0x230   : > { %v1495_v16 = vmul.f32 %v1494_v44, %v3357_v62  ;;  %v1497_v15 = vmul.f32 %v1494_v44, %v3372_v7 }
 0x231   : > { %v3873_v63 = vpop.permute.xlu1 %1072  ;;  %v3875_v46 = vpop.permute.xlu0 %1052 }
 0x232   : > { %5192 = vst [vmem:[#allocation85_spill] sm:$0xff] %v3873_v63  ;;  %5193 = vst [vmem:[#allocation86_spill] sm:$0xff] %v3875_v46 }
 0x233   : > { %1464 = vrot.lane.b32.xlu1 %v1456_v4, %s3098_s18  ;;  %1443 = vrot.lane.b32.xlu0 %v1435_v5, %s3098_s18  ;;  %v1474_v4 = vmul.f32 %v1473_v28, %v3450_v51 }
 0x235   : > { %v3879_v19 = vpop.permute.xlu1 %1091  ;;  %v3881_v31 = vpop.permute.xlu0 %1070 }
 0x236   : > { %5194 = vst [vmem:[#allocation87_spill] sm:$0xff] %v3879_v19  ;;  %5195 = vst [vmem:[#allocation88_spill] sm:$0xff] %v3881_v31 }
 0x237   : > { %1482 = vrot.lane.b32.xlu1 %v1475_v43, %s3099_s22  ;;  %1462 = vrot.lane.b32.xlu0 %v1455_v11, %s3098_s18  ;;  %v1476_v43 = vmul.f32 %v1473_v28, %v3470_v58  ;;  %v1514_v11 = vstv %s2705_s25  ;;  %s2714_s18 = sld [smem:[#allocation8 + $0x4a]]  ;;  %s3104_s25 = smov 76  }
 0x238   : > { %v1516_v31 = vmul.f32 %v1514_v11, %v3399_v20 }
 0x239   : > { %v3885_v63 = vpop.permute.xlu1 %1095  ;;  %v3887_v46 = vpop.permute.xlu0 %1074 }
 0x23a   : > { %5196 = vst [vmem:[#allocation89_spill] sm:$0xff] %v3885_v63  ;;  %5197 = vst [vmem:[#allocation90_spill] sm:$0xff] %v3887_v46 }
 0x23b   : > { %1501 = vrot.lane.b32.xlu1 %v1495_v16, %s3099_s22  ;;  %1480 = vrot.lane.b32.xlu0 %v1474_v4, %s3099_s22  ;;  %v1496_v16 = vmul.f32 %v1494_v44, %v3369_v6  ;;  %v1535_v4 = vstv %s2706_s29  ;;  %s2717_s29 = sld [smem:[#allocation8 + $0x27]] }
 0x23d   : > { %v3891_v5 = vpop.permute.xlu1 %1113  ;;  %v3893_v19 = vpop.permute.xlu0 %1093 }
 0x23e   : > { %5198 = vst [vmem:[#allocation91_spill] sm:$0xff] %v3891_v5  ;;  %5199 = vst [vmem:[#allocation92_spill] sm:$0xff] %v3893_v19 }
 0x23f   : > { %1505 = vrot.lane.b32.xlu1 %v1497_v15, %s3099_s22  ;;  %1484 = vrot.lane.b32.xlu0 %v1476_v43, %s3099_s22  ;;  %v1536_v15 = vmul.f32 %v1535_v4, %v3357_v62  ;;  %v1515_v43 = vmul.f32 %v1514_v11, %v3450_v51 }
 0x241   : > { %v3897_v63 = vpop.permute.xlu1 %1132  ;;  %v3899_v46 = vpop.permute.xlu0 %1111 }
 0x242   : > { %5200 = vst [vmem:[#allocation93_spill] sm:$0xff] %v3897_v63  ;;  %5201 = vst [vmem:[#allocation94_spill] sm:$0xff] %v3899_v46  ;;  %v1555_v63 = vld [vmem:[#allocation9 + $0x4] ss:$8 sm:$0x7] }
 0x243   : > { %1523 = vrot.lane.b32.xlu1 %v1516_v31, %s3100_s4  ;;  %1503 = vrot.lane.b32.xlu0 %v1496_v16, %s3099_s22  ;;  %v1564_v44 = vrot.slane %v1555_v63, %v3345_v50  ;;  %v1538_v16 = vmul.f32 %v1535_v4, %v3372_v7  ;;  %v1560_v19 = vrot.slane %v1555_v63, %v3343_v49  ;;  %s2716_s22 = sld [smem:[#allocation8 + $0x51]] }
 0x245   : > { %v3904_v5 = vpop.permute.xlu1 %1136  ;;  %v3906_v28 = vpop.permute.xlu0 %1115  ;;  %v3933_v39 = vmul.f32 %v1560_v19, %v3357_v62  ;;  %v3936_v52 = vmul.f32 %v1560_v19, %v3450_v51 }
 0x246   : > { %5202 = vst [vmem:[#allocation95_spill] sm:$0xff] %v3904_v5  ;;  %5203 = vst [vmem:[#allocation96_spill] sm:$0xff] %v3906_v28  ;;  %v1517_v5 = vmul.f32 %v1514_v11, %v3470_v58  ;;  %v3920_v28 = vmul.f32 %v1564_v44, %v3399_v20  ;;  %v1537_v11 = vmul.f32 %v1535_v4, %v3369_v6 }
 0x247   : > { %1542 = vrot.lane.b32.xlu1 %v1536_v15, %s3100_s4  ;;  %1521 = vrot.lane.b32.xlu0 %v1515_v43, %s3100_s4  ;;  %v1568_v15 = vrot.slane %v1555_v63, %v3354_v60  ;;  %v1580_v4 = vmul.f32 %v1579_v54, %v3936_v52 }
 0x249   : > { %v3913_v46 = vpop.permute.xlu1 %1154  ;;  %v3915_v31 = vpop.permute.xlu0 %1134  ;;  %v3949_v19 = vmul.f32 %v1568_v15, %v3470_v58 }
 0x24a   : > { %5204 = vst [vmem:[#allocation97_spill] sm:$0xff] %v3913_v46  ;;  %5205 = vst [vmem:[#allocation98_spill] sm:$0xff] %v3915_v31  ;;  %v1581_v31 = vmul.f32 %v1579_v54, %v3920_v28 }
 0x24b   : > { %1546 = vrot.lane.b32.xlu1 %v1538_v16, %s3100_s4  ;;  %1525 = vrot.lane.b32.xlu0 %v1517_v5, %s3100_s4  ;;  %v1601_v16 = vmul.f32 %v1600_v59, %v3933_v39 }
 0x24d   : > { %v3926_v43 = vpop.permute.xlu1 %1173  ;;  %v3928_v46 = vpop.permute.xlu0 %1152 }
 0x24e   : > { %5206 = vst [vmem:[#allocation99_spill] sm:$0xff] %v3926_v43  ;;  %5207 = vst [vmem:[#allocation100_spill] sm:$0xff] %v3928_v46  ;;  %v3946_v43 = vmul.f32 %v1568_v15, %v3372_v7  ;;  %v3958_v46 = vmul.f32 %v1564_v44, %v3369_v6 }
 0x24f   : > { %1588 = vrot.lane.b32.xlu1 %v1581_v31, %s3101_s19  ;;  %1544 = vrot.lane.b32.xlu0 %v1537_v11, %s3100_s4  ;;  %s2718_s4 = sld [smem:[#allocation8 + $0x58]] }
 0x251   : > { %v3939_v63 = vpop.permute.xlu1 %1177  ;;  %v3941_v5 = vpop.permute.xlu0 %1156 }
 0x252   : > { %5208 = vst [vmem:[#allocation101_spill] sm:$0xff] %v3939_v63  ;;  %5209 = vst [vmem:[#allocation102_spill] sm:$0xff] %v3941_v5  ;;  %v1603_v63 = vmul.f32 %v1600_v59, %v3946_v43  ;;  %v1582_v5 = vmul.f32 %v1579_v54, %v3949_v19 }
 0x253   : > { %1607 = vrot.lane.b32.xlu1 %v1601_v16, %s3101_s19  ;;  %1586 = vrot.lane.b32.xlu0 %v1580_v4, %s3101_s19  ;;  %v1622_v16 = vmul.f32 %v1620_v27, %v3920_v28  ;;  %v1602_v4 = vmul.f32 %v1600_v59, %v3958_v46 }
 0x255   : > { %v3951_v31 = vpop.permute.xlu1 %1195  ;;  %v3953_v11 = vpop.permute.xlu0 %1175 }
 0x256   : > { %5210 = vst [vmem:[#allocation103_spill] sm:$0xff] %v3951_v31  ;;  %5211 = vst [vmem:[#allocation104_spill] sm:$0xff] %v3953_v11  ;;  %v1641_v31 = vstv %s2710_s6  ;;  %s2721_s6 = sld [smem:[#allocation8 + $0x5]] }
 0x257   : > { %1611 = vrot.lane.b32.xlu1 %v1603_v63, %s3101_s19  ;;  %1590 = vrot.lane.b32.xlu0 %v1582_v5, %s3101_s19  ;;  %v1642_v63 = vmul.f32 %v1641_v31, %v3933_v39  ;;  %v1621_v5 = vmul.f32 %v1620_v27, %v3936_v52  ;;  %v1644_v59 = vmul.f32 %v1641_v31, %v3946_v43 }
 0x259   : > { %v3960_v55 = vpop.permute.xlu1 %1214  ;;  %v3962_v15 = vpop.permute.xlu0 %1193 }
 0x25a   : > { %5212 = vst [vmem:[#allocation105_spill] sm:$0xff] %v3960_v55  ;;  %5213 = vst [vmem:[#allocation106_spill] sm:$0xff] %v3962_v15 }
 0x25b   : > { %1629 = vrot.lane.b32.xlu1 %v1622_v16, %s3102_s21  ;;  %1609 = vrot.lane.b32.xlu0 %v1602_v4, %s3101_s19  ;;  %v1623_v16 = vmul.f32 %v1620_v27, %v3949_v19  ;;  %v1661_v4 = vstv %s2711_s8  ;;  %s2720_s19 = sld [smem:[#allocation8 + $0x5f]]  ;;  %s3107_s8 = smov 28  }
 0x25c   : > { %v1663_v11 = vmul.f32 %v1661_v4, %v3920_v28 }
 0x25d   : > { %v3966_v54 = vpop.permute.xlu1 %1218  ;;  %v3968_v44 = vpop.permute.xlu0 %1197 }
 0x25e   : > { %5214 = vst [vmem:[#allocation107_spill] sm:$0xff] %v3966_v54  ;;  %5215 = vst [vmem:[#allocation108_spill] sm:$0xff] %v3968_v44 }
 0x25f   : > { %1648 = vrot.lane.b32.xlu1 %v1642_v63, %s3102_s21  ;;  %1627 = vrot.lane.b32.xlu0 %v1621_v5, %s3102_s21  ;;  %v1643_v63 = vmul.f32 %v1641_v31, %v3958_v46  ;;  %v1682_v5 = vstv %s2712_s28  ;;  %s4066_s28 = sld [smem:[#allocation8 + $0x31]] }
 0x260   : > { %v1683_v27 = vmul.f32 %v1682_v5, %v3933_v39  ;;  %v1685_v31 = vmul.f32 %v1682_v5, %v3946_v43 }
 0x261   : > { %v3972_v55 = vpop.permute.xlu1 %1236  ;;  %v3974_v15 = vpop.permute.xlu0 %1216 }
 0x262   : > { %5216 = vst [vmem:[#allocation109_spill] sm:$0xff] %v3972_v55  ;;  %5217 = vst [vmem:[#allocation110_spill] sm:$0xff] %v3974_v15 }
 0x263   : > { %1652 = vrot.lane.b32.xlu1 %v1644_v59, %s3102_s21  ;;  %1631 = vrot.lane.b32.xlu0 %v1623_v16, %s3102_s21  ;;  %v1662_v59 = vmul.f32 %v1661_v4, %v3936_v52 }
 0x265   : > { %v3978_v54 = vpop.permute.xlu1 %1255  ;;  %v3980_v44 = vpop.permute.xlu0 %1234 }
 0x266   : > { %5218 = vst [vmem:[#allocation111_spill] sm:$0xff] %v3978_v54  ;;  %5219 = vst [vmem:[#allocation112_spill] sm:$0xff] %v3980_v44 }
 0x267   : > { %1670 = vrot.lane.b32.xlu1 %v1663_v11, %s3103_s27  ;;  %1650 = vrot.lane.b32.xlu0 %v1643_v63, %s3102_s21  ;;  %v1664_v11 = vmul.f32 %v1661_v4, %v3949_v19  ;;  %v1702_v63 = vstv %s2713_s20  ;;  %s2722_s21 = sld [smem:[#allocation8 + $0x36]]  ;;  %s4078_s20 = sld [smem:[#allocation8 + $0x3d]] }
 0x268   : > { %v1704_v44 = vmul.f32 %v1702_v63, %v3920_v28 }
 0x269   : > { %v3984_v55 = vpop.permute.xlu1 %1259  ;;  %v3986_v15 = vpop.permute.xlu0 %1238 }
 0x26a   : > { %5220 = vst [vmem:[#allocation113_spill] sm:$0xff] %v3984_v55  ;;  %5221 = vst [vmem:[#allocation114_spill] sm:$0xff] %v3986_v15 }
 0x26b   : > { %1689 = vrot.lane.b32.xlu1 %v1683_v27, %s3103_s27  ;;  %1668 = vrot.lane.b32.xlu0 %v1662_v59, %s3103_s27  ;;  %v1684_v27 = vmul.f32 %v1682_v5, %v3958_v46  ;;  %v1723_v59 = vstv %s2714_s18  ;;  %s4082_s18 = sld [smem:[#allocation8 + $0x4b]] }
 0x26c   : > { %v1724_v4 = vmul.f32 %v1723_v59, %v3933_v39  ;;  %v1726_v5 = vmul.f32 %v1723_v59, %v3946_v43 }
 0x26d   : > { %v3990_v16 = vpop.permute.xlu1 %1277  ;;  %v3992_v54 = vpop.permute.xlu0 %1257 }
 0x26e   : > { %5222 = vst [vmem:[#allocation115_spill] sm:$0xff] %v3990_v16  ;;  %5223 = vst [vmem:[#allocation116_spill] sm:$0xff] %v3992_v54 }
 0x26f   : > { %1693 = vrot.lane.b32.xlu1 %v1685_v31, %s3103_s27  ;;  %1672 = vrot.lane.b32.xlu0 %v1664_v11, %s3103_s27  ;;  %v1703_v31 = vmul.f32 %v1702_v63, %v3936_v52 }
 0x271   : > { %v3996_v55 = vpop.permute.xlu1 %1296  ;;  %v3998_v15 = vpop.permute.xlu0 %1275 }
 0x272   : > { %5224 = vst [vmem:[#allocation117_spill] sm:$0xff] %v3996_v55  ;;  %5225 = vst [vmem:[#allocation118_spill] sm:$0xff] %v3998_v15 }
 0x273   : > { %1711 = vrot.lane.b32.xlu1 %v1704_v44, %s3104_s25  ;;  %1691 = vrot.lane.b32.xlu0 %v1684_v27, %s3103_s27  ;;  %v1705_v44 = vmul.f32 %v1702_v63, %v3949_v19  ;;  %v1743_v27 = vstv %s2715_s9  ;;  %s4080_s27 = sld [smem:[#allocation8 + $0x44]]  ;;  %s4084_s9 = sld [smem:[#allocation8 + $0x52]] }
 0x274   : > { %v1745_v15 = vmul.f32 %v1743_v27, %v3920_v28 }
 0x275   : > { %v4002_v16 = vpop.permute.xlu1 %1300  ;;  %v4004_v54 = vpop.permute.xlu0 %1279 }
 0x276   : > { %5226 = vst [vmem:[#allocation119_spill] sm:$0xff] %v4002_v16  ;;  %5227 = vst [vmem:[#allocation120_spill] sm:$0xff] %v4004_v54 }
 0x277   : > { %1730 = vrot.lane.b32.xlu1 %v1724_v4, %s3104_s25  ;;  %1709 = vrot.lane.b32.xlu0 %v1703_v31, %s3104_s25  ;;  %v1725_v4 = vmul.f32 %v1723_v59, %v3958_v46  ;;  %v1764_v31 = vstv %s2716_s22  ;;  %s4090_s22 = sld [smem:[#allocation8 + $0x60]] }
 0x278   : > { %v1765_v63 = vmul.f32 %v1764_v31, %v3933_v39  ;;  %v1767_v59 = vmul.f32 %v1764_v31, %v3946_v43 }
 0x279   : > { %v4008_v11 = vpop.permute.xlu1 %1318  ;;  %v4010_v55 = vpop.permute.xlu0 %1298 }
 0x27a   : > { %5228 = vst [vmem:[#allocation121_spill] sm:$0xff] %v4008_v11  ;;  %5229 = vst [vmem:[#allocation122_spill] sm:$0xff] %v4010_v55 }
 0x27b   : > { %1734 = vrot.lane.b32.xlu1 %v1726_v5, %s3104_s25  ;;  %1713 = vrot.lane.b32.xlu0 %v1705_v44, %s3104_s25  ;;  %v1744_v5 = vmul.f32 %v1743_v27, %v3936_v52 }
 0x27d   : > { %v4014_v16 = vpop.permute.xlu1 %1337  ;;  %v4016_v54 = vpop.permute.xlu0 %1316 }
 0x27e   : > { %5230 = vst [vmem:[#allocation123_spill] sm:$0xff] %v4014_v16  ;;  %5231 = vst [vmem:[#allocation124_spill] sm:$0xff] %v4016_v54 }
 0x27f   : > { %1752 = vrot.lane.b32.xlu1 %v1745_v15, %s3105_s5  ;;  %1732 = vrot.lane.b32.xlu0 %v1725_v4, %s3104_s25  ;;  %v1746_v15 = vmul.f32 %v1743_v27, %v3949_v19  ;;  %v1784_v4 = vstv %s2717_s29  ;;  %s4088_s25 = sld [smem:[#allocation8 + $0x59]]  ;;  %s4093_s29 = sld [smem:[#allocation8 + $0x37]] }
 0x280   : > { %v1786_v54 = vmul.f32 %v1784_v4, %v3920_v28 }
 0x281   : > { %v4020_v11 = vpop.permute.xlu1 %1341  ;;  %v4022_v55 = vpop.permute.xlu0 %1320 }
 0x282   : > { %5232 = vst [vmem:[#allocation125_spill] sm:$0xff] %v4020_v11  ;;  %5233 = vst [vmem:[#allocation126_spill] sm:$0xff] %v4022_v55 }
 0x283   : > { %1771 = vrot.lane.b32.xlu1 %v1765_v63, %s3105_s5  ;;  %1750 = vrot.lane.b32.xlu0 %v1744_v5, %s3105_s5  ;;  %v1766_v63 = vmul.f32 %v1764_v31, %v3958_v46  ;;  %v1805_v5 = vstv %s2718_s4  ;;  %s4109_s4 = sld [smem:[#allocation8 + $0xc]] }
 0x284   : > { %v1806_v27 = vmul.f32 %v1805_v5, %v3933_v39  ;;  %v1808_v31 = vmul.f32 %v1805_v5, %v3946_v43 }
 0x285   : > { %v4026_v44 = vpop.permute.xlu1 %1359  ;;  %v4028_v16 = vpop.permute.xlu0 %1339  ;;  %v4165_v32 = vstv %s4093_s29  ;;  %s3116_s29 = smov 106  }
 0x286   : > { %5234 = vst [vmem:[#allocation127_spill] sm:$0xff] %v4026_v44  ;;  %5235 = vst [vmem:[#allocation128_spill] sm:$0xff] %v4028_v16 }
 0x287   : > { %1775 = vrot.lane.b32.xlu1 %v1767_v59, %s3105_s5  ;;  %1754 = vrot.lane.b32.xlu0 %v1746_v15, %s3105_s5  ;;  %v1785_v59 = vmul.f32 %v1784_v4, %v3936_v52  ;;  %5255 = vst [vmem:[#allocation148_spill] sm:$0xff] %v4165_v32 }
 0x289   : > { %v4032_v11 = vpop.permute.xlu1 %1378  ;;  %v4034_v55 = vpop.permute.xlu0 %1357  ;;  %v1931_v22 = vstv %s4109_s4  ;;  %s2741_s4 = sld [smem:[#allocation8 + $0x1b]] }
 0x28a   : > { %5236 = vst [vmem:[#allocation129_spill] sm:$0xff] %v4032_v11  ;;  %5237 = vst [vmem:[#allocation130_spill] sm:$0xff] %v4034_v55 }
 0x28b   : > { %1793 = vrot.lane.b32.xlu1 %v1786_v54, %s3106_s10  ;;  %1773 = vrot.lane.b32.xlu0 %v1766_v63, %s3105_s5  ;;  %v1787_v54 = vmul.f32 %v1784_v4, %v3949_v19  ;;  %v1825_v63 = vstv %s2719_s11  ;;  %s4095_s5 = sld [smem:[#allocation8]]  ;;  %s4111_s11 = sld [smem:[#allocation8 + $0x13]] }
 0x28c   : > { %v1827_v55 = vmul.f32 %v1825_v63, %v3920_v28 }
 0x28d   : > { %v4038_v44 = vpop.permute.xlu1 %1382  ;;  %v4040_v16 = vpop.permute.xlu0 %1361 }
 0x28e   : > { %5238 = vst [vmem:[#allocation131_spill] sm:$0xff] %v4038_v44  ;;  %5239 = vst [vmem:[#allocation132_spill] sm:$0xff] %v4040_v16 }
 0x28f   : > { %1812 = vrot.lane.b32.xlu1 %v1806_v27, %s3106_s10  ;;  %1791 = vrot.lane.b32.xlu0 %v1785_v59, %s3106_s10  ;;  %v1807_v27 = vmul.f32 %v1805_v5, %v3958_v46  ;;  %v1846_v59 = vstv %s2720_s19  ;;  %s3108_s19 = smov 123  }
 0x291   : > { %v4044_v15 = vpop.permute.xlu1 %1400  ;;  %v4046_v11 = vpop.permute.xlu0 %1380  ;;  %v388_v42 = vstv %s4095_s5  ;;  %s2740_s5 = sld [smem:[#allocation8 + $0x45]] }
 0x292   : > { %5240 = vst [vmem:[#allocation133_spill] sm:$0xff] %v4044_v15  ;;  %5241 = vst [vmem:[#allocation134_spill] sm:$0xff] %v4046_v11  ;;  %v4147_v11 = vstv %s4088_s25  ;;  %v4201_v34 = vmul.f32 %v388_v42, %v3408_v24  ;;  %s4834_s25 = sld [smem:[#allocation8 + $0x3e]] }
 0x293   : > { %1816 = vrot.lane.b32.xlu1 %v1808_v31, %s3106_s10  ;;  %1795 = vrot.lane.b32.xlu0 %v1787_v54, %s3106_s10  ;;  %v1847_v31 = vmul.f32 %v1846_v59, %v3933_v39  ;;  %v1826_v54 = vmul.f32 %v1825_v63, %v3936_v52  ;;  %v1828_v39 = vmul.f32 %v1825_v63, %v3949_v19 }
 0x295   : > { %v4050_v44 = vpop.permute.xlu1 %1419  ;;  %v4052_v16 = vpop.permute.xlu0 %1398 }
 0x296   : > { %5242 = vst [vmem:[#allocation135_spill] sm:$0xff] %v4050_v44  ;;  %5243 = vst [vmem:[#allocation136_spill] sm:$0xff] %v4052_v16  ;;  %v1866_v44 = vld [vmem:[#allocation9 + $0x5] ss:$8 sm:$0x7]  ;;  %v4144_v16 = vstv %s4084_s9  ;;  %s3115_s9 = smov 122  }
 0x297   : > { %1834 = vrot.lane.b32.xlu1 %v1827_v55, %s3107_s8  ;;  %1814 = vrot.lane.b32.xlu0 %v1807_v27, %s3106_s10  ;;  %v1875_v28 = vrot.slane %v1866_v44, %v3345_v50  ;;  %v1849_v27 = vmul.f32 %v1846_v59, %v3946_v43  ;;  %v1879_v43 = vrot.slane %v1866_v44, %v3354_v60  ;;  %s4113_s10 = sld [smem:[#allocation8 + $0x1a]] }
 0x299   : > { %v4057_v15 = vpop.permute.xlu1 %1423  ;;  %v4059_v4 = vpop.permute.xlu0 %1402  ;;  %v4075_v52 = vmul.f32 %v1875_v28, %v3399_v20  ;;  %v4162_v12 = vmul.f32 %v1875_v28, %v3369_v6  ;;  %v4184_v28 = vstv %s4121_s1  ;;  %s3110_s1 = smov 91  }
 0x29a   : > { %5244 = vst [vmem:[#allocation137_spill] sm:$0xff] %v4057_v15  ;;  %5245 = vst [vmem:[#allocation138_spill] sm:$0xff] %v4059_v4  ;;  %v1871_v15 = vrot.slane %v1866_v44, %v3343_v49  ;;  %v1911_v44 = vstv %s2722_s21  ;;  %s4123_s21 = sld [smem:[#allocation8 + $0x6]]  ;;  %v1952_v4 = vstv %s4078_s20  ;;  %s3112_s20 = smov 59  }
 0x29b   : > { %1853 = vrot.lane.b32.xlu1 %v1847_v31, %s3107_s8  ;;  %1832 = vrot.lane.b32.xlu0 %v1826_v54, %s3107_s8  ;;  %v1890_v31 = vstv %s2721_s6  ;;  %s4117_s6 = sld [smem:[#allocation8 + $0x21]] }
 0x29c   : > { %v1892_v54 = vmul.f32 %v1890_v31, %v4075_v52 }
 0x29d   : > { %v4068_v55 = vpop.permute.xlu1 %1441  ;;  %v4070_v5 = vpop.permute.xlu0 %1421 }
 0x29e   : > { %5246 = vst [vmem:[#allocation139_spill] sm:$0xff] %v4068_v55  ;;  %5247 = vst [vmem:[#allocation140_spill] sm:$0xff] %v4070_v5  ;;  %v4107_v55 = vmul.f32 %v1871_v15, %v3450_v51  ;;  %v394_v5 = vstv %s4066_s28  ;;  %s3111_s28 = smov 75  }
 0x29f   : > { %1857 = vrot.lane.b32.xlu1 %v1849_v27, %s3107_s8  ;;  %1836 = vrot.lane.b32.xlu0 %v1828_v39, %s3107_s8  ;;  %v1848_v27 = vmul.f32 %v1846_v59, %v3958_v46  ;;  %v4104_v39 = vmul.f32 %v1871_v15, %v3357_v62  ;;  %v1972_v62 = vstv %s4111_s11  ;;  %s3117_s11 = smov 90  }
 0x2a0   : > { %v4187_v6 = vstv %s4123_s21  ;;  %s2744_s21 = sld [smem:[#allocation8 + $0x53]] }
 0x2a1   : > { %v4097_v19 = vpop.permute.xlu1 %1460  ;;  %v4099_v63 = vpop.permute.xlu0 %1439  ;;  %v1912_v59 = vmul.f32 %v1911_v44, %v4104_v39  ;;  %5257 = vst [vmem:[#allocation150_spill] sm:$0xff] %v4187_v6  ;;  %v1953_v6 = vmul.f32 %v1952_v4, %v4104_v39 }
 0x2a2   : > { %5248 = vst [vmem:[#allocation141_spill] sm:$0xff] %v4097_v19  ;;  %5249 = vst [vmem:[#allocation142_spill] sm:$0xff] %v4099_v63  ;;  %v4135_v19 = vmul.f32 %v1879_v43, %v3470_v58  ;;  %v2177_v63 = vld [vmem:[#allocation9 + $0x6] ss:$8 sm:$0x7] }
 0x2a3   : > { %1899 = vrot.lane.b32.xlu1 %v1892_v54, %s3108_s19  ;;  %1855 = vrot.lane.b32.xlu0 %v1848_v27, %s3107_s8  ;;  %v1891_v54 = vmul.f32 %v1890_v31, %v4107_v55  ;;  %v4132_v27 = vmul.f32 %v1879_v43, %v3372_v7  ;;  %v4150_v43 = vstv %s4090_s22  ;;  %v4153_v58 = vrot.slane %v2177_v63, %v3343_v49  ;;  %s4181_s8 = sld [smem:[#allocation8 + $0xd]]  ;;  %s2739_s22 = sld [smem:[#allocation8 + $0x14]] }
 0x2a4   : > { %v1893_v51 = vmul.f32 %v1890_v31, %v4135_v19  ;;  %v2013_v49 = vstv %s4113_s10  ;;  %v4179_v31 = vrot.slane %v2177_v63, %v3354_v60  ;;  %v1913_v60 = vmul.f32 %v1911_v44, %v4162_v12  ;;  %s2742_s10 = sld [smem:[#allocation8 + $0x4c]] }
 0x2a5   : > { %v4125_v46 = vpop.permute.xlu1 %1464  ;;  %v4127_v15 = vpop.permute.xlu0 %1443  ;;  %5252 = vst [vmem:[#allocation145_spill] sm:$0xff] %v4153_v58  ;;  %v4176_v58 = vrot.slane %v2177_v63, %v3345_v50  ;;  %v1933_v50 = vmul.f32 %v1931_v22, %v4075_v52  ;;  %v396_v63 = vmul.f32 %v394_v5, %v3380_v9  ;;  %v1934_v9 = vmul.f32 %v1931_v22, %v4135_v19 }
 0x2a6   : > { %5250 = vst [vmem:[#allocation143_spill] sm:$0xff] %v4125_v46  ;;  %5251 = vst [vmem:[#allocation144_spill] sm:$0xff] %v4127_v15  ;;  %v1993_v46 = vstv %s4080_s27  ;;  %v2034_v15 = vstv %s4082_s18  ;;  %s3113_s27 = smov 43   ;;  %s3114_s18 = smov 27  }
 0x2a7   : > { %1918 = vrot.lane.b32.xlu1 %v1912_v59, %s3108_s19  ;;  %1897 = vrot.lane.b32.xlu0 %v1891_v54, %s3108_s19  ;;  %v1914_v54 = vmul.f32 %v1911_v44, %v4132_v27  ;;  %5256 = vst [vmem:[#allocation149_spill] sm:$0xff] %v4179_v31  ;;  %v4198_v31 = vmul.f32 %v388_v42, %v3466_v57 }
 0x2a8   : > { %v1955_v44 = vmul.f32 %v1952_v4, %v4132_v27  ;;  %v1974_v57 = vmul.f32 %v1972_v62, %v4075_v52  ;;  %v4212_v24 = vmul.f32 %v1993_v46, %v4104_v39  ;;  %v4215_v42 = vmul.f32 %v1972_v62, %v4107_v55 }
 0x2a9   : > { %v4155_v7 = vpop.permute.xlu1 %1482  ;;  %v4157_v59 = vpop.permute.xlu0 %1462  ;;  %v4234_v33 = vmul.f32 %v2034_v15, %v4104_v39 }
 0x2aa   : > { %5253 = vst [vmem:[#allocation146_spill] sm:$0xff] %v4155_v7  ;;  %5254 = vst [vmem:[#allocation147_spill] sm:$0xff] %v4157_v59  ;;  %v2054_v7 = vstv %s4117_s6  ;;  %v2095_v59 = vstv %s4119_s0  ;;  %s3109_s0 = smov 107   ;;  %s3118_s6 = smov 74  }
 0x2ab   : > { %1922 = vrot.lane.b32.xlu1 %v1914_v54, %s3108_s19  ;;  %1901 = vrot.lane.b32.xlu0 %v1893_v51, %s3108_s19  ;;  %v395_v54 = vmul.f32 %v394_v5, %v3361_v0  ;;  %v1932_v0 = vmul.f32 %v1931_v22, %v4107_v55  ;;  %v1954_v5 = vmul.f32 %v1952_v4, %v4162_v12 }
 0x2ac   : > { %v4225_v22 = vmul.f32 %v1972_v62, %v4135_v19  ;;  %v4231_v4 = vmul.f32 %v1993_v46, %v4162_v12  ;;  %5263 = vst [vmem:[#allocation156_spill] sm:$0xff] %v4234_v33  ;;  %v4248_v62 = vmul.f32 %v2054_v7, %v4075_v52  ;;  %v4258_v33 = vstv %s4181_s8  ;;  %s2745_s8 = sld [smem:[#allocation8 + $0x29]] }
 0x2ad   : > { %v4190_v51 = vpop.permute.xlu1 %1501  ;;  %v4192_v32 = vpop.permute.xlu0 %1480  ;;  %5267 = vst [vmem:[#allocation160_spill] sm:$0xff] %v4258_v33  ;;  %v4278_v33 = vmul.f32 %v2095_v59, %v4075_v52 }
 0x2ae   : > { %5258 = vst [vmem:[#allocation151_spill] sm:$0xff] %v4190_v51  ;;  %5259 = vst [vmem:[#allocation152_spill] sm:$0xff] %v4192_v32  ;;  %v4228_v32 = vmul.f32 %v2013_v49, %v4075_v52 }
 0x2af   : > { %1940 = vrot.lane.b32.xlu1 %v1933_v50, %s3109_s0  ;;  %1920 = vrot.lane.b32.xlu0 %v1913_v60, %s3108_s19  ;;  %v4222_v60 = vmul.f32 %v1993_v46, %v4132_v27  ;;  %v4251_v46 = vmul.f32 %v2034_v15, %v4162_v12  ;;  %s2743_s19 = sld [smem:[#allocation8 + $0x22]] }
 0x2b1   : > { %v4217_v51 = vpop.permute.xlu1 %1505  ;;  %v4219_v50 = vpop.permute.xlu0 %1484  ;;  %5262 = vst [vmem:[#allocation155_spill] sm:$0xff] %v4222_v60  ;;  %v4243_v60 = vmul.f32 %v2013_v49, %v4135_v19  ;;  %5265 = vst [vmem:[#allocation158_spill] sm:$0xff] %v4251_v46 }
 0x2b2   : > { %5260 = vst [vmem:[#allocation153_spill] sm:$0xff] %v4217_v51  ;;  %5261 = vst [vmem:[#allocation154_spill] sm:$0xff] %v4219_v50  ;;  %v4237_v51 = vmul.f32 %v2013_v49, %v4107_v55  ;;  %v4240_v50 = vmul.f32 %v2034_v15, %v4132_v27  ;;  %v434_v49 = vsel %vm413_vm3, %v3561_v2, %v3569_v10 }
 0x2b3   : > { %1959 = vrot.lane.b32.xlu1 %v1953_v6, %s3109_s0  ;;  %1938 = vrot.lane.b32.xlu0 %v1932_v0, %s3109_s0  ;;  %v4264_v6 = vmul.f32 %v2054_v7, %v4107_v55  ;;  %v4268_v0 = vmul.f32 %v4144_v16, %v4132_v27  ;;  %v4271_v15 = vmul.f32 %v2054_v7, %v4135_v19 }
 0x2b4   : > { %5264 = vst [vmem:[#allocation157_spill] sm:$0xff] %v4237_v51  ;;  %v4255_v51 = vmul.f32 %v4144_v16, %v4104_v39  ;;  %v4282_v2 = vmul.f32 %v4144_v16, %v4162_v12  ;;  %v435_v7 = vsel %vm413_vm3, %v3569_v10, %v3567_v8  ;;  %v4302_v16 = vmul.f32 %v2095_v59, %v4135_v19 }
 0x2b5   : > { %5268 = vst [vmem:[#allocation161_spill] sm:$0xff] %v4264_v6  ;;  %5269 = vst [vmem:[#allocation162_spill] sm:$0xff] %v4268_v0  ;;  %v4273_v46 = vpop.permute.xlu1 %1523  ;;  %v4286_v6 = vmul.f32 %v4147_v11, %v4104_v39  ;;  %v4289_v0 = vmul.f32 %v2095_v59, %v4107_v55  ;;  %v4308_v8 = vmul.f32 %v4184_v28, %v4075_v52 }
 0x2b6   : > { %5266 = vst [vmem:[#allocation159_spill] sm:$0xff] %v4255_v51  ;;  %5270 = vst [vmem:[#allocation163_spill] sm:$0xff] %v4273_v46  ;;  %v4275_v51 = vpop.permute.xlu0 %1503  ;;  %v475_v46 = vsel %vm454_vm4, %v3575_v14, %v3577_v1  ;;  %v4312_v10 = vmul.f32 %v4147_v11, %v4162_v12  ;;  %v476_v14 = vsel %vm454_vm4, %v3577_v1, %v3583_v17 }
 0x2b7   : > { %5271 = vst [vmem:[#allocation164_spill] sm:$0xff] %v4275_v51  ;;  %5272 = vst [vmem:[#allocation165_spill] sm:$0xff] %v4282_v2  ;;  %v4299_v51 = vmul.f32 %v4147_v11, %v4132_v27  ;;  %v438_v2 = vadd.f32 %v434_v49, %v395_v54  ;;  %1963 = vrot.lane.b32.xlu1 %v1955_v44, %s3109_s0  ;;  %1942 = vrot.lane.b32.xlu0 %v1934_v9, %s3109_s0 }
 0x2b8   : > { %v516_v59 = vsel %vm495_vm5, %v3591_v23, %v3585_v18  ;;  %v4322_v54 = vmul.f32 %v4150_v43, %v4104_v39  ;;  %v4326_v52 = vmul.f32 %v4184_v28, %v4107_v55  ;;  %v439_v44 = vadd.f32 %v435_v7, %v396_v63 }
 0x2b9   : > { %v479_v9 = vadd.f32 %v475_v46, %v438_v2  ;;  %v4328_v11 = vpop.permute.xlu1 %1542  ;;  %v4334_v1 = vmul.f32 %v4150_v43, %v4132_v27  ;;  %v4338_v17 = vmul.f32 %v4184_v28, %v4135_v19  ;;  %v517_v23 = vsel %vm495_vm5, %v3585_v18, %v3599_v29 }
 0x2ba   : > { %v4330_v49 = vpop.permute.xlu0 %1521  ;;  %v557_v55 = vsel %vm536_vm6, %v3607_v35, %v3593_v25  ;;  %v414_v39 = vsel %vm413_vm3, %v3683_v53, %v3753_v36  ;;  %v415_v27 = vsel %vm413_vm3, %v3753_v36, %v3689_v56  ;;  %v480_v63 = vadd.f32 %v476_v14, %v439_v44 }
 0x2bb   : > { %v520_v46 = vadd.f32 %v516_v59, %v479_v9  ;;  %1981 = vrot.lane.b32.xlu1 %v1974_v57, %s3110_s1  ;;  %1961 = vrot.lane.b32.xlu0 %v1954_v5, %s3109_s0  ;;  %v4356_v18 = vmul.f32 %v4176_v58, %v3399_v20  ;;  %v558_v29 = vsel %vm536_vm6, %v3593_v25, %v3615_v41  ;;  %v5280_v9 = vld [vmem:[#allocation23_spill] sm:$0xff]  ;;  %vm1076_vm3 = vcmask 769024   ;;  %s3119_s0 = smov 58  }
 0x2bc   : > { %v455_v36 = vsel %vm454_vm4, %v3695_v47, %v3759_v26  ;;  %v456_v35 = vsel %vm454_vm4, %v3759_v26, %v3701_v38  ;;  %v4369_v53 = vmul.f32 %v4150_v43, %v4162_v12  ;;  %v521_v56 = vadd.f32 %v517_v23, %v480_v63  ;;  %v5281_v23 = vld [vmem:[#allocation29_spill] sm:$0xff]  ;;  %v5284_v63 = vld [vmem:[#allocation44_spill] sm:$0xff] }
 0x2bd   : > { %5273 = vst [vmem:[#allocation166_spill] sm:$0xff] %v4356_v18  ;;  %v561_v19 = vadd.f32 %v557_v55, %v520_v46  ;;  %v418_v20 = vadd.f32 %v414_v39, %v4198_v31  ;;  %v419_v28 = vadd.f32 %v415_v27, %v4201_v34  ;;  %v4373_v57 = vpop.permute.xlu1 %1546  ;;  %v598_v41 = vsel %vm577_vm7, %v3623_v48, %v3601_v30  ;;  %v5274_v48 = vld [vmem:[#allocation38_spill] sm:$0xff]  ;;  %v5277_v31 = vld [vmem:[#allocation145_spill] sm:$0xff] }
 0x2be   : > { %v4375_v25 = vpop.permute.xlu0 %1525  ;;  %v599_v47 = vsel %vm577_vm7, %v3601_v30, %v3632_v61  ;;  %v496_v12 = vsel %vm495_vm5, %v3707_v45, %v3765_v40  ;;  %v497_v38 = vsel %vm495_vm5, %v3765_v40, %v3713_v3  ;;  %v562_v34 = vadd.f32 %v558_v29, %v521_v56  ;;  %v5275_v45 = vld [vmem:[#allocation40_spill] sm:$0xff]  ;;  %v5276_v40 = vld [vmem:[#allocation18_spill] sm:$0xff]  ;;  %v5282_v55 = vld [vmem:[#allocation53_spill] sm:$0xff] }
 0x2bf   : > { %v459_v26 = vadd.f32 %v455_v36, %v418_v20  ;;  %v460_v43 = vadd.f32 %v456_v35, %v419_v28  ;;  %2000 = vrot.lane.b32.xlu1 %v4212_v24, %s3110_s1  ;;  %1979 = vrot.lane.b32.xlu0 %v4215_v42, %s3110_s1  ;;  %v639_v30 = vsel %vm618_vm8, %v3646_v13, %v3609_v37  ;;  %v5279_v13 = vld [vmem:[#allocation27_spill] sm:$0xff]  ;;  %v5283_v39 = vld [vmem:[#allocation42_spill] sm:$0xff]  ;;  %vm1117_vm4 = vcmask 637952  }
 0x2c0   : > { %v537_v61 = vsel %vm536_vm6, %v5274_v48, %v3771_v21  ;;  %v538_v3 = vsel %vm536_vm6, %v3771_v21, %v5275_v45  ;;  %v4404_v5 = vmul.f32 %v5277_v31, %v5276_v40  ;;  %v602_v24 = vadd.f32 %v598_v41, %v561_v19  ;;  %v5285_v56 = vld [vmem:[#allocation155_spill] sm:$0xff]  ;;  %v5288_v28 = vld [vmem:[#allocation46_spill] sm:$0xff]  ;;  %v5291_v45 = vld [vmem:[#allocation24_spill] sm:$0xff] }
 0x2c1   : > { %v603_v2 = vadd.f32 %v599_v47, %v562_v34  ;;  %v500_v7 = vadd.f32 %v496_v12, %v459_v26  ;;  %v501_v42 = vadd.f32 %v497_v38, %v460_v43  ;;  %v4406_v14 = vpop.permute.xlu1 %1588  ;;  %v640_v44 = vsel %vm618_vm8, %v3609_v37, %v5279_v13  ;;  %v5286_v37 = vld [vmem:[#allocation31_spill] sm:$0xff]  ;;  %v5289_v47 = vld [vmem:[#allocation48_spill] sm:$0xff]  ;;  %v5290_v38 = vld [vmem:[#allocation21_spill] sm:$0xff] }
 0x2c2   : > { %5278 = vst [vmem:[#allocation38_spill] sm:$0xff] %v4404_v5  ;;  %v4408_v59 = vpop.permute.xlu0 %1544  ;;  %v704_v21 = vsel %vm683_vm9, %v5281_v23, %v5280_v9  ;;  %v578_v27 = vsel %vm577_vm7, %v5283_v39, %v5282_v55  ;;  %v579_v46 = vsel %vm577_vm7, %v5282_v55, %v5284_v63  ;;  %v643_v29 = vadd.f32 %v639_v30, %v602_v24  ;;  %v5287_v20 = vld [vmem:[#allocation55_spill] sm:$0xff]  ;;  %v5293_v24 = vld [vmem:[#allocation33_spill] sm:$0xff]  ;;  %v5298_v39 = vld [vmem:[#allocation34_spill] sm:$0xff] }
 0x2c3   : > { %v541_v36 = vadd.f32 %v537_v61, %v500_v7  ;;  %v542_v35 = vadd.f32 %v538_v3, %v501_v42  ;;  %2004 = vrot.lane.b32.xlu1 %v5285_v56, %s3110_s1  ;;  %1983 = vrot.lane.b32.xlu0 %v4225_v22, %s3110_s1  ;;  %v705_v19 = vsel %vm683_vm9, %v5280_v9, %v5286_v37  ;;  %v5292_v3 = vld [vmem:[#allocation32_spill] sm:$0xff]  ;;  %v5294_v42 = vld [vmem:[#allocation57_spill] sm:$0xff]  ;;  %v5299_v63 = vld [vmem:[#allocation59_spill] sm:$0xff]  ;;  %vm1158_vm5 = vcmask 506880  }
 0x2c4   : > { %v619_v41 = vsel %vm618_vm8, %v5288_v28, %v5287_v20  ;;  %v620_v12 = vsel %vm618_vm8, %v5287_v20, %v5289_v47  ;;  %v4437_v34 = vmul.f32 %v5277_v31, %v5290_v38  ;;  %v644_v26 = vadd.f32 %v640_v44, %v603_v2  ;;  %v5295_v13 = vld [vmem:[#allocation49_spill] sm:$0xff]  ;;  %v5296_v2 = vld [vmem:[#allocation50_spill] sm:$0xff]  ;;  %v5302_v56 = vld [vmem:[#allocation20_spill] sm:$0xff] }
 0x2c5   : > { %v708_v43 = vadd.f32 %v704_v21, %v643_v29  ;;  %v582_v30 = vadd.f32 %v578_v27, %v541_v36  ;;  %v583_v22 = vadd.f32 %v579_v46, %v542_v35  ;;  %v4439_v48 = vpop.permute.xlu1 %1607  ;;  %v745_v40 = vsel %vm724_vm10, %v5292_v3, %v5291_v45  ;;  %v5297_v55 = vld [vmem:[#allocation25_spill] sm:$0xff]  ;;  %v5300_v46 = vld [vmem:[#allocation51_spill] sm:$0xff]  ;;  %v5301_v36 = vld [vmem:[#allocation52_spill] sm:$0xff] }
 0x2c6   : > { %v4441_v61 = vpop.permute.xlu0 %1586  ;;  %v746_v7 = vsel %vm724_vm10, %v5291_v45, %v5293_v24  ;;  %v684_v31 = vsel %vm683_vm9, %v5295_v13, %v5294_v42  ;;  %v685_v44 = vsel %vm683_vm9, %v5294_v42, %v5296_v2  ;;  %v709_v9 = vadd.f32 %v705_v19, %v644_v26  ;;  %v5303_v37 = vld [vmem:[#allocation149_spill] sm:$0xff]  ;;  %v5305_v26 = vld [vmem:[#allocation26_spill] sm:$0xff] }
 0x2c7   : > { %v623_v23 = vadd.f32 %v619_v41, %v582_v30  ;;  %v624_v21 = vadd.f32 %v620_v12, %v583_v22  ;;  %2022 = vrot.lane.b32.xlu1 %v4228_v32, %s3111_s28  ;;  %2002 = vrot.lane.b32.xlu0 %v4231_v4, %s3110_s1  ;;  %v786_v27 = vsel %vm765_vm11, %v5298_v39, %v5297_v55  ;;  %v5304_v12 = vld [vmem:[#allocation35_spill] sm:$0xff]  ;;  %v5306_v30 = vld [vmem:[#allocation36_spill] sm:$0xff]  ;;  %v5307_v45 = vld [vmem:[#allocation61_spill] sm:$0xff]  ;;  %vm1199_vm6 = vcmask 375808   ;;  %s2746_s1 = sld [smem:[#allocation8 + $0x5a]] }
 0x2c8   : > { %v725_v29 = vsel %vm724_vm10, %v5300_v46, %v5299_v63  ;;  %v726_v35 = vsel %vm724_vm10, %v5299_v63, %v5301_v36  ;;  %v4470_v19 = vmul.f32 %v5303_v37, %v5302_v56  ;;  %v749_v32 = vadd.f32 %v745_v40, %v708_v43  ;;  %v5308_v3 = vld [vmem:[#allocation54_spill] sm:$0xff]  ;;  %v5309_v43 = vld [vmem:[#allocation56_spill] sm:$0xff]  ;;  %v5311_v2 = vld [vmem:[#allocation157_spill] sm:$0xff] }
 0x2c9   : > { %v750_v20 = vadd.f32 %v746_v7, %v709_v9  ;;  %v688_v28 = vadd.f32 %v684_v31, %v623_v23  ;;  %v689_v4 = vadd.f32 %v685_v44, %v624_v21  ;;  %v4472_v41 = vpop.permute.xlu1 %1611  ;;  %v787_v38 = vsel %vm765_vm11, %v5297_v55, %v5304_v12  ;;  %v5310_v31 = vld [vmem:[#allocation156_spill] sm:$0xff]  ;;  %v5312_v44 = vld [vmem:[#allocation37_spill] sm:$0xff]  ;;  %v5313_v23 = vld [vmem:[#allocation63_spill] sm:$0xff] }
 0x2ca   : > { %v4474_v47 = vpop.permute.xlu0 %1590  ;;  %v827_v22 = vsel %vm806_vm12, %v5306_v30, %v5305_v26  ;;  %v766_v24 = vsel %vm765_vm11, %v5308_v3, %v5307_v45  ;;  %v767_v40 = vsel %vm765_vm11, %v5307_v45, %v5309_v43  ;;  %v790_v7 = vadd.f32 %v786_v27, %v749_v32  ;;  %v5314_v21 = vld [vmem:[#allocation58_spill] sm:$0xff]  ;;  %v5315_v39 = vld [vmem:[#allocation60_spill] sm:$0xff]  ;;  %v5318_v12 = vld [vmem:[#allocation39_spill] sm:$0xff] }
 0x2cb   : > { %v729_v42 = vadd.f32 %v725_v29, %v688_v28  ;;  %v730_v13 = vadd.f32 %v726_v35, %v689_v4  ;;  %2041 = vrot.lane.b32.xlu1 %v5310_v31, %s3111_s28  ;;  %2020 = vrot.lane.b32.xlu0 %v5311_v2, %s3111_s28  ;;  %v828_v9 = vsel %vm806_vm12, %v5305_v26, %v5312_v44  ;;  %v5316_v63 = vld [vmem:[#allocation22_spill] sm:$0xff]  ;;  %v5317_v4 = vld [vmem:[#allocation28_spill] sm:$0xff]  ;;  %v5319_v30 = vld [vmem:[#allocation41_spill] sm:$0xff]  ;;  %vm1240_vm7 = vcmask 244736  }
 0x2cc   : > { %v807_v55 = vsel %vm806_vm12, %v5314_v21, %v5313_v23  ;;  %v808_v27 = vsel %vm806_vm12, %v5313_v23, %v5315_v39  ;;  %v4503_v46 = vmul.f32 %v5303_v37, %v5316_v63  ;;  %v791_v29 = vadd.f32 %v787_v38, %v750_v20  ;;  %v5320_v3 = vld [vmem:[#allocation65_spill] sm:$0xff]  ;;  %v5321_v43 = vld [vmem:[#allocation62_spill] sm:$0xff]  ;;  %v5322_v20 = vld [vmem:[#allocation64_spill] sm:$0xff] }
 0x2cd   : > { %v831_v36 = vadd.f32 %v827_v22, %v790_v7  ;;  %v770_v35 = vadd.f32 %v766_v24, %v729_v42  ;;  %v771_v56 = vadd.f32 %v767_v40, %v730_v13  ;;  %v4505_v32 = vpop.permute.xlu1 %1629  ;;  %v868_v26 = vsel %vm847_vm13, %v5318_v12, %v5317_v4  ;;  %v5323_v7 = vld [vmem:[#allocation30_spill] sm:$0xff]  ;;  %v5324_v42 = vld [vmem:[#allocation43_spill] sm:$0xff]  ;;  %v5327_v23 = vld [vmem:[#allocation68_spill] sm:$0xff] }
 0x2ce   : > { %v4507_v28 = vpop.permute.xlu0 %1609  ;;  %v869_v45 = vsel %vm847_vm13, %v5317_v4, %v5319_v30  ;;  %v848_v37 = vsel %vm847_vm13, %v5321_v43, %v5320_v3  ;;  %v849_v38 = vsel %vm847_vm13, %v5320_v3, %v5322_v20  ;;  %v832_v22 = vadd.f32 %v828_v9, %v791_v29  ;;  %v5325_v31 = vld [vmem:[#allocation67_spill] sm:$0xff]  ;;  %v5326_v2 = vld [vmem:[#allocation66_spill] sm:$0xff]  ;;  %v5328_v63 = vld [vmem:[#allocation45_spill] sm:$0xff] }
 0x2cf   : > { %v811_v24 = vadd.f32 %v807_v55, %v770_v35  ;;  %v812_v40 = vadd.f32 %v808_v27, %v771_v56  ;;  %2045 = vrot.lane.b32.xlu1 %v4240_v50, %s3111_s28  ;;  %2024 = vrot.lane.b32.xlu0 %v4243_v60, %s3111_s28  ;;  %v909_v13 = vsel %vm888_vm14, %v5324_v42, %v5323_v7  ;;  %v5329_v35 = vld [vmem:[#allocation69_spill] sm:$0xff]  ;;  %v5330_v56 = vld [vmem:[#allocation70_spill] sm:$0xff]  ;;  %v5331_v12 = vld [vmem:[#allocation72_spill] sm:$0xff]  ;;  %vm1281_vm8 = vcmask 1022976  }
 0x2d0   : > { %v889_v44 = vsel %vm888_vm14, %v5326_v2, %v5325_v31  ;;  %v890_v9 = vsel %vm888_vm14, %v5325_v31, %v5327_v23  ;;  %v872_v21 = vadd.f32 %v868_v26, %v831_v36  ;;  %v873_v55 = vadd.f32 %v869_v45, %v832_v22  ;;  %v5332_v36 = vld [vmem:[#allocation74_spill] sm:$0xff]  ;;  %v5333_v26 = vld [vmem:[#allocation47_spill] sm:$0xff] }
 0x2d1   : > { %v852_v39 = vadd.f32 %v848_v37, %v811_v24  ;;  %v853_v50 = vadd.f32 %v849_v38, %v812_v40  ;;  %v4534_v27 = vpop.permute.xlu1 %1648  ;;  %v910_v29 = vsel %vm888_vm14, %v5323_v7, %v5328_v63  ;;  %v930_v4 = vsel %vm929_vm15, %v5330_v56, %v5329_v35  ;;  %v5334_v20 = vld [vmem:[#allocation158_spill] sm:$0xff]  ;;  %v5335_v38 = vld [vmem:[#allocation71_spill] sm:$0xff]  ;;  %v5336_v24 = vld [vmem:[#allocation73_spill] sm:$0xff] }
 0x2d2   : > { %v4536_v60 = vpop.permute.xlu0 %1627  ;;  %v931_v30 = vsel %vm929_vm15, %v5329_v35, %v5331_v12  ;;  %v950_v45 = vsel %vm929_vm15, %v5333_v26, %v5332_v36  ;;  %v913_v3 = vadd.f32 %v909_v13, %v872_v21  ;;  %v951_v22 = vsel %vm929_vm15, %v5332_v36, %v5335_v38  ;;  %v5337_v40 = vld [vmem:[#allocation76_spill] sm:$0xff]  ;;  %v5338_v42 = vld [vmem:[#allocation78_spill] sm:$0xff]  ;;  %v5341_v63 = vld [vmem:[#allocation77_spill] sm:$0xff] }
 0x2d3   : > { %v893_v43 = vadd.f32 %v889_v44, %v852_v39  ;;  %v894_v37 = vadd.f32 %v890_v9, %v853_v50  ;;  %2063 = vrot.lane.b32.xlu1 %v4248_v62, %s3112_s20  ;;  %2043 = vrot.lane.b32.xlu0 %v5334_v20, %s3111_s28  ;;  %v995_v7 = vsel %vm994_vm0, %v5337_v40, %v5336_v24  ;;  %v5339_v21 = vld [vmem:[#allocation80_spill] sm:$0xff]  ;;  %v5340_v39 = vld [vmem:[#allocation75_spill] sm:$0xff]  ;;  %v5343_v12 = vld [vmem:[#allocation82_spill] sm:$0xff]  ;;  %vm1322_vm9 = vcmask 891904   ;;  %s2747_s28 = sld [smem:[#allocation8 + $0x30]] }
 0x2d4   : > { %v996_v13 = vsel %vm994_vm0, %v5336_v24, %v5338_v42  ;;  %v914_v31 = vadd.f32 %v910_v29, %v873_v55  ;;  %v954_v62 = vadd.f32 %v950_v45, %v913_v3  ;;  %v1015_v50 = vsel %vm994_vm0, %v5340_v39, %v5339_v21  ;;  %v5342_v56 = vld [vmem:[#allocation79_spill] sm:$0xff]  ;;  %v5344_v55 = vld [vmem:[#allocation84_spill] sm:$0xff]  ;;  %v5346_v3 = vld [vmem:[#allocation161_spill] sm:$0xff] }
 0x2d5   : > { %v934_v2 = vadd.f32 %v930_v4, %v893_v43  ;;  %v935_v44 = vadd.f32 %v931_v30, %v894_v37  ;;  %v4563_v23 = vpop.permute.xlu1 %1652  ;;  %v1016_v35 = vsel %vm994_vm0, %v5339_v21, %v5341_v63  ;;  %v1036_v36 = vsel %vm1035_vm2, %v5343_v12, %v5342_v56  ;;  %v5345_v45 = vld [vmem:[#allocation159_spill] sm:$0xff]  ;;  %v5347_v43 = vld [vmem:[#allocation86_spill] sm:$0xff]  ;;  %v5348_v37 = vld [vmem:[#allocation81_spill] sm:$0xff] }
 0x2d6   : > { %v4565_v9 = vpop.permute.xlu0 %1631  ;;  %v1037_v29 = vsel %vm1035_vm2, %v5342_v56, %v5344_v55  ;;  %v955_v4 = vadd.f32 %v951_v22, %v914_v31  ;;  %v1056_v20 = vsel %vm1035_vm2, %v5348_v37, %v5347_v43  ;;  %v5349_v38 = vld [vmem:[#allocation83_spill] sm:$0xff]  ;;  %v5350_v40 = vld [vmem:[#allocation85_spill] sm:$0xff]  ;;  %v5351_v42 = vld [vmem:[#allocation88_spill] sm:$0xff]  ;;  %v1019_v31 = vadd.f32 %v1015_v50, %v954_v62 }
 0x2d7   : > { %v999_v30 = vadd.f32 %v995_v7, %v934_v2  ;;  %v1000_v26 = vadd.f32 %v996_v13, %v935_v44  ;;  %2082 = vrot.lane.b32.xlu1 %v5345_v45, %s3112_s20  ;;  %2061 = vrot.lane.b32.xlu0 %v5346_v3, %s3112_s20  ;;  %v1057_v24 = vsel %vm1035_vm2, %v5347_v43, %v5349_v38  ;;  %v5352_v7 = vld [vmem:[#allocation150_spill] sm:$0xff]  ;;  %v5354_v55 = vld [vmem:[#allocation92_spill] sm:$0xff]  ;;  %v5355_v45 = vld [vmem:[#allocation87_spill] sm:$0xff]  ;;  %vm1363_vm10 = vcmask 760832  }
 0x2d8   : > { %v1077_v22 = vsel %vm1076_vm3, %v5351_v42, %v5350_v40  ;;  %v4594_v13 = vmul.f32 %v5352_v7, %v4356_v18  ;;  %v1020_v2 = vadd.f32 %v1016_v35, %v955_v4  ;;  %v5353_v56 = vld [vmem:[#allocation90_spill] sm:$0xff]  ;;  %v1097_v3 = vsel %vm1076_vm3, %v5355_v45, %v5354_v55  ;;  %v5356_v43 = vld [vmem:[#allocation89_spill] sm:$0xff]  ;;  %v5357_v62 = vld [vmem:[#allocation91_spill] sm:$0xff] }
 0x2d9   : > { %v1040_v44 = vadd.f32 %v1036_v36, %v999_v30  ;;  %v1041_v21 = vadd.f32 %v1037_v29, %v1000_v26  ;;  %v4596_v39 = vpop.permute.xlu1 %1670  ;;  %v1078_v12 = vsel %vm1076_vm3, %v5350_v40, %v5353_v56  ;;  %v1098_v37 = vsel %vm1076_vm3, %v5354_v55, %v5356_v43  ;;  %v5358_v50 = vld [vmem:[#allocation94_spill] sm:$0xff]  ;;  %v5360_v26 = vld [vmem:[#allocation96_spill] sm:$0xff]  ;;  %v5362_v42 = vld [vmem:[#allocation93_spill] sm:$0xff] }
 0x2da   : > { %v4598_v63 = vpop.permute.xlu0 %1650  ;;  %v1118_v35 = vsel %vm1117_vm4, %v5358_v50, %v5357_v62  ;;  %v1060_v36 = vadd.f32 %v1056_v20, %v1019_v31  ;;  %v1061_v29 = vadd.f32 %v1057_v24, %v1020_v2  ;;  %v5359_v30 = vld [vmem:[#allocation162_spill] sm:$0xff]  ;;  %v1119_v38 = vsel %vm1117_vm4, %v5357_v62, %v5360_v26  ;;  %v5363_v55 = vld [vmem:[#allocation95_spill] sm:$0xff]  ;;  %v5364_v45 = vld [vmem:[#allocation97_spill] sm:$0xff] }
 0x2db   : > { %v1081_v4 = vadd.f32 %v1077_v22, %v1040_v44  ;;  %2086 = vrot.lane.b32.xlu1 %v5359_v30, %s3112_s20  ;;  %2065 = vrot.lane.b32.xlu0 %v4271_v15, %s3112_s20  ;;  %v5361_v40 = vld [vmem:[#allocation98_spill] sm:$0xff]  ;;  %v1082_v24 = vadd.f32 %v1078_v12, %v1041_v21  ;;  %v5365_v43 = vld [vmem:[#allocation100_spill] sm:$0xff]  ;;  %v5369_v21 = vld [vmem:[#allocation101_spill] sm:$0xff]  ;;  %vm1404_vm11 = vcmask 629760   ;;  %vm1445_vm12 = vcmask 498688  }
 0x2dc   : > { %v1138_v56 = vsel %vm1117_vm4, %v5362_v42, %v5361_v40  ;;  %v1139_v20 = vsel %vm1117_vm4, %v5361_v40, %v5363_v55  ;;  %v1101_v22 = vadd.f32 %v1097_v3, %v1060_v36  ;;  %v1102_v31 = vadd.f32 %v1098_v37, %v1061_v29  ;;  %v5366_v50 = vld [vmem:[#allocation102_spill] sm:$0xff]  ;;  %v5367_v26 = vld [vmem:[#allocation104_spill] sm:$0xff]  ;;  %v5368_v42 = vld [vmem:[#allocation99_spill] sm:$0xff] }
 0x2dd   : > { %v1122_v2 = vadd.f32 %v1118_v35, %v1081_v4  ;;  %v4625_v44 = vpop.permute.xlu1 %1689  ;;  %v1159_v62 = vsel %vm1158_vm5, %v5365_v43, %v5364_v45  ;;  %v1160_v30 = vsel %vm1158_vm5, %v5364_v45, %v5366_v50  ;;  %v1179_v40 = vsel %vm1158_vm5, %v5368_v42, %v5367_v26  ;;  %v5370_v36 = vld [vmem:[#allocation165_spill] sm:$0xff]  ;;  %v5371_v29 = vld [vmem:[#allocation103_spill] sm:$0xff]  ;;  %v5372_v4 = vld [vmem:[#allocation106_spill] sm:$0xff] }
 0x2de   : > { %v4627_v15 = vpop.permute.xlu0 %1668  ;;  %v1180_v12 = vsel %vm1158_vm5, %v5367_v26, %v5369_v21  ;;  %v1123_v3 = vadd.f32 %v1119_v38, %v1082_v24  ;;  %v1142_v37 = vadd.f32 %v1138_v56, %v1101_v22  ;;  %v1143_v35 = vadd.f32 %v1139_v20, %v1102_v31  ;;  %v5373_v45 = vld [vmem:[#allocation108_spill] sm:$0xff]  ;;  %v5374_v50 = vld [vmem:[#allocation110_spill] sm:$0xff]  ;;  %v5375_v38 = vld [vmem:[#allocation105_spill] sm:$0xff] }
 0x2df   : > { %2104 = vrot.lane.b32.xlu1 %v4278_v33, %s3113_s27  ;;  %2084 = vrot.lane.b32.xlu0 %v5370_v36, %s3112_s20  ;;  %v1200_v55 = vsel %vm1199_vm6, %v5372_v4, %v5371_v29  ;;  %v1201_v43 = vsel %vm1199_vm6, %v5371_v29, %v5373_v45  ;;  %v1220_v56 = vsel %vm1199_vm6, %v5375_v38, %v5374_v50  ;;  %v5377_v42 = vld [vmem:[#allocation107_spill] sm:$0xff]  ;;  %v5378_v36 = vld [vmem:[#allocation109_spill] sm:$0xff]  ;;  %v5379_v4 = vld [vmem:[#allocation112_spill] sm:$0xff]  ;;  %vm1486_vm13 = vcmask 367616   ;;  %s3120_s20 = smov 42  }
 0x2e0   : > { %v1163_v20 = vadd.f32 %v1159_v62, %v1122_v2  ;;  %v1164_v24 = vadd.f32 %v1160_v30, %v1123_v3  ;;  %v1183_v22 = vadd.f32 %v1179_v40, %v1142_v37  ;;  %v1184_v33 = vadd.f32 %v1180_v12, %v1143_v35  ;;  %v5380_v45 = vld [vmem:[#allocation114_spill] sm:$0xff]  ;;  %v5381_v2 = vld [vmem:[#allocation116_spill] sm:$0xff]  ;;  %v5382_v62 = vld [vmem:[#allocation111_spill] sm:$0xff] }
 0x2e1   : > { %v4654_v31 = vpop.permute.xlu1 %1693  ;;  %v1221_v21 = vsel %vm1199_vm6, %v5374_v50, %v5377_v42  ;;  %v1241_v29 = vsel %vm1240_vm7, %v5379_v4, %v5378_v36  ;;  %v1242_v38 = vsel %vm1240_vm7, %v5378_v36, %v5380_v45  ;;  %v1261_v30 = vsel %vm1240_vm7, %v5382_v62, %v5381_v2  ;;  %v5383_v37 = vld [vmem:[#allocation113_spill] sm:$0xff]  ;;  %v5384_v50 = vld [vmem:[#allocation115_spill] sm:$0xff]  ;;  %v5385_v42 = vld [vmem:[#allocation118_spill] sm:$0xff] }
 0x2e2   : > { %v4656_v26 = vpop.permute.xlu0 %1672  ;;  %v1204_v40 = vadd.f32 %v1200_v55, %v1163_v20  ;;  %v1205_v12 = vadd.f32 %v1201_v43, %v1164_v24  ;;  %v1224_v3 = vadd.f32 %v1220_v56, %v1183_v22  ;;  %v1262_v35 = vsel %vm1240_vm7, %v5381_v2, %v5383_v37  ;;  %v5386_v4 = vld [vmem:[#allocation120_spill] sm:$0xff]  ;;  %v5387_v22 = vld [vmem:[#allocation122_spill] sm:$0xff]  ;;  %v5388_v45 = vld [vmem:[#allocation117_spill] sm:$0xff] }
 0x2e3   : > { %5376 = vst [vmem:[#allocation40_spill] sm:$0xff] %v4656_v26  ;;  %2123 = vrot.lane.b32.xlu1 %v4286_v6, %s3113_s27  ;;  %2102 = vrot.lane.b32.xlu0 %v4289_v0, %s3113_s27  ;;  %v1282_v36 = vsel %vm1281_vm8, %v5385_v42, %v5384_v50  ;;  %v1283_v55 = vsel %vm1281_vm8, %v5384_v50, %v5386_v4  ;;  %v5389_v62 = vld [vmem:[#allocation119_spill] sm:$0xff]  ;;  %v5390_v42 = vld [vmem:[#allocation121_spill] sm:$0xff]  ;;  %v5391_v18 = vld [vmem:[#allocation124_spill] sm:$0xff]  ;;  %vm1527_vm14 = vcmask 236544   ;;  %vm1592_vm15 = vcmask 1014784  }
 0x2e4   : > { %v1225_v43 = vadd.f32 %v1221_v21, %v1184_v33  ;;  %v1245_v56 = vadd.f32 %v1241_v29, %v1204_v40  ;;  %v1246_v20 = vadd.f32 %v1242_v38, %v1205_v12  ;;  %v1265_v6 = vadd.f32 %v1261_v30, %v1224_v3  ;;  %v5392_v33 = vld [vmem:[#allocation126_spill] sm:$0xff]  ;;  %v5393_v40 = vld [vmem:[#allocation128_spill] sm:$0xff]  ;;  %v5394_v12 = vld [vmem:[#allocation123_spill] sm:$0xff] }
 0x2e5   : > { %v4683_v24 = vpop.permute.xlu1 %1711  ;;  %v1302_v2 = vsel %vm1281_vm8, %v5388_v45, %v5387_v22  ;;  %v1303_v37 = vsel %vm1281_vm8, %v5387_v22, %v5389_v62  ;;  %v1323_v50 = vsel %vm1322_vm9, %v5391_v18, %v5390_v42  ;;  %v1324_v21 = vsel %vm1322_vm9, %v5390_v42, %v5392_v33  ;;  %v5395_v4 = vld [vmem:[#allocation125_spill] sm:$0xff]  ;;  %v5396_v22 = vld [vmem:[#allocation127_spill] sm:$0xff]  ;;  %v5397_v45 = vld [vmem:[#allocation130_spill] sm:$0xff] }
 0x2e6   : > { %v4685_v0 = vpop.permute.xlu0 %1691  ;;  %v1266_v29 = vadd.f32 %v1262_v35, %v1225_v43  ;;  %v1286_v38 = vadd.f32 %v1282_v36, %v1245_v56  ;;  %v1287_v30 = vadd.f32 %v1283_v55, %v1246_v20  ;;  %v1343_v3 = vsel %vm1322_vm9, %v5394_v12, %v5393_v40  ;;  %v5398_v36 = vld [vmem:[#allocation148_spill] sm:$0xff]  ;;  %v5401_v12 = vld [vmem:[#allocation129_spill] sm:$0xff] }
 0x2e7   : > { %2127 = vrot.lane.b32.xlu1 %v4299_v51, %s3113_s27  ;;  %2106 = vrot.lane.b32.xlu0 %v4302_v16, %s3113_s27  ;;  %v1344_v18 = vsel %vm1322_vm9, %v5393_v40, %v5395_v4  ;;  %v1364_v35 = vsel %vm1363_vm10, %v5397_v45, %v5396_v22  ;;  %v4714_v55 = vmul.f32 %v5398_v36, %v4404_v5  ;;  %v5399_v42 = vld [vmem:[#allocation132_spill] sm:$0xff]  ;;  %v5400_v40 = vld [vmem:[#allocation134_spill] sm:$0xff]  ;;  %v5402_v45 = vld [vmem:[#allocation131_spill] sm:$0xff]  ;;  %vm1633_vm0 = vcmask 883712  }
 0x2e8   : > { %v1306_v51 = vadd.f32 %v1302_v2, %v1265_v6  ;;  %v1307_v43 = vadd.f32 %v1303_v37, %v1266_v29  ;;  %v1327_v56 = vadd.f32 %v1323_v50, %v1286_v38  ;;  %v1328_v16 = vadd.f32 %v1324_v21, %v1287_v30  ;;  %v5403_v6 = vld [vmem:[#allocation133_spill] sm:$0xff]  ;;  %v5404_v2 = vld [vmem:[#allocation136_spill] sm:$0xff]  ;;  %v5405_v38 = vld [vmem:[#allocation138_spill] sm:$0xff] }
 0x2e9   : > { %v4716_v20 = vpop.permute.xlu1 %1730  ;;  %v1365_v33 = vsel %vm1363_vm10, %v5396_v22, %v5399_v42  ;;  %v1384_v4 = vsel %vm1363_vm10, %v5401_v12, %v5400_v40  ;;  %v1385_v5 = vsel %vm1363_vm10, %v5400_v40, %v5402_v45  ;;  %v1405_v37 = vsel %vm1404_vm11, %v5404_v2, %v5403_v6  ;;  %v5406_v22 = vld [vmem:[#allocation140_spill] sm:$0xff]  ;;  %v5407_v42 = vld [vmem:[#allocation135_spill] sm:$0xff]  ;;  %v5408_v12 = vld [vmem:[#allocation137_spill] sm:$0xff] }
 0x2ea   : > { %v4718_v62 = vpop.permute.xlu0 %1709  ;;  %v1347_v50 = vadd.f32 %v1343_v3, %v1306_v51  ;;  %v1348_v21 = vadd.f32 %v1344_v18, %v1307_v43  ;;  %v1368_v29 = vadd.f32 %v1364_v35, %v1327_v56  ;;  %v1406_v30 = vsel %vm1404_vm11, %v5403_v6, %v5405_v38  ;;  %v5409_v56 = vld [vmem:[#allocation139_spill] sm:$0xff]  ;;  %v5410_v45 = vld [vmem:[#allocation142_spill] sm:$0xff]  ;;  %v5411_v2 = vld [vmem:[#allocation144_spill] sm:$0xff] }
 0x2eb   : > { %2145 = vrot.lane.b32.xlu1 %v4308_v8, %s3114_s18  ;;  %2125 = vrot.lane.b32.xlu0 %v4312_v10, %s3113_s27  ;;  %v1425_v40 = vsel %vm1404_vm11, %v5407_v42, %v5406_v22  ;;  %v1426_v3 = vsel %vm1404_vm11, %v5406_v22, %v5408_v12  ;;  %v1369_v18 = vadd.f32 %v1365_v33, %v1328_v16  ;;  %v5412_v42 = vld [vmem:[#allocation147_spill] sm:$0xff]  ;;  %v5413_v26 = vld [vmem:[#allocation141_spill] sm:$0xff]  ;;  %v5417_v12 = vld [vmem:[#allocation164_spill] sm:$0xff]  ;;  %vm1674_vm2 = vcmask 752640   ;;  %s2748_s27 = sld [smem:[#allocation8 + $0x61]] }
 0x2ec   : > { %v1388_v35 = vadd.f32 %v1384_v4, %v1347_v50  ;;  %v1389_v51 = vadd.f32 %v1385_v5, %v1348_v21  ;;  %v1409_v8 = vadd.f32 %v1405_v37, %v1368_v29  ;;  %v1446_v6 = vsel %vm1445_vm12, %v5410_v45, %v5409_v56  ;;  %v5414_v16 = vld [vmem:[#allocation143_spill] sm:$0xff]  ;;  %v5415_v50 = vld [vmem:[#allocation146_spill] sm:$0xff]  ;;  %v5416_v21 = vld [vmem:[#allocation152_spill] sm:$0xff] }
 0x2ed   : > { %v4745_v43 = vpop.permute.xlu1 %1734  ;;  %v1447_v38 = vsel %vm1445_vm12, %v5409_v56, %v5411_v2  ;;  %v1466_v22 = vsel %vm1445_vm12, %v5413_v26, %v5412_v42  ;;  %v1467_v5 = vsel %vm1445_vm12, %v5412_v42, %v5414_v16  ;;  %v1410_v33 = vadd.f32 %v1406_v30, %v1369_v18  ;;  %v5418_v26 = vld [vmem:[#allocation151_spill] sm:$0xff]  ;;  %v5419_v45 = vld [vmem:[#allocation153_spill] sm:$0xff]  ;;  %v5420_v2 = vld [vmem:[#allocation154_spill] sm:$0xff] }
 0x2ee   : > { %v4747_v10 = vpop.permute.xlu0 %1713  ;;  %v1429_v4 = vadd.f32 %v1425_v40, %v1388_v35  ;;  %v1430_v37 = vadd.f32 %v1426_v3, %v1389_v51  ;;  %v1487_v29 = vsel %vm1486_vm13, %v5416_v21, %v5415_v50  ;;  %v1507_v56 = vsel %vm1486_vm13, %v5418_v26, %v5417_v12  ;;  %v5421_v16 = vld [vmem:[#allocation163_spill] sm:$0xff] }
 0x2ef   : > { %2164 = vrot.lane.b32.xlu1 %v4322_v54, %s3114_s18  ;;  %2143 = vrot.lane.b32.xlu0 %v4326_v52, %s3114_s18  ;;  %v1508_v30 = vsel %vm1486_vm13, %v5417_v12, %v5419_v45  ;;  %v2202_v40 = vmul.f32 %v5352_v7, %v4437_v34  ;;  %v1450_v3 = vadd.f32 %v1446_v6, %v1409_v8  ;;  %vm1715_vm3 = vcmask 621568  }
 0x2f0   : > { %v1451_v54 = vadd.f32 %v1447_v38, %v1410_v33  ;;  %v1470_v18 = vadd.f32 %v1466_v22, %v1429_v4  ;;  %v1471_v35 = vadd.f32 %v1467_v5, %v1430_v37  ;;  %v1488_v42 = vsel %vm1486_vm13, %v5415_v50, %v5420_v2 }
 0x2f1   : > { %v4776_v52 = vpop.permute.xlu1 %1752  ;;  %v1528_v21 = vsel %vm1527_vm14, %v4330_v49, %v5421_v16  ;;  %v1548_v12 = vsel %vm1527_vm14, %v4328_v11, %v4408_v59  ;;  %v1549_v8 = vsel %vm1527_vm14, %v4408_v59, %v4373_v57  ;;  %v1491_v6 = vadd.f32 %v1487_v29, %v1450_v3 }
 0x2f2   : > { %v1733_v51 = vpop.permute.xlu0 %1732  ;;  %v1511_v38 = vadd.f32 %v1507_v56, %v1470_v18  ;;  %v1512_v22 = vadd.f32 %v1508_v30, %v1471_v35  ;;  %v1529_v49 = vsel %vm1527_vm14, %v5421_v16, %v4375_v25  ;;  %v1613_v11 = vsel %vm1592_vm15, %v4439_v48, %v4507_v28 }
 0x2f3   : > { %2168 = vrot.lane.b32.xlu1 %v4334_v1, %s3114_s18  ;;  %2147 = vrot.lane.b32.xlu0 %v4338_v17, %s3114_s18  ;;  %v1614_v57 = vsel %vm1592_vm15, %v4507_v28, %v4472_v41  ;;  %v1492_v59 = vadd.f32 %v1488_v42, %v1451_v54  ;;  %v1532_v5 = vadd.f32 %v1528_v21, %v1491_v6  ;;  %vm1756_vm4 = vcmask 490496  }
 0x2f4   : > { %v1552_v33 = vadd.f32 %v1548_v12, %v1511_v38  ;;  %v1553_v4 = vadd.f32 %v1549_v8, %v1512_v22  ;;  %v1593_v17 = vsel %vm1592_vm15, %v4441_v61, %v4406_v14  ;;  %v1594_v50 = vsel %vm1592_vm15, %v4406_v14, %v4474_v47  ;;  %v5424_v22 = vld [vmem:[#allocation166_spill] sm:$0xff] }
 0x2f5   : > { %v1772_v37 = vpop.permute.xlu1 %1771  ;;  %v1654_v25 = vsel %vm1633_vm0, %v4534_v27, %v4598_v63  ;;  %v1655_v48 = vsel %vm1633_vm0, %v4598_v63, %v4563_v23  ;;  %v1533_v41 = vadd.f32 %v1529_v49, %v1492_v59  ;;  %v1634_v14 = vsel %vm1633_vm0, %v4536_v60, %v4505_v32  ;;  %v5425_v49 = vld [vmem:[#allocation160_spill] sm:$0xff] }
 0x2f6   : > { %v1751_v1 = vpop.permute.xlu0 %1750  ;;  %v1617_v28 = vadd.f32 %v1613_v11, %v1552_v33  ;;  %v1618_v29 = vadd.f32 %v1614_v57, %v1553_v4  ;;  %v1695_v61 = vsel %vm1674_vm2, %v4625_v44, %v4685_v0  ;;  %v1696_v47 = vsel %vm1674_vm2, %v4685_v0, %v4654_v31 }
 0x2f7   : > { %2210 = vrot.lane.b32.xlu1 %v4594_v13, %s3115_s9  ;;  %2166 = vrot.lane.b32.xlu0 %v4369_v53, %s3114_s18  ;;  %v1597_v27 = vadd.f32 %v1593_v17, %v1532_v5  ;;  %v1598_v23 = vadd.f32 %v1594_v50, %v1533_v41  ;;  %v1635_v53 = vsel %vm1633_vm0, %v4505_v32, %v4565_v9  ;;  %vm1797_vm5 = vcmask 359424   ;;  %v5426_v17 = vld [vmem:[#allocation38_spill] sm:$0xff]  ;;  %s3121_s18 = smov 26  }
 0x2f8   : > { %v1658_v63 = vadd.f32 %v1654_v25, %v1617_v28  ;;  %v1659_v13 = vadd.f32 %v1655_v48, %v1618_v29  ;;  %v1675_v60 = vsel %vm1674_vm2, %v4627_v15, %v4596_v39  ;;  %v1736_v44 = vsel %vm1715_vm3, %v4716_v20, %v1733_v51  ;;  %v5422_v20 = vld [vmem:[#allocation19_spill] sm:$0xff] }
 0x2f9   : > { %v1776_v26 = vpop.permute.xlu1 %1775  ;;  %v1737_v31 = vsel %vm1715_vm3, %v1733_v51, %v4745_v43  ;;  %v1638_v0 = vadd.f32 %v1634_v14, %v1597_v27  ;;  %v1716_v32 = vsel %vm1715_vm3, %v4718_v62, %v4683_v24  ;;  %v2225_v9 = vmul.f32 %v5398_v36, %v4470_v19  ;;  %v5423_v51 = vld [vmem:[#allocation40_spill] sm:$0xff] }
 0x2fa   : > { %v1755_v56 = vpop.permute.xlu0 %1754  ;;  %v1699_v45 = vadd.f32 %v1695_v61, %v1658_v63  ;;  %v1700_v30 = vadd.f32 %v1696_v47, %v1659_v13  ;;  %v2204_v15 = vmul.f32 %v5352_v7, %v4503_v46  ;;  %v4848_v43 = vmul.f32 %v4176_v58, %v5422_v20 }
 0x2fb   : > { %2229 = vrot.lane.b32.xlu1 %v4714_v55, %s3115_s9  ;;  %2208 = vrot.lane.b32.xlu0 %v2202_v40, %s3115_s9  ;;  %v1639_v3 = vadd.f32 %v1635_v53, %v1598_v23  ;;  %v1679_v54 = vadd.f32 %v1675_v60, %v1638_v0  ;;  %v1676_v62 = vsel %vm1674_vm2, %v4596_v39, %v5423_v51  ;;  %v2263_v33 = vstv %s4834_s25  ;;  %s2757_s25 = sshll.u32 %s3057_s15, 5  ;;  %s2521_s15 = scalar_lea.sflag [#allocation6], %s3309_s24 }
 0x2fc   : > { %v1740_v18 = vadd.f32 %v1736_v44, %v1699_v45  ;;  %v1741_v55 = vadd.f32 %v1737_v31, %v1700_v30  ;;  %v1757_v2 = vsel %vm1756_vm4, %v1751_v1, %v4776_v52  ;;  %v1717_v39 = vsel %vm1715_vm3, %v4683_v24, %v4747_v10 }
 0x2fd   : > { %v1794_v35 = vpop.permute.xlu1 %1793  ;;  %v1720_v58 = vadd.f32 %v1716_v32, %v1679_v54  ;;  %v1680_v12 = vadd.f32 %v1676_v62, %v1639_v3  ;;  %v2244_v11 = vmul.f32 %v5425_v49, %v5424_v22  ;;  %v2224_v57 = vmul.f32 %v5398_v36, %v4848_v43 }
 0x2fe   : > { %v1774_v40 = vpop.permute.xlu0 %1773  ;;  %v1758_v59 = vsel %vm1756_vm4, %v4776_v52, %v1755_v56  ;;  %v2264_v50 = vmul.f32 %v2263_v33, %v5426_v17  ;;  %v2243_v36 = vmul.f32 %v5425_v49, %v4437_v34  ;;  %v2266_v28 = vmul.f32 %v2263_v33, %v4470_v19 }
 0x2ff   : > { %v1777_v42 = vsel %vm1756_vm4, %v1772_v37, %v1774_v40  ;;  %v1778_v7 = vsel %vm1756_vm4, %v1774_v40, %v1776_v26  ;;  %2233 = vrot.lane.b32.xlu1 %v2225_v9, %s3115_s9  ;;  %2212 = vrot.lane.b32.xlu0 %v2204_v15, %s3115_s9  ;;  %v1761_v8 = vadd.f32 %v1757_v2, %v1720_v58  ;;  %v2283_v47 = vstv %s2739_s22 }
 0x300   : > { %v1781_v16 = vadd.f32 %v1777_v42, %v1740_v18  ;;  %v1782_v21 = vadd.f32 %v1778_v7, %v1741_v55  ;;  %v1721_v4 = vadd.f32 %v1717_v39, %v1680_v12  ;;  %v2245_v29 = vmul.f32 %v5425_v49, %v4503_v46 }
 0x301   : > { %v1813_v6 = vpop.permute.xlu1 %1812  ;;  %vm1838_vm6 = vcmask 228352   ;;  %v2285_v26 = vmul.f32 %v2283_v47, %v5424_v22  ;;  %v2265_v56 = vmul.f32 %v2263_v33, %v4848_v43  ;;  %v2304_v60 = vstv %s2740_s5 }
 0x302   : > { %v1792_v38 = vpop.permute.xlu0 %1791  ;;  %v1762_v24 = vadd.f32 %v1758_v59, %v1721_v4  ;;  %v2305_v45 = vmul.f32 %v2304_v60, %v5426_v17  ;;  %v2284_v30 = vmul.f32 %v2283_v47, %v4437_v34  ;;  %v2307_v3 = vmul.f32 %v2304_v60, %v4470_v19 }
 0x303   : > { %v1798_v5 = vsel %vm1797_vm5, %v1792_v38, %v1794_v35  ;;  %2251 = vrot.lane.b32.xlu1 %v2244_v11, %s3116_s29  ;;  %2231 = vrot.lane.b32.xlu0 %v2224_v57, %s3115_s9  ;;  %v2286_v54 = vmul.f32 %v2283_v47, %v4503_v46  ;;  %vm1903_vm7 = vcmask 1006592   ;;  %v2306_v7 = vmul.f32 %v2304_v60, %v4848_v43  ;;  %s2651_s9 = sshll.u32 %s3309_s24, 1 }
 0x304   : > { %v1802_v37 = vadd.f32 %v1798_v5, %v1761_v8  ;;  %vm1944_vm8 = vcmask 875520   ;;  %v2406_v60 = vstv %s2745_s8  ;;  %vm1985_vm9 = vcmask 744448   ;;  %s229_s22 = scalar_lea.vmem [#allocation11], %s2651_s9 }
 0x305   : > { %v1817_v10 = vpop.permute.xlu1 %1816  ;;  %vm2026_vm10 = vcmask 613376   ;;  %vm2067_vm11 = vcmask 482304   ;;  %vm2108_vm12 = vcmask 351232   ;;  %vm2149_vm13 = vcmask 220160  }
 0x306   : > { %v1796_v1 = vpop.permute.xlu0 %1795  ;;  %vm2214_vm14 = vcmask 998400   ;;  %vm2255_vm15 = vcmask 867328   ;;  %vm2296_vm0 = vcmask 736256   ;;  %vm2337_vm2 = vcmask 605184  }
 0x307   : > { %v1799_v52 = vsel %vm1797_vm5, %v1794_v35, %v1796_v1  ;;  %2270 = vrot.lane.b32.xlu1 %v2264_v50, %s3116_s29  ;;  %2249 = vrot.lane.b32.xlu0 %v2243_v36, %s3116_s29  ;;  %v2324_v35 = vstv %s2741_s4  ;;  %vm2378_vm3 = vcmask 474112   ;;  %vm2419_vm4 = vcmask 343040  }
 0x308   : > { %v1803_v25 = vadd.f32 %v1799_v52, %v1762_v24  ;;  %v2326_v42 = vmul.f32 %v2324_v35, %v5424_v22  ;;  %v2327_v5 = vmul.f32 %v2324_v35, %v4503_v46 }
 0x309   : > { %v1835_v48 = vpop.permute.xlu1 %1834 }
 0x30a   : > { %v1815_v41 = vpop.permute.xlu0 %1814 }
 0x30b   : > { %v1818_v14 = vsel %vm1797_vm5, %v1813_v6, %v1815_v41  ;;  %v1819_v61 = vsel %vm1797_vm5, %v1815_v41, %v1817_v10  ;;  %2274 = vrot.lane.b32.xlu1 %v2266_v28, %s3116_s29  ;;  %2253 = vrot.lane.b32.xlu0 %v2245_v29, %s3116_s29  ;;  %v2325_v6 = vmul.f32 %v2324_v35, %v4437_v34  ;;  %vm2460_vm5 = vcmask 211968  }
 0x30c   : > { %v1822_v27 = vadd.f32 %v1818_v14, %v1781_v16  ;;  %v1823_v23 = vadd.f32 %v1819_v61, %v1782_v21  ;;  %v2345_v16 = vstv %s2742_s10 }
 0x30d   : > { %v1854_v63 = vpop.permute.xlu1 %1853  ;;  %v2346_v8 = vmul.f32 %v2345_v16, %v5426_v17  ;;  %v2348_v59 = vmul.f32 %v2345_v16, %v4470_v19  ;;  %v2347_v52 = vmul.f32 %v2345_v16, %v4848_v43  ;;  %v2447_v16 = vstv %s2747_s28 }
 0x30e   : > { %v1833_v13 = vpop.permute.xlu0 %1832 }
 0x30f   : > { %v1839_v53 = vsel %vm1838_vm6, %v1833_v13, %v1835_v48  ;;  %2292 = vrot.lane.b32.xlu1 %v2285_v26, %s3117_s11  ;;  %2272 = vrot.lane.b32.xlu0 %v2265_v56, %s3116_s29  ;;  %s2535_s29 = sshll.u32 %s229_s22, 4  ;;  %s4990_s29 = int_to_ptr.vmem [resolvable:$true] %s2535_s29 }
 0x310   : > { %v1843_v44 = vadd.f32 %v1839_v53, %v1802_v37  ;;  %v2365_v37 = vstv %s2743_s19  ;;  %s2975_s10 = scalar_lea.vmem %s4990_s29, 32  ;;  %s3122_s19 = smov [#allocation11]  }
 0x311   : > { %v1858_v31 = vpop.permute.xlu1 %1857  ;;  %v2367_v36 = vmul.f32 %v2365_v37, %v5424_v22  ;;  %v2366_v61 = vmul.f32 %v2365_v37, %v4437_v34  ;;  %v2368_v26 = vmul.f32 %v2365_v37, %v4503_v46  ;;  %p2976_p8 = scmp.ne.s32.totalorder %s4990_s29, %s2975_s10 }
 0x312   : > { %v1837_v0 = vpop.permute.xlu0 %1836 }
 0x313   : > { %v1840_v32 = vsel %vm1838_vm6, %v1835_v48, %v1837_v0  ;;  %2311 = vrot.lane.b32.xlu1 %v2305_v45, %s3117_s11  ;;  %2290 = vrot.lane.b32.xlu0 %v2284_v30, %s3117_s11  ;;  %v2386_v48 = vstv %s2744_s21  ;;  %v2408_v30 = vmul.f32 %v2406_v60, %v5424_v22  ;;  %p2977_p10 = pnand %p2976_p8, %p5429_p2 }
 0x314   : > { %v1844_v9 = vadd.f32 %v1840_v32, %v1803_v25  ;;  %v2387_v14 = vmul.f32 %v2386_v48, %v5426_v17  ;;  %v2389_v13 = vmul.f32 %v2386_v48, %v4470_v19  ;;  %v2388_v32 = vmul.f32 %v2386_v48, %v4848_v43 }
 0x315   : > { %v1900_v15 = vpop.permute.xlu1 %1899  ;;  %p2978_p13 = pneg %p2977_p10 }
 0x316   : > { %v1856_v20 = vpop.permute.xlu0 %1855 }
 0x317   : > { %v1859_v18 = vsel %vm1838_vm6, %v1854_v63, %v1856_v20  ;;  %v1860_v55 = vsel %vm1838_vm6, %v1856_v20, %v1858_v31  ;;  %2315 = vrot.lane.b32.xlu1 %v2307_v3, %s3117_s11  ;;  %2294 = vrot.lane.b32.xlu0 %v2286_v54, %s3117_s11 }
 0x318   : > { %v1863_v40 = vadd.f32 %v1859_v18, %v1822_v27  ;;  %v1864_v51 = vadd.f32 %v1860_v55, %v1823_v23  ;;  %v2407_v55 = vmul.f32 %v2406_v60, %v4437_v34 }
 0x319   : > { %v1919_v62 = vpop.permute.xlu1 %1918 }
 0x31a   : > { %v1898_v2 = vpop.permute.xlu0 %1897 }
 0x31b   : > { %v1904_v58 = vsel %vm1903_vm7, %v1898_v2, %v1900_v15  ;;  %2333 = vrot.lane.b32.xlu1 %v2326_v42, %s3118_s6  ;;  %2313 = vrot.lane.b32.xlu0 %v2306_v7, %s3117_s11  ;;  %v2409_v42 = vmul.f32 %v2406_v60, %v4503_v46  ;;  %s4988_s11 = scalar_lea.hbm %s5042_s3, %s2757_s25 }
 0x31c   : > { %v1908_v21 = vadd.f32 %v1904_v58, %v1843_v44 }
 0x31d   : > { %v1923_v39 = vpop.permute.xlu1 %1922 }
 0x31e   : > { %v1902_v12 = vpop.permute.xlu0 %1901 }
 0x31f   : > { %v1905_v38 = vsel %vm1903_vm7, %v1900_v15, %v1902_v12  ;;  %2352 = vrot.lane.b32.xlu1 %v2346_v8, %s3118_s6  ;;  %2331 = vrot.lane.b32.xlu0 %v2325_v6, %s3118_s6  ;;  %v2427_v15 = vstv %s2746_s1  ;;  %v2449_v6 = vmul.f32 %v2447_v16, %v5424_v22 }
 0x320   : > { %v1909_v49 = vadd.f32 %v1905_v38, %v1844_v9  ;;  %v2428_v18 = vmul.f32 %v2427_v15, %v5426_v17  ;;  %v2430_v2 = vmul.f32 %v2427_v15, %v4470_v19  ;;  %v2429_v38 = vmul.f32 %v2427_v15, %v4848_v43 }
 0x321   : > { %v1941_v11 = vpop.permute.xlu1 %1940 }
 0x322   : > { %v1921_v57 = vpop.permute.xlu0 %1920 }
 0x323   : > { %v1924_v33 = vsel %vm1903_vm7, %v1919_v62, %v1921_v57  ;;  %v1925_v4 = vsel %vm1903_vm7, %v1921_v57, %v1923_v39  ;;  %2356 = vrot.lane.b32.xlu1 %v2348_v59, %s3118_s6  ;;  %2335 = vrot.lane.b32.xlu0 %v2327_v5, %s3118_s6 }
 0x324   : > { %v1928_v24 = vadd.f32 %v1924_v33, %v1863_v40  ;;  %v1929_v10 = vadd.f32 %v1925_v4, %v1864_v51  ;;  %v2448_v4 = vmul.f32 %v2447_v16, %v4437_v34 }
 0x325   : > { %v1960_v1 = vpop.permute.xlu1 %1959 }
 0x326   : > { %v1939_v50 = vpop.permute.xlu0 %1938 }
 0x327   : > { %v1945_v25 = vsel %vm1944_vm8, %v1939_v50, %v1941_v11  ;;  %2374 = vrot.lane.b32.xlu1 %v2367_v36, %s3119_s0  ;;  %2354 = vrot.lane.b32.xlu0 %v2347_v52, %s3118_s6  ;;  %v2450_v50 = vmul.f32 %v2447_v16, %v4503_v46  ;;  %s2979_s6 = sshll.u32 %s3122_s19, 4  ;;  %s2980_s6 = int_to_ptr.vmem [resolvable:$false] %s2979_s6 }
 0x328   : > { %v1949_v41 = vadd.f32 %v1945_v25, %v1908_v21  ;;  %s2981_s21 = scalar_lea.vmem %s2980_s6, 64  ;;  %p2982_p0 = scmp.lt.s32.totalorder %s4990_s29, %s2980_s6 }
 0x329   : > { %v1964_v28 = vpop.permute.xlu1 %1963  ;;  %p2983_p6 = scmp.lt.s32.totalorder %s2981_s21, %s2975_s10 }
 0x32a   : > { %v1943_v29 = vpop.permute.xlu0 %1942 }
 0x32b   : > { %v1946_v47 = vsel %vm1944_vm8, %v1941_v11, %v1943_v29  ;;  %2393 = vrot.lane.b32.xlu1 %v2387_v14, %s3119_s0  ;;  %2372 = vrot.lane.b32.xlu0 %v2366_v61, %s3119_s0  ;;  %v2468_v11 = vstv %s2748_s27  ;;  %p2984_p3 = por %p2983_p6, %p2982_p0 }
 0x32c   : > { %v1950_v27 = vadd.f32 %v1946_v47, %v1909_v49  ;;  %v2469_v33 = vmul.f32 %v2468_v11, %v5426_v17 }
 0x32d   : > { %v1982_v23 = vpop.permute.xlu1 %1981  ;;  %p2985_p11 = pnand %p2984_p3, %p2978_p13 }
 0x32e   : > { %v1962_v63 = vpop.permute.xlu0 %1961 }
 0x32f   : > { %v1965_v56 = vsel %vm1944_vm8, %v1960_v1, %v1962_v63  ;;  %v1966_v53 = vsel %vm1944_vm8, %v1962_v63, %v1964_v28  ;;  %2397 = vrot.lane.b32.xlu1 %v2389_v13, %s3119_s0  ;;  %2376 = vrot.lane.b32.xlu0 %v2368_v26, %s3119_s0  ;;  %v2471_v1 = vmul.f32 %v2468_v11, %v4470_v19 }
 0x330   : > { %v1969_v44 = vadd.f32 %v1965_v56, %v1928_v24  ;;  %v1970_v31 = vadd.f32 %v1966_v53, %v1929_v10 }
 0x331   : > { %v2001_v0 = vpop.permute.xlu1 %2000 }
 0x332   : > { %v1980_v45 = vpop.permute.xlu0 %1979 }
 0x333   : > { %v1986_v9 = vsel %vm1985_vm9, %v1980_v45, %v1982_v23  ;;  %2415 = vrot.lane.b32.xlu1 %v2408_v30, %s3120_s20  ;;  %2395 = vrot.lane.b32.xlu0 %v2388_v32, %s3119_s0 }
 0x334   : > { %v1990_v20 = vadd.f32 %v1986_v9, %v1949_v41  ;;  %v2470_v41 = vmul.f32 %v2468_v11, %v4848_v43 }
 0x335   : > { %v2005_v3 = vpop.permute.xlu1 %2004 }
 0x336   : > { %v1984_v54 = vpop.permute.xlu0 %1983 }
 0x337   : > { %v1987_v35 = vsel %vm1985_vm9, %v1982_v23, %v1984_v54  ;;  %2434 = vrot.lane.b32.xlu1 %v2428_v18, %s3120_s20  ;;  %2413 = vrot.lane.b32.xlu0 %v2407_v55, %s3120_s20 }
 0x338   : > { %v1991_v40 = vadd.f32 %v1987_v35, %v1950_v27 }
 0x339   : > { %v2023_v51 = vpop.permute.xlu1 %2022 }
 0x33a   : > { %v2003_v62 = vpop.permute.xlu0 %2002 }
 0x33b   : > { %v2006_v7 = vsel %vm1985_vm9, %v2001_v0, %v2003_v62  ;;  %v2007_v58 = vsel %vm1985_vm9, %v2003_v62, %v2005_v3  ;;  %2438 = vrot.lane.b32.xlu1 %v2430_v2, %s3120_s20  ;;  %2417 = vrot.lane.b32.xlu0 %v2409_v42, %s3120_s20 }
 0x33c   : > { %v2010_v21 = vadd.f32 %v2006_v7, %v1969_v44  ;;  %v2011_v39 = vadd.f32 %v2007_v58, %v1970_v31 }
 0x33d   : > { %v2042_v12 = vpop.permute.xlu1 %2041 }
 0x33e   : > { %v2021_v8 = vpop.permute.xlu0 %2020 }
 0x33f   : > { %v2027_v49 = vsel %vm2026_vm10, %v2021_v8, %v2023_v51  ;;  %2456 = vrot.lane.b32.xlu1 %v2449_v6, %s3121_s18  ;;  %2436 = vrot.lane.b32.xlu0 %v2429_v38, %s3120_s20 }
 0x340   : > { %v2031_v57 = vadd.f32 %v2027_v49, %v1990_v20 }
 0x341   : > { %v2046_v59 = vpop.permute.xlu1 %2045 }
 0x342   : > { %v2025_v5 = vpop.permute.xlu0 %2024 }
 0x343   : > { %v2028_v37 = vsel %vm2026_vm10, %v2023_v51, %v2025_v5  ;;  %2475 = vrot.lane.b32.xlu1 %v2469_v33, %s3121_s18  ;;  %2454 = vrot.lane.b32.xlu0 %v2448_v4, %s3121_s18 }
 0x344   : > { %v2032_v24 = vadd.f32 %v2028_v37, %v1991_v40 }
 0x345   : > { %v2064_v22 = vpop.permute.xlu1 %2063 }
 0x346   : > { %v2044_v10 = vpop.permute.xlu0 %2043 }
 0x347   : > { %v2047_v36 = vsel %vm2026_vm10, %v2042_v12, %v2044_v10  ;;  %v2048_v52 = vsel %vm2026_vm10, %v2044_v10, %v2046_v59  ;;  %2479 = vrot.lane.b32.xlu1 %v2471_v1, %s3121_s18  ;;  %2458 = vrot.lane.b32.xlu0 %v2450_v50, %s3121_s18 }
 0x348   : > { %v2051_v25 = vadd.f32 %v2047_v36, %v2010_v21  ;;  %v2052_v48 = vadd.f32 %v2048_v52, %v2011_v39 }
 0x349   : > { %v2083_v34 = vpop.permute.xlu1 %2082 }
 0x34a   : > { %v2062_v17 = vpop.permute.xlu0 %2061 }
 0x34b   : > { %v2068_v28 = vsel %vm2067_vm11, %v2062_v17, %v2064_v22  ;;  %2477 = vrot.lane.b32.xlu0 %v2470_v41, %s3121_s18 }
 0x34c   : > { %v2072_v29 = vadd.f32 %v2068_v28, %v2031_v57 }
 0x34d   : > { %v2087_v14 = vpop.permute.xlu1 %2086 }
 0x34e   : > { %v2066_v19 = vpop.permute.xlu0 %2065 }
 0x34f   : > { %v2069_v61 = vsel %vm2067_vm11, %v2064_v22, %v2066_v19 }
 0x350   : > { %v2073_v46 = vadd.f32 %v2069_v61, %v2032_v24 }
 0x351   : > { %v2105_v47 = vpop.permute.xlu1 %2104 }
 0x352   : > { %v2085_v27 = vpop.permute.xlu0 %2084 }
 0x353   : > { %v2088_v23 = vsel %vm2067_vm11, %v2083_v34, %v2085_v27  ;;  %v2089_v63 = vsel %vm2067_vm11, %v2085_v27, %v2087_v14 }
 0x354   : > { %v2092_v13 = vadd.f32 %v2088_v23, %v2051_v25  ;;  %v2093_v26 = vadd.f32 %v2089_v63, %v2052_v48 }
 0x355   : > { %v2124_v56 = vpop.permute.xlu1 %2123 }
 0x356   : > { %v2103_v53 = vpop.permute.xlu0 %2102 }
 0x357   : > { %v2109_v60 = vsel %vm2108_vm12, %v2103_v53, %v2105_v47 }
 0x358   : > { %v2113_v44 = vadd.f32 %v2109_v60, %v2072_v29 }
 0x359   : > { %v2128_v31 = vpop.permute.xlu1 %2127 }
 0x35a   : > { %v2107_v43 = vpop.permute.xlu0 %2106 }
 0x35b   : > { %v2110_v0 = vsel %vm2108_vm12, %v2105_v47, %v2107_v43 }
 0x35c   : > { %v2114_v45 = vadd.f32 %v2110_v0, %v2073_v46 }
 0x35d   : > { %v2146_v30 = vpop.permute.xlu1 %2145 }
 0x35e   : > { %v2126_v32 = vpop.permute.xlu0 %2125 }
 0x35f   : > { %v2129_v9 = vsel %vm2108_vm12, %v2124_v56, %v2126_v32  ;;  %v2130_v15 = vsel %vm2108_vm12, %v2126_v32, %v2128_v31 }
 0x360   : > { %v2133_v20 = vadd.f32 %v2129_v9, %v2092_v13  ;;  %v2134_v3 = vadd.f32 %v2130_v15, %v2093_v26 }
 0x361   : > { %v2165_v54 = vpop.permute.xlu1 %2164 }
 0x362   : > { %v2144_v18 = vpop.permute.xlu0 %2143 }
 0x363   : > { %v2150_v55 = vsel %vm2149_vm13, %v2144_v18, %v2146_v30 }
 0x364   : > { %v2154_v35 = vadd.f32 %v2150_v55, %v2113_v44 }
 0x365   : > { %v2169_v40 = vpop.permute.xlu1 %2168 }
 0x366   : > { %v2148_v51 = vpop.permute.xlu0 %2147 }
 0x367   : > { %v2151_v62 = vsel %vm2149_vm13, %v2146_v30, %v2148_v51 }
 0x368   : > { %v2155_v2 = vadd.f32 %v2151_v62, %v2114_v45 }
 0x369   : > { %v2211_v42 = vpop.permute.xlu1 %2210 }
 0x36a   : > { %v2167_v7 = vpop.permute.xlu0 %2166 }
 0x36b   : > { %v2170_v58 = vsel %vm2149_vm13, %v2165_v54, %v2167_v7  ;;  %v2171_v16 = vsel %vm2149_vm13, %v2167_v7, %v2169_v40 }
 0x36c   : > { %v2174_v21 = vadd.f32 %v2170_v58, %v2133_v20  ;;  %v2175_v39 = vadd.f32 %v2171_v16, %v2134_v3 }
 0x36d   : > { %v2230_v12 = vpop.permute.xlu1 %2229 }
 0x36e   : > { %v2209_v8 = vpop.permute.xlu0 %2208 }
 0x36f   : > { %v2215_v6 = vsel %vm2214_vm14, %v2209_v8, %v2211_v42 }
 0x370   : > { %v2219_v38 = vadd.f32 %v2215_v6, %v2154_v35 }
 0x371   : > { %v2234_v49 = vpop.permute.xlu1 %2233 }
 0x372   : > { %v2213_v11 = vpop.permute.xlu0 %2212 }
 0x373   : > { %v2216_v57 = vsel %vm2214_vm14, %v2211_v42, %v2213_v11 }
 0x374   : > { %v2220_v59 = vadd.f32 %v2216_v57, %v2155_v2 }
 0x375   : > { %v2252_v5 = vpop.permute.xlu1 %2251 }
 0x376   : > { %v2232_v33 = vpop.permute.xlu0 %2231 }
 0x377   : > { %v2235_v4 = vsel %vm2214_vm14, %v2230_v12, %v2232_v33  ;;  %v2236_v31 = vsel %vm2214_vm14, %v2232_v33, %v2234_v49 }
 0x378   : > { %v2239_v37 = vadd.f32 %v2235_v4, %v2174_v21  ;;  %v2240_v15 = vadd.f32 %v2236_v31, %v2175_v39 }
 0x379   : > { %v2271_v24 = vpop.permute.xlu1 %2270 }
 0x37a   : > { %v2250_v22 = vpop.permute.xlu0 %2249 }
 0x37b   : > { %v2256_v45 = vsel %vm2255_vm15, %v2250_v22, %v2252_v5 }
 0x37c   : > { %v2260_v55 = vadd.f32 %v2256_v45, %v2219_v38 }
 0x37d   : > { %v2275_v10 = vpop.permute.xlu1 %2274 }
 0x37e   : > { %v2254_v1 = vpop.permute.xlu0 %2253 }
 0x37f   : > { %v2257_v30 = vsel %vm2255_vm15, %v2252_v5, %v2254_v1 }
 0x380   : > { %v2261_v35 = vadd.f32 %v2257_v30, %v2220_v59  ;;  %v5427_v30 = vld [vmem:[#allocation17_spill] sm:$0xff] }
 0x381   : > { %v2293_v50 = vpop.permute.xlu1 %2292 }
 0x382   : > { %v2273_v36 = vpop.permute.xlu0 %2272 }
 0x383   : > { %v2276_v32 = vsel %vm2255_vm15, %v2271_v24, %v2273_v36  ;;  %v2277_v9 = vsel %vm2255_vm15, %v2273_v36, %v2275_v10 }
 0x384   : > { %v2280_v40 = vadd.f32 %v2276_v32, %v2239_v37  ;;  %v2281_v51 = vadd.f32 %v2277_v9, %v2240_v15 }
 0x385   : > { %v2312_v52 = vpop.permute.xlu1 %2311 }
 0x386   : > { %v2291_v25 = vpop.permute.xlu0 %2290 }
 0x387   : > { %v2297_v20 = vsel %vm2296_vm0, %v2291_v25, %v2293_v50 }
 0x388   : > { %v2301_v16 = vadd.f32 %v2297_v20, %v2260_v55 }
 0x389   : > { %v2316_v48 = vpop.permute.xlu1 %2315 }
 0x38a   : > { %v2295_v34 = vpop.permute.xlu0 %2294 }
 0x38b   : > { %v2298_v3 = vsel %vm2296_vm0, %v2293_v50, %v2295_v34 }
 0x38c   : > { %v2302_v21 = vadd.f32 %v2298_v3, %v2261_v35 }
 0x38d   : > { %v2334_v17 = vpop.permute.xlu1 %2333 }
 0x38e   : > { %v2314_v41 = vpop.permute.xlu0 %2313 }
 0x38f   : > { %v2317_v54 = vsel %vm2296_vm0, %v2312_v52, %v2314_v41  ;;  %v2318_v18 = vsel %vm2296_vm0, %v2314_v41, %v2316_v48 }
 0x390   : > { %v2321_v39 = vadd.f32 %v2317_v54, %v2280_v40  ;;  %v2322_v12 = vadd.f32 %v2318_v18, %v2281_v51 }
 0x391   : > { %v2353_v28 = vpop.permute.xlu1 %2352 }
 0x392   : > { %v2332_v29 = vpop.permute.xlu0 %2331 }
 0x393   : > { %v2338_v2 = vsel %vm2337_vm2, %v2332_v29, %v2334_v17 }
 0x394   : > { %v2342_v57 = vadd.f32 %v2338_v2, %v2301_v16 }
 0x395   : > { %v2357_v14 = vpop.permute.xlu1 %2356 }
 0x396   : > { %v2336_v19 = vpop.permute.xlu0 %2335 }
 0x397   : > { %v2339_v42 = vsel %vm2337_vm2, %v2334_v17, %v2336_v19 }
 0x398   : > { %v2343_v59 = vadd.f32 %v2339_v42, %v2302_v21 }
 0x399   : > { %v2375_v61 = vpop.permute.xlu1 %2374 }
 0x39a   : > { %v2355_v46 = vpop.permute.xlu0 %2354 }
 0x39b   : > { %v2358_v7 = vsel %vm2337_vm2, %v2353_v28, %v2355_v46  ;;  %v2359_v58 = vsel %vm2337_vm2, %v2355_v46, %v2357_v14 }
 0x39c   : > { %v2362_v5 = vadd.f32 %v2358_v7, %v2321_v39  ;;  %v2363_v33 = vadd.f32 %v2359_v58, %v2322_v12 }
 0x39d   : > { %v2394_v47 = vpop.permute.xlu1 %2393 }
 0x39e   : > { %v2373_v27 = vpop.permute.xlu0 %2372 }
 0x39f   : > { %v2379_v6 = vsel %vm2378_vm3, %v2373_v27, %v2375_v61 }
 0x3a0   : > { %v2383_v1 = vadd.f32 %v2379_v6, %v2342_v57 }
 0x3a1   : > { %v2398_v23 = vpop.permute.xlu1 %2397 }
 0x3a2   : > { %v2377_v63 = vpop.permute.xlu0 %2376 }
 0x3a3   : > { %v2380_v38 = vsel %vm2378_vm3, %v2375_v61, %v2377_v63 }
 0x3a4   : > { %v2384_v50 = vadd.f32 %v2380_v38, %v2343_v59 }
 0x3a5   : > { %v2416_v13 = vpop.permute.xlu1 %2415 }
 0x3a6   : > { %v2396_v26 = vpop.permute.xlu0 %2395 }
 0x3a7   : > { %v2399_v49 = vsel %vm2378_vm3, %v2394_v47, %v2396_v26  ;;  %v2400_v11 = vsel %vm2378_vm3, %v2396_v26, %v2398_v23 }
 0x3a8   : > { %v2403_v36 = vadd.f32 %v2399_v49, %v2362_v5  ;;  %v2404_v52 = vadd.f32 %v2400_v11, %v2363_v33 }
 0x3a9   : > { %v2435_v56 = vpop.permute.xlu1 %2434 }
 0x3aa   : > { %v2414_v53 = vpop.permute.xlu0 %2413 }
 0x3ab   : > { %v2420_v37 = vsel %vm2419_vm4, %v2414_v53, %v2416_v13 }
 0x3ac   : > { %v2424_v34 = vadd.f32 %v2420_v37, %v2383_v1 }
 0x3ad   : > { %v2439_v60 = vpop.permute.xlu1 %2438 }
 0x3ae   : > { %v2418_v44 = vpop.permute.xlu0 %2417 }
 0x3af   : > { %v2421_v24 = vsel %vm2419_vm4, %v2416_v13, %v2418_v44 }
 0x3b0   : > { %v2425_v17 = vadd.f32 %v2421_v24, %v2384_v50 }
 0x3b1   : > { %v2457_v43 = vpop.permute.xlu1 %2456 }
 0x3b2   : > { %v2437_v0 = vpop.permute.xlu0 %2436 }
 0x3b3   : > { %v2440_v22 = vsel %vm2419_vm4, %v2435_v56, %v2437_v0  ;;  %v2441_v10 = vsel %vm2419_vm4, %v2437_v0, %v2439_v60 }
 0x3b4   : > { %v2444_v41 = vadd.f32 %v2440_v22, %v2403_v36  ;;  %v2445_v28 = vadd.f32 %v2441_v10, %v2404_v52 }
 0x3b5   : > { %v2476_v8 = vpop.permute.xlu1 %2475 }
 0x3b6   : > { %v2455_v62 = vpop.permute.xlu0 %2454 }
 0x3b7   : > { %v2461_v25 = vsel %vm2460_vm5, %v2455_v62, %v2457_v43 }
 0x3b8   : > { %v2465_v46 = vadd.f32 %v2461_v25, %v2424_v34 }
 0x3b9   : > { %v2480_v29 = vpop.permute.xlu1 %2479 }
 0x3ba   : > { %v2459_v4 = vpop.permute.xlu0 %2458 }
 0x3bb   : > { %v2462_v48 = vsel %vm2460_vm5, %v2457_v43, %v2459_v4 }
 0x3bc   : > { %v2466_v47 = vadd.f32 %v2462_v48, %v2425_v17 }
 0x3be   : > { %v2478_v14 = vpop.permute.xlu0 %2477 }
 0x3bf   : > { %v2481_v19 = vsel %vm2460_vm5, %v2476_v8, %v2478_v14  ;;  %v2482_v61 = vsel %vm2460_vm5, %v2478_v14, %v2480_v29 }
 0x3c0   : > { %v2485_v27 = vadd.f32 %v2481_v19, %v2444_v41  ;;  %v2486_v23 = vadd.f32 %v2482_v61, %v2445_v28 }
 0x3c2   : > { %v2487_v63 = vadd.f32 %v2485_v27, %v2465_v46  ;;  %v2488_v13 = vadd.f32 %v2486_v23, %v2466_v47 }
 0x3c4   : > { %v2749_v26 = vmul.f32 -1.442695, %v2487_v63  ;;  %v2750_v56 = vmul.f32 -1.442695, %v2488_v13 }
 0x3c6   : > { %2894 = vpow2.f32 %v2749_v26 }
 0x3c7   : > { %2896 = vpow2.f32 %v2750_v56 }
 0x3d0   : > { %v2895_v53 = vpop.eup %2894 }
 0x3d1   : > { %v2897_v60 = vpop.eup %2896  ;;  %v2495_v44 = vadd.f32 1.0, %v2895_v53 }
 0x3d2   : > { %v2496_v31 = vadd.f32 1.0, %v2897_v60 }
 0x3d3   : > { %2898 = vrcp.f32 %v2495_v44 }
 0x3d4   : > { %2900 = vrcp.f32 %v2496_v31 }
 0x3dd   : > { %v2899_v43 = vpop.eup %2898 }
 0x3de   : > { %v2901_v0 = vpop.eup %2900 }
 0x3df   : > { %v2503_v45 = vcombine.low %v2899_v43, %v2901_v0 }
 0x3e1   : > { %v2510_v32 = vrot.slane %v2503_v45, %v5427_v30 }
 0x3e3   : > { %v2517_v9 = vrot.slane %v2510_v32, %v5427_v30 }
 0x3e5   : > { %2519 = vst.msk [vmem:[%s229_s22] sm:$0x3] %vm3325_vm1, %v2517_v9 }
 0x3e6   : > { %2988 = shalt.err (!%p2985_p11)
}
 0x3e7   : > { %s2989_s24 = scalar_lea.hbm %s4988_s11, 32  ;;  %s2993_s1 = scalar_lea.hbm %s5042_s3, 64 }
 0x3e8   : > { %p2990_p7 = scmp.ne.s32.totalorder %s4988_s11, %s2989_s24  ;;  %p2994_p4 = scmp.lt.u32.totalorder %s4988_s11, %s5042_s3 }
 0x3e9   : > { %p2995_p9 = scmp.lt.u32.totalorder %s2993_s1, %s2989_s24  ;;  %p2997_p8 = scmp.lt.u32.totalorder %s2989_s24, %s4988_s11 }
 0x3ea   : > { %p2991_p12 = pnand %p2990_p7, %p5429_p2 }
 0x3eb   : > { %p2996_p5 = por %p2995_p9, %p2994_p4 }
 0x3ec   : > { %p2992_p1 = pneg %p2991_p12 }
 0x3ed   : > { %p2998_p10 = por %p2997_p8, %p2996_p5 }
 0x3ef   : > { %p2999_p13 = pnand %p2998_p10, %p2992_p1 }
 0x3f1   : > { %3002 = shalt.err (!%p2999_p13)
}
 0x3f2   : > { %2768 = dma.vmem_to_hbm [thread:$0]  (%p5429_p2), %s4990_s29, 32, %s4988_s11, %s2521_s15  }
 0x3f3 PF: > { %s2547_s27 = sand.u32 1, %s3045_s12   ;;  %p5430_p0 = scmp.ne.s32.totalorder %s5112_s23, 0 }
 0x3f4   : > { %p5431_p6 = scmp.ge.s32.totalorder %s3065_s17, 2  ;;  %s2548_s18 = scalar_lea.sflag [#allocation6], %s2547_s27 }
 0x3f6   : > { %p2782_p3 = pnand %p5431_p6, %p5430_p0 }
 0x3f8   : > { %3040 = dma.done.wait (!%p2782_p3), %s2548_s18, 32  }
 0x3f9   : > { %3042 = vsyncadd (!%p2782_p3), %s2548_s18, 4294967264  ;;  %s21_s17 = sadd.s32 1, %s3065_s17   ;;  %s5432_s12 = smov %s3049_s13 }
 0x3fa   : > { %p18_p11 = scmp.ge.s32.totalorder %s21_s17, 4   ;;  %s5433_s13 = smov %s3053_s14 }
 0x3fb   : > { %s5434_s14 = smov %s3266_s7  ;;  %s5435_s15 = smov %s3061_s16 }
 0x3fc   : > { %s5436_s16 = smov %s5438_s26  ;;  %20 = sbr.rel (!%p18_p11) target bundleno = 11 (0xb), region = 99 }
 0x403   :  { %2553 = vsyncpa [#allocation5], 1 }
 0x404   :  { %2555 = vsyncpa [#allocation5 + $0x1], 1 }
 0x405   :  { %2556 = vsyncpa [#allocation10], 1 }
 0x406   :  { %2557 = vsyncpa [#allocation6], 1 }
 0x407   :  { %2559 = vsyncpa [#allocation6 + $0x1], 1 }
 0x408   :  { %2560 = vsyncpa [#allocation7], 1 }
 0x409   :  { %2562 = vsyncpa [#allocation7 + $0x1], 1 }

</bundles_post_ra>
